<compile_context>
chip_gen: v5e
topology: v5e:2x2
jax: 0.10.0
libtpu: 0.0.40
codegen_flags: <defaults>
</compile_context>

<pallas_src>
import math

import numpy as np
import jax
import jax.numpy as jnp
from jax import lax
from jax.experimental import pallas as pl
from jax.experimental.pallas import tpu as pltpu

LN101 = math.log(101.0)  # UnnormaliseY(y) = exp(LN101 * y) - 1


# =============================================================================
# Fused whole-model kernel
# =============================================================================
def fused_forward(x2, x3, w_packed, input_dim):
    """x2: (T*Bp, Fp) zero-padded time-major rows; x3: (T, B, Fp); w_packed: (R, 4*Hp)."""
    TBp, dinp = x2.shape
    T, B, _ = x3.shape
    Bp = TBp // T
    R, G = w_packed.shape
    hp = G // 4

    # static row offsets inside the single packed weight buffer (all 8-aligned)
    o_wxf = 0
    o_wxb = o_wxf + dinp
    o_whf = o_wxb + dinp
    o_whb = o_whf + hp
    o_w2f = o_whb + hp
    o_w2b = o_w2f + hp
    o_w2h = o_w2b + hp
    o_b = o_w2h + hp
    o_w3x = o_b + 8
    assert R == o_w3x + hp, "packed weight buffer layout mismatch"

    def kernel(x2_ref, x3_ref, w_ref, out_ref,
               xgf_scr, xgb_scr, seqf_scr, seqb_scr, l2_scr):
        # ---- static views of the single packed weight buffer ----------------
        WXF = w_ref[o_wxf:o_wxf + dinp, :]
        WXB = w_ref[o_wxb:o_wxb + dinp, :]
        WHF = w_ref[o_whf:o_whf + hp, :]
        WHB = w_ref[o_whb:o_whb + hp, :]
        W2F = w_ref[o_w2f:o_w2f + hp, :]
        W2B = w_ref[o_w2b:o_w2b + hp, :]
        W2H = w_ref[o_w2h:o_w2h + hp, :]
        brows = w_ref[o_b:o_b + 8, :]
        b2, b3, W3H = brows[0:1, :], brows[1:2, :], brows[2:3, :]
        W3X = w_ref[o_w3x:o_w3x + hp, :]

        x2v = x2_ref[...]                                    # (T*Bp, Fp)

        # ---- hoisted, chain-free layer-1 input projections -------------------
        # one big MXU call per direction; layer-1 biases folded via the
        # ones-column of x, so nothing else is added inside the loops.
        xgf_scr[...] = jnp.dot(x2v, WXF, preferred_element_type=jnp.float32)
        xgb_scr[...] = jnp.dot(x2v, WXB, preferred_element_type=jnp.float32)

        def lstm_gates(g, c, hsz):
            # torch gate order [i, f, g, o]; 32-lane aligned slices when hsz=Hp
            i = jax.nn.sigmoid(g[:, 0 * hsz:1 * hsz])
            f = jax.nn.sigmoid(g[:, 1 * hsz:2 * hsz])
            gg = jnp.tanh(g[:, 2 * hsz:3 * hsz])
            o = jax.nn.sigmoid(g[:, 3 * hsz:4 * hsz])
            c = f * c + i * gg
            return o * jnp.tanh(c), c

        zeros_BH = jnp.zeros((Bp, hp), jnp.float32)
        zeros_B1 = jnp.zeros((Bp, 1), jnp.float32)

        # ---- loop A: both bi-LSTM directions interleaved ---------------------
        # two INDEPENDENT MXU->EUP chains per step -> ILP hides matmul latency
        def layer1_body(s, carry):
            hf, cf, hb, cb = carry
            rf = pl.multiple_of(s * Bp, Bp)
            rb = pl.multiple_of((T - 1 - s) * Bp, Bp)
            gf = xgf_scr[pl.ds(rf, Bp), :] + jnp.dot(
                hf, WHF, preferred_element_type=jnp.float32)
            hf, cf = lstm_gates(gf, cf, hp)
            seqf_scr[pl.ds(rf, Bp), :] = hf
            gb = xgb_scr[pl.ds(rb, Bp), :] + jnp.dot(
                hb, WHB, preferred_element_type=jnp.float32)
            hb, cb = lstm_gates(gb, cb, hp)
            seqb_scr[pl.ds(rb, Bp), :] = hb
            return hf, cf, hb, cb

        lax.fori_loop(0, T, layer1_body,
                      (zeros_BH, zeros_BH, zeros_BH, zeros_BH), unroll=True)

        # ---- hoisted layer-2 input projections (fwd + bwd halves + bias) -----
        l2_scr[...] = (
            jnp.dot(seqf_scr[...], W2F, preferred_element_type=jnp.float32)
            + jnp.dot(seqb_scr[...], W2B, preferred_element_type=jnp.float32)
            + b2)

        # ---- loop B: layer-2 LSTM + collect LSTM + numerator accumulation ----
        def layer2_body(t, carry):
            h2, c2, h3, c3, num = carry
            r = pl.multiple_of(t * Bp, Bp)
            g2 = l2_scr[pl.ds(r, Bp), :] + jnp.dot(
                h2, W2H, preferred_element_type=jnp.float32)
            h2, c2 = lstm_gates(g2, c2, hp)
            # collect LSTM (hidden 1): gates live in lanes 0:4 of a 128-wide row
            g3 = (jnp.dot(h2, W3X, preferred_element_type=jnp.float32)
                  + h3 * W3H + b3)
            h3, c3 = lstm_gates(g3, c3, 1)
            num = num + (jnp.exp(LN101 * h3) - 1.0)          # UnnormY(out) accum
            return h2, c2, h3, c3, num

        carry = lax.fori_loop(0, T, layer2_body,
                              (zeros_BH, zeros_BH, zeros_B1, zeros_B1, zeros_B1),
                              unroll=True)
        num = carry[4]                                       # (Bp, 1)

        # ---- denominator: UnnormaliseY(trace).mean(dim=2).sum(dim=1) ---------
        tr = x3_ref[...][:, :, 0:input_dim]                  # trace channels only
        u = jnp.exp(LN101 * tr) - 1.0
        den = jnp.sum(jnp.mean(u, axis=2, keepdims=True), axis=0)   # (B, 1)
        # NOTE: no guard against den ~ 0 -- matches the reference model exactly.

        out_ref[...] = num[0:B, :] / den

    vmem = pl.BlockSpec(memory_space=pltpu.MemorySpace.VMEM)
    return pl.pallas_call(
        kernel,
        out_shape=jax.ShapeDtypeStruct((B, 1), jnp.float32),
        in_specs=[vmem, vmem, vmem],
        out_specs=vmem,
        scratch_shapes=[
            pltpu.VMEM((TBp, G), jnp.float32),    # layer-1 fwd input pre-acts
            pltpu.VMEM((TBp, G), jnp.float32),    # layer-1 bwd input pre-acts
            pltpu.VMEM((TBp, hp), jnp.float32),   # fwd hidden sequence
            pltpu.VMEM((TBp, hp), jnp.float32),   # bwd hidden sequence
            pltpu.VMEM((TBp, G), jnp.float32),    # layer-2 input pre-acts
        ],
    )(x2, x3, w_packed)


# =============================================================================
# Parameters (torch nn.LSTM layout + init) and packing into one VMEM buffer
# =============================================================================
def make_params(key, input_dim=3, hidden_dim=20, aux_dim=4):
    def lstm(key, in_dim, h):
        k = 1.0 / math.sqrt(h)
        ks = jax.random.split(key, 4)
        return dict(
            w_ih=jax.random.uniform(ks[0], (4 * h, in_dim), jnp.float32, -k, k),
            w_hh=jax.random.uniform(ks[1], (4 * h, h), jnp.float32, -k, k),
            b_ih=jax.random.uniform(ks[2], (4 * h,), jnp.float32, -k, k),
            b_hh=jax.random.uniform(ks[3], (4 * h,), jnp.float32, -k, k),
        )

    kf, kb, k2, k3 = jax.random.split(key, 4)
    din = input_dim + aux_dim
    return dict(fwd=lstm(kf, din, hidden_dim),
                bwd=lstm(kb, din, hidden_dim),
                l2=lstm(k2, 2 * hidden_dim, hidden_dim),
                col=lstm(k3, hidden_dim, 1))


def pack_weights(p, input_dim, hidden_dim, aux_dim):
    """Pack every weight/bias into one (R, 4*Hp) f32 buffer (single DMA).

    Hidden is padded 20->32 so 4*Hp=128 fills one lane tile; padded gate
    columns are zero, which keeps padded hidden units exactly 0 at all steps.
    Layer-1 biases are folded into an extra weight row hit by the ones-column
    of the input."""
    H = hidden_dim
    hp = ((H + 31) // 32) * 32
    G = 4 * hp
    din = input_dim + aux_dim
    dinp = ((din + 1 + 7) // 8) * 8          # +1 ones column, rounded to 8 rows

    def gate_cols(w):                         # (rows, 4H) -> (rows, 4Hp)
        rows = w.shape[0]
        out = jnp.zeros((rows, G), jnp.float32)
        for k in range(4):
            out = out.at[:, k * hp:k * hp + H].set(w[:, k * H:(k + 1) * H])
        return out

    def row_pad(w, rows):
        return jnp.zeros((rows, G), jnp.float32).at[:w.shape[0]].set(w)

    def layer1(q):                            # bias folded into the ones-row
        bias = gate_cols((q["b_ih"] + q["b_hh"])[None, :])
        wx = jnp.zeros((dinp, G), jnp.float32)
        wx = wx.at[:din].set(gate_cols(q["w_ih"].T)).at[din].set(bias[0])
        wh = row_pad(gate_cols(q["w_hh"].T), hp)
        return wx, wh

    wxf, whf = layer1(p["fwd"])
    wxb, whb = layer1(p["bwd"])

    w2x = gate_cols(p["l2"]["w_ih"].T)        # (2H, G): rows 0:H fwd, H:2H bwd
    w2f = row_pad(w2x[:H], hp)
    w2b = row_pad(w2x[H:], hp)
    w2h = row_pad(gate_cols(p["l2"]["w_hh"].T), hp)
    b2 = gate_cols((p["l2"]["b_ih"] + p["l2"]["b_hh"])[None, :])

    c = p["col"]                              # hidden size 1: gates in cols 0:4
    w3x = jnp.zeros((hp, G), jnp.float32).at[:H, :4].set(c["w_ih"].T)
    w3h = jnp.zeros((1, G), jnp.float32).at[0, :4].set(c["w_hh"][:, 0])
    b3 = jnp.zeros((1, G), jnp.float32).at[0, :4].set(c["b_ih"] + c["b_hh"])

    brows = jnp.zeros((8, G), jnp.float32)
    brows = brows.at[0].set(b2[0]).at[1].set(b3[0]).at[2].set(w3h[0])

    return jnp.concatenate(
        [wxf, wxb, whf, whb, w2f, w2b, w2h, brows, w3x], axis=0)


# =============================================================================
# Full forward pass (mirrors Model_3_0.forward, Unnorm=False)
# =============================================================================
def model_forward(trace, aux, w_packed):
    # trace: (B, T, input_dim), aux: (B, aux_dim, 1)  -- PyTorch conventions
    B, T, input_dim = trace.shape
    aux_dim = aux.shape[1]
    aux_t = jnp.broadcast_to(jnp.transpose(aux, (0, 2, 1)),
                             (B, T, aux_dim)).astype(jnp.float32)
    ones = jnp.ones((B, T, 1), jnp.float32)              # folds layer-1 biases
    x = jnp.concatenate([trace.astype(jnp.float32), aux_t, ones], axis=2)
    feat = input_dim + aux_dim + 1
    featp = ((feat + 7) // 8) * 8
    if featp > feat:
        x = jnp.pad(x, ((0, 0), (0, 0), (0, featp - feat)))

    x3 = jnp.transpose(x, (1, 0, 2))                     # (T, B, Fp) time-major
    Bp = ((B + 7) // 8) * 8                              # full f32 sublane tiles
    x2 = jnp.pad(x3, ((0, 0), (0, Bp - B), (0, 0))).reshape(T * Bp, featp)
    return fused_forward(x2, x3, w_packed, input_dim)


# =============================================================================
# Pure-JAX reference (mirrors torch.nn.LSTM exactly) for a numerical check
# =============================================================================
def _lstm_ref(x, q):
    B, T, _ = x.shape
    H = q["w_hh"].shape[1]
    b = q["b_ih"] + q["b_hh"]

    def step(carry, x_t):
        h, c = carry
        g = x_t @ q["w_ih"].T + h @ q["w_hh"].T + b
        i, f, gg, o = jnp.split(g, 4, axis=1)
        c = jax.nn.sigmoid(f) * c + jax.nn.sigmoid(i) * jnp.tanh(gg)
        h = jax.nn.sigmoid(o) * jnp.tanh(c)
        return (h, c), h

    init = (jnp.zeros((B, H), jnp.float32), jnp.zeros((B, H), jnp.float32))
    _, hs = lax.scan(step, init, jnp.swapaxes(x, 0, 1))
    return jnp.swapaxes(hs, 0, 1)


def model_reference(trace, aux, p):
    B, T, _ = trace.shape
    aux_t = jnp.broadcast_to(jnp.transpose(aux, (0, 2, 1)), (B, T, aux.shape[1]))
    x = jnp.concatenate([trace, aux_t], axis=2)
    fwd = _lstm_ref(x, p["fwd"])
    bwd = jnp.flip(_lstm_ref(jnp.flip(x, axis=1), p["bwd"]), axis=1)
    h2 = _lstm_ref(jnp.concatenate([fwd, bwd], axis=2), p["l2"])
    h3 = _lstm_ref(h2, p["col"])
    unnorm = lambda y: 101.0 ** y - 1.0
    num = unnorm(h3).sum(axis=1)
    den = unnorm(trace).mean(axis=2).sum(axis=1)[:, None]
    return num / den


if __name__ == "__main__":
    key = jax.random.PRNGKey(0)
    k_trace, k_aux, k_params = jax.random.split(key, 3)

    B, T = 2, 8
    input_dim, hidden_dim, aux_dim = 3, 20, 4

    trace = jax.random.normal(k_trace, (B, T, input_dim), jnp.float32)
    aux = jax.random.normal(k_aux, (B, aux_dim, 1), jnp.float32)

    params = make_params(k_params, input_dim, hidden_dim, aux_dim)
    w_packed = pack_weights(params, input_dim, hidden_dim, aux_dim)

    fwd = jax.jit(model_forward)
    out = fwd(trace, aux, w_packed)
    jax.block_until_ready(out)
    assert out.shape == (B, 1)

    ref = model_reference(trace, aux, params)
    np.testing.assert_allclose(np.asarray(out), np.asarray(ref),
                               rtol=2e-3, atol=2e-3)

    print("KERNEL_OK")
</pallas_src>

<mosaic_0001>
module attributes {stable_mosaic.version = 11 : i64} {
  func.func @kernel(%arg0: memref<64x8xf32, #tpu.memory_space<vmem>>, %arg1: memref<8x2x8xf32, #tpu.memory_space<vmem>>, %arg2: memref<216x128xf32, #tpu.memory_space<vmem>>, %arg3: memref<2x1xf32, #tpu.memory_space<vmem>>, %arg4: memref<64x128xf32, #tpu.memory_space<vmem>>, %arg5: memref<64x128xf32, #tpu.memory_space<vmem>>, %arg6: memref<64x32xf32, #tpu.memory_space<vmem>>, %arg7: memref<64x32xf32, #tpu.memory_space<vmem>>, %arg8: memref<64x128xf32, #tpu.memory_space<vmem>>) attributes {dimension_semantics = [], scalar_prefetch = 0 : i64, scratch_operands = 5 : i64, tpu.core_type = #tpu.core_type<tc>} {
    %c0 = arith.constant 0 : index
    %c0_0 = arith.constant 0 : index
    %0 = vector.load %arg2[%c0, %c0_0] : memref<216x128xf32, #tpu.memory_space<vmem>>, vector<8x128xf32>
    %c8 = arith.constant 8 : index
    %c0_1 = arith.constant 0 : index
    %1 = vector.load %arg2[%c8, %c0_1] : memref<216x128xf32, #tpu.memory_space<vmem>>, vector<8x128xf32>
    %c16 = arith.constant 16 : index
    %c0_2 = arith.constant 0 : index
    %2 = vector.load %arg2[%c16, %c0_2] : memref<216x128xf32, #tpu.memory_space<vmem>>, vector<32x128xf32>
    %c48 = arith.constant 48 : index
    %c0_3 = arith.constant 0 : index
    %3 = vector.load %arg2[%c48, %c0_3] : memref<216x128xf32, #tpu.memory_space<vmem>>, vector<32x128xf32>
    %c80 = arith.constant 80 : index
    %c0_4 = arith.constant 0 : index
    %4 = vector.load %arg2[%c80, %c0_4] : memref<216x128xf32, #tpu.memory_space<vmem>>, vector<32x128xf32>
    %c112 = arith.constant 112 : index
    %c0_5 = arith.constant 0 : index
    %5 = vector.load %arg2[%c112, %c0_5] : memref<216x128xf32, #tpu.memory_space<vmem>>, vector<32x128xf32>
    %c144 = arith.constant 144 : index
    %c0_6 = arith.constant 0 : index
    %6 = vector.load %arg2[%c144, %c0_6] : memref<216x128xf32, #tpu.memory_space<vmem>>, vector<32x128xf32>
    %c176 = arith.constant 176 : index
    %c0_7 = arith.constant 0 : index
    %7 = vector.load %arg2[%c176, %c0_7] : memref<216x128xf32, #tpu.memory_space<vmem>>, vector<8x128xf32>
    %8 = vector.extract_strided_slice %7 {offsets = [0, 0], sizes = [1, 128], strides = [1, 1]} : vector<8x128xf32> to vector<1x128xf32>
    %9 = vector.extract_strided_slice %7 {offsets = [1, 0], sizes = [1, 128], strides = [1, 1]} : vector<8x128xf32> to vector<1x128xf32>
    %10 = vector.extract_strided_slice %7 {offsets = [2, 0], sizes = [1, 128], strides = [1, 1]} : vector<8x128xf32> to vector<1x128xf32>
    %c184 = arith.constant 184 : index
    %c0_8 = arith.constant 0 : index
    %11 = vector.load %arg2[%c184, %c0_8] : memref<216x128xf32, #tpu.memory_space<vmem>>, vector<32x128xf32>
    %c0_9 = arith.constant 0 : index
    %c0_10 = arith.constant 0 : index
    %12 = vector.load %arg0[%c0_9, %c0_10] : memref<64x8xf32, #tpu.memory_space<vmem>>, vector<64x8xf32>
    %cst = arith.constant dense<0.000000e+00> : vector<64x128xf32>
    %13 = tpu.matmul %12, %0, %cst {dimension_numbers = #tpu.dot_dimension_numbers<[1], [0], [0], [1], [0, 0, 1, 1], [], []>} : vector<64x8xf32>, vector<8x128xf32>, vector<64x128xf32> -> vector<64x128xf32>
    %c0_11 = arith.constant 0 : index
    %c0_12 = arith.constant 0 : index
    %14 = vector.load %arg4[%c0_11, %c0_12] : memref<64x128xf32, #tpu.memory_space<vmem>>, vector<64x128xf32>
    tpu.vector_store %arg4[%c0_11, %c0_12], %13 {strides = array<i32>} : memref<64x128xf32, #tpu.memory_space<vmem>>, vector<64x128xf32>,
    %cst_13 = arith.constant dense<0.000000e+00> : vector<64x128xf32>
    %15 = tpu.matmul %12, %1, %cst_13 {dimension_numbers = #tpu.dot_dimension_numbers<[1], [0], [0], [1], [0, 0, 1, 1], [], []>} : vector<64x8xf32>, vector<8x128xf32>, vector<64x128xf32> -> vector<64x128xf32>
    %c0_14 = arith.constant 0 : index
    %c0_15 = arith.constant 0 : index
    %16 = vector.load %arg5[%c0_14, %c0_15] : memref<64x128xf32, #tpu.memory_space<vmem>>, vector<64x128xf32>
    tpu.vector_store %arg5[%c0_14, %c0_15], %15 {strides = array<i32>} : memref<64x128xf32, #tpu.memory_space<vmem>>, vector<64x128xf32>,
    %cst_16 = arith.constant 0.000000e+00 : f32
    %17 = vector.broadcast %cst_16 : f32 to vector<8x32xf32>
    %cst_17 = arith.constant 0.000000e+00 : f32
    %18 = vector.broadcast %cst_17 : f32 to vector<8x1xf32>
    %c0_i32 = arith.constant 0 : i32
    %c8_i32 = arith.constant 8 : i32
    %19 = arith.muli %c0_i32, %c8_i32 : i32
    %20 = tpu.assume_multiple %19, 8 : i32
    %c7_i32 = arith.constant 7 : i32
    %21 = arith.subi %c7_i32, %c0_i32 : i32
    %c8_i32_18 = arith.constant 8 : i32
    %22 = arith.muli %21, %c8_i32_18 : i32
    %23 = tpu.assume_multiple %22, 8 : i32
    %24 = arith.index_cast %20 : i32 to index
    %c0_19 = arith.constant 0 : index
    %25 = vector.load %arg4[%24, %c0_19] : memref<64x128xf32, #tpu.memory_space<vmem>>, vector<8x128xf32>
    %cst_20 = arith.constant dense<0.000000e+00> : vector<8x128xf32>
    %26 = tpu.matmul %17, %2, %cst_20 {dimension_numbers = #tpu.dot_dimension_numbers<[1], [0], [0], [1], [0, 0, 1, 1], [], []>} : vector<8x32xf32>, vector<32x128xf32>, vector<8x128xf32> -> vector<8x128xf32>
    %27 = arith.addf %25, %26 : vector<8x128xf32>
    %28 = vector.extract_strided_slice %27 {offsets = [0, 0], sizes = [8, 32], strides = [1, 1]} : vector<8x128xf32> to vector<8x32xf32>
    %29 = arith.negf %28 : vector<8x32xf32>
    %30 = math.exp %29 : vector<8x32xf32>
    %cst_21 = arith.constant 1.000000e+00 : f32
    %31 = vector.broadcast %cst_21 : f32 to vector<8x32xf32>
    %32 = arith.addf %31, %30 : vector<8x32xf32>
    %33 = arith.divf %31, %32 : vector<8x32xf32>
    %34 = vector.extract_strided_slice %27 {offsets = [0, 32], sizes = [8, 32], strides = [1, 1]} : vector<8x128xf32> to vector<8x32xf32>
    %35 = arith.negf %34 : vector<8x32xf32>
    %36 = math.exp %35 : vector<8x32xf32>
    %cst_22 = arith.constant 1.000000e+00 : f32
    %37 = vector.broadcast %cst_22 : f32 to vector<8x32xf32>
    %38 = arith.addf %37, %36 : vector<8x32xf32>
    %39 = arith.divf %37, %38 : vector<8x32xf32>
    %40 = vector.extract_strided_slice %27 {offsets = [0, 64], sizes = [8, 32], strides = [1, 1]} : vector<8x128xf32> to vector<8x32xf32>
    %41 = math.tanh %40 : vector<8x32xf32>
    %42 = vector.extract_strided_slice %27 {offsets = [0, 96], sizes = [8, 32], strides = [1, 1]} : vector<8x128xf32> to vector<8x32xf32>
    %43 = arith.negf %42 : vector<8x32xf32>
    %44 = math.exp %43 : vector<8x32xf32>
    %cst_23 = arith.constant 1.000000e+00 : f32
    %45 = vector.broadcast %cst_23 : f32 to vector<8x32xf32>
    %46 = arith.addf %45, %44 : vector<8x32xf32>
    %47 = arith.divf %45, %46 : vector<8x32xf32>
    %48 = arith.mulf %39, %17 : vector<8x32xf32>
    %49 = arith.mulf %33, %41 : vector<8x32xf32>
    %50 = arith.addf %48, %49 : vector<8x32xf32>
    %51 = math.tanh %50 : vector<8x32xf32>
    %52 = arith.mulf %47, %51 : vector<8x32xf32>
    %53 = arith.index_cast %20 : i32 to index
    %c0_24 = arith.constant 0 : index
    %54 = vector.load %arg6[%53, %c0_24] : memref<64x32xf32, #tpu.memory_space<vmem>>, vector<8x32xf32>
    tpu.vector_store %arg6[%53, %c0_24], %52 {strides = array<i32>} : memref<64x32xf32, #tpu.memory_space<vmem>>, vector<8x32xf32>,
    %55 = arith.index_cast %23 : i32 to index
    %c0_25 = arith.constant 0 : index
    %56 = vector.load %arg5[%55, %c0_25] : memref<64x128xf32, #tpu.memory_space<vmem>>, vector<8x128xf32>
    %cst_26 = arith.constant dense<0.000000e+00> : vector<8x128xf32>
    %57 = tpu.matmul %17, %3, %cst_26 {dimension_numbers = #tpu.dot_dimension_numbers<[1], [0], [0], [1], [0, 0, 1, 1], [], []>} : vector<8x32xf32>, vector<32x128xf32>, vector<8x128xf32> -> vector<8x128xf32>
    %58 = arith.addf %56, %57 : vector<8x128xf32>
    %59 = vector.extract_strided_slice %58 {offsets = [0, 0], sizes = [8, 32], strides = [1, 1]} : vector<8x128xf32> to vector<8x32xf32>
    %60 = arith.negf %59 : vector<8x32xf32>
    %61 = math.exp %60 : vector<8x32xf32>
    %cst_27 = arith.constant 1.000000e+00 : f32
    %62 = vector.broadcast %cst_27 : f32 to vector<8x32xf32>
    %63 = arith.addf %62, %61 : vector<8x32xf32>
    %64 = arith.divf %62, %63 : vector<8x32xf32>
    %65 = vector.extract_strided_slice %58 {offsets = [0, 32], sizes = [8, 32], strides = [1, 1]} : vector<8x128xf32> to vector<8x32xf32>
    %66 = arith.negf %65 : vector<8x32xf32>
    %67 = math.exp %66 : vector<8x32xf32>
    %cst_28 = arith.constant 1.000000e+00 : f32
    %68 = vector.broadcast %cst_28 : f32 to vector<8x32xf32>
    %69 = arith.addf %68, %67 : vector<8x32xf32>
    %70 = arith.divf %68, %69 : vector<8x32xf32>
    %71 = vector.extract_strided_slice %58 {offsets = [0, 64], sizes = [8, 32], strides = [1, 1]} : vector<8x128xf32> to vector<8x32xf32>
    %72 = math.tanh %71 : vector<8x32xf32>
    %73 = vector.extract_strided_slice %58 {offsets = [0, 96], sizes = [8, 32], strides = [1, 1]} : vector<8x128xf32> to vector<8x32xf32>
    %74 = arith.negf %73 : vector<8x32xf32>
    %75 = math.exp %74 : vector<8x32xf32>
    %cst_29 = arith.constant 1.000000e+00 : f32
    %76 = vector.broadcast %cst_29 : f32 to vector<8x32xf32>
    %77 = arith.addf %76, %75 : vector<8x32xf32>
    %78 = arith.divf %76, %77 : vector<8x32xf32>
    %79 = arith.mulf %70, %17 : vector<8x32xf32>
    %80 = arith.mulf %64, %72 : vector<8x32xf32>
    %81 = arith.addf %79, %80 : vector<8x32xf32>
    %82 = math.tanh %81 : vector<8x32xf32>
    %83 = arith.mulf %78, %82 : vector<8x32xf32>
    %84 = arith.index_cast %23 : i32 to index
    %c0_30 = arith.constant 0 : index
    %85 = vector.load %arg7[%84, %c0_30] : memref<64x32xf32, #tpu.memory_space<vmem>>, vector<8x32xf32>
    tpu.vector_store %arg7[%84, %c0_30], %83 {strides = array<i32>} : memref<64x32xf32, #tpu.memory_space<vmem>>, vector<8x32xf32>,
    %c1_i32 = arith.constant 1 : i32
    %c8_i32_31 = arith.constant 8 : i32
    %86 = arith.muli %c1_i32, %c8_i32_31 : i32
    %87 = tpu.assume_multiple %86, 8 : i32
    %c7_i32_32 = arith.constant 7 : i32
    %88 = arith.subi %c7_i32_32, %c1_i32 : i32
    %c8_i32_33 = arith.constant 8 : i32
    %89 = arith.muli %88, %c8_i32_33 : i32
    %90 = tpu.assume_multiple %89, 8 : i32
    %91 = arith.index_cast %87 : i32 to index
    %c0_34 = arith.constant 0 : index
    %92 = vector.load %arg4[%91, %c0_34] : memref<64x128xf32, #tpu.memory_space<vmem>>, vector<8x128xf32>
    %cst_35 = arith.constant dense<0.000000e+00> : vector<8x128xf32>
    %93 = tpu.matmul %52, %2, %cst_35 {dimension_numbers = #tpu.dot_dimension_numbers<[1], [0], [0], [1], [0, 0, 1, 1], [], []>} : vector<8x32xf32>, vector<32x128xf32>, vector<8x128xf32> -> vector<8x128xf32>
    %94 = arith.addf %92, %93 : vector<8x128xf32>
    %95 = vector.extract_strided_slice %94 {offsets = [0, 0], sizes = [8, 32], strides = [1, 1]} : vector<8x128xf32> to vector<8x32xf32>
    %96 = arith.negf %95 : vector<8x32xf32>
    %97 = math.exp %96 : vector<8x32xf32>
    %cst_36 = arith.constant 1.000000e+00 : f32
    %98 = vector.broadcast %cst_36 : f32 to vector<8x32xf32>
    %99 = arith.addf %98, %97 : vector<8x32xf32>
    %100 = arith.divf %98, %99 : vector<8x32xf32>
    %101 = vector.extract_strided_slice %94 {offsets = [0, 32], sizes = [8, 32], strides = [1, 1]} : vector<8x128xf32> to vector<8x32xf32>
    %102 = arith.negf %101 : vector<8x32xf32>
    %103 = math.exp %102 : vector<8x32xf32>
    %cst_37 = arith.constant 1.000000e+00 : f32
    %104 = vector.broadcast %cst_37 : f32 to vector<8x32xf32>
    %105 = arith.addf %104, %103 : vector<8x32xf32>
    %106 = arith.divf %104, %105 : vector<8x32xf32>
    %107 = vector.extract_strided_slice %94 {offsets = [0, 64], sizes = [8, 32], strides = [1, 1]} : vector<8x128xf32> to vector<8x32xf32>
    %108 = math.tanh %107 : vector<8x32xf32>
    %109 = vector.extract_strided_slice %94 {offsets = [0, 96], sizes = [8, 32], strides = [1, 1]} : vector<8x128xf32> to vector<8x32xf32>
    %110 = arith.negf %109 : vector<8x32xf32>
    %111 = math.exp %110 : vector<8x32xf32>
    %cst_38 = arith.constant 1.000000e+00 : f32
    %112 = vector.broadcast %cst_38 : f32 to vector<8x32xf32>
    %113 = arith.addf %112, %111 : vector<8x32xf32>
    %114 = arith.divf %112, %113 : vector<8x32xf32>
    %115 = arith.mulf %106, %50 : vector<8x32xf32>
    %116 = arith.mulf %100, %108 : vector<8x32xf32>
    %117 = arith.addf %115, %116 : vector<8x32xf32>
    %118 = math.tanh %117 : vector<8x32xf32>
    %119 = arith.mulf %114, %118 : vector<8x32xf32>
    %120 = arith.index_cast %87 : i32 to index
    %c0_39 = arith.constant 0 : index
    %121 = vector.load %arg6[%120, %c0_39] : memref<64x32xf32, #tpu.memory_space<vmem>>, vector<8x32xf32>
    tpu.vector_store %arg6[%120, %c0_39], %119 {strides = array<i32>} : memref<64x32xf32, #tpu.memory_space<vmem>>, vector<8x32xf32>,
    %122 = arith.index_cast %90 : i32 to index
    %c0_40 = arith.constant 0 : index
    %123 = vector.load %arg5[%122, %c0_40] : memref<64x128xf32, #tpu.memory_space<vmem>>, vector<8x128xf32>
    %cst_41 = arith.constant dense<0.000000e+00> : vector<8x128xf32>
    %124 = tpu.matmul %83, %3, %cst_41 {dimension_numbers = #tpu.dot_dimension_numbers<[1], [0], [0], [1], [0, 0, 1, 1], [], []>} : vector<8x32xf32>, vector<32x128xf32>, vector<8x128xf32> -> vector<8x128xf32>
    %125 = arith.addf %123, %124 : vector<8x128xf32>
    %126 = vector.extract_strided_slice %125 {offsets = [0, 0], sizes = [8, 32], strides = [1, 1]} : vector<8x128xf32> to vector<8x32xf32>
    %127 = arith.negf %126 : vector<8x32xf32>
    %128 = math.exp %127 : vector<8x32xf32>
    %cst_42 = arith.constant 1.000000e+00 : f32
    %129 = vector.broadcast %cst_42 : f32 to vector<8x32xf32>
    %130 = arith.addf %129, %128 : vector<8x32xf32>
    %131 = arith.divf %129, %130 : vector<8x32xf32>
    %132 = vector.extract_strided_slice %125 {offsets = [0, 32], sizes = [8, 32], strides = [1, 1]} : vector<8x128xf32> to vector<8x32xf32>
    %133 = arith.negf %132 : vector<8x32xf32>
    %134 = math.exp %133 : vector<8x32xf32>
    %cst_43 = arith.constant 1.000000e+00 : f32
    %135 = vector.broadcast %cst_43 : f32 to vector<8x32xf32>
    %136 = arith.addf %135, %134 : vector<8x32xf32>
    %137 = arith.divf %135, %136 : vector<8x32xf32>
    %138 = vector.extract_strided_slice %125 {offsets = [0, 64], sizes = [8, 32], strides = [1, 1]} : vector<8x128xf32> to vector<8x32xf32>
    %139 = math.tanh %138 : vector<8x32xf32>
    %140 = vector.extract_strided_slice %125 {offsets = [0, 96], sizes = [8, 32], strides = [1, 1]} : vector<8x128xf32> to vector<8x32xf32>
    %141 = arith.negf %140 : vector<8x32xf32>
    %142 = math.exp %141 : vector<8x32xf32>
    %cst_44 = arith.constant 1.000000e+00 : f32
    %143 = vector.broadcast %cst_44 : f32 to vector<8x32xf32>
    %144 = arith.addf %143, %142 : vector<8x32xf32>
    %145 = arith.divf %143, %144 : vector<8x32xf32>
    %146 = arith.mulf %137, %81 : vector<8x32xf32>
    %147 = arith.mulf %131, %139 : vector<8x32xf32>
    %148 = arith.addf %146, %147 : vector<8x32xf32>
    %149 = math.tanh %148 : vector<8x32xf32>
    %150 = arith.mulf %145, %149 : vector<8x32xf32>
    %151 = arith.index_cast %90 : i32 to index
    %c0_45 = arith.constant 0 : index
    %152 = vector.load %arg7[%151, %c0_45] : memref<64x32xf32, #tpu.memory_space<vmem>>, vector<8x32xf32>
    tpu.vector_store %arg7[%151, %c0_45], %150 {strides = array<i32>} : memref<64x32xf32, #tpu.memory_space<vmem>>, vector<8x32xf32>,
    %c2_i32 = arith.constant 2 : i32
    %c8_i32_46 = arith.constant 8 : i32
    %153 = arith.muli %c2_i32, %c8_i32_46 : i32
    %154 = tpu.assume_multiple %153, 8 : i32
    %c7_i32_47 = arith.constant 7 : i32
    %155 = arith.subi %c7_i32_47, %c2_i32 : i32
    %c8_i32_48 = arith.constant 8 : i32
    %156 = arith.muli %155, %c8_i32_48 : i32
    %157 = tpu.assume_multiple %156, 8 : i32
    %158 = arith.index_cast %154 : i32 to index
    %c0_49 = arith.constant 0 : index
    %159 = vector.load %arg4[%158, %c0_49] : memref<64x128xf32, #tpu.memory_space<vmem>>, vector<8x128xf32>
    %cst_50 = arith.constant dense<0.000000e+00> : vector<8x128xf32>
    %160 = tpu.matmul %119, %2, %cst_50 {dimension_numbers = #tpu.dot_dimension_numbers<[1], [0], [0], [1], [0, 0, 1, 1], [], []>} : vector<8x32xf32>, vector<32x128xf32>, vector<8x128xf32> -> vector<8x128xf32>
    %161 = arith.addf %159, %160 : vector<8x128xf32>
    %162 = vector.extract_strided_slice %161 {offsets = [0, 0], sizes = [8, 32], strides = [1, 1]} : vector<8x128xf32> to vector<8x32xf32>
    %163 = arith.negf %162 : vector<8x32xf32>
    %164 = math.exp %163 : vector<8x32xf32>
    %cst_51 = arith.constant 1.000000e+00 : f32
    %165 = vector.broadcast %cst_51 : f32 to vector<8x32xf32>
    %166 = arith.addf %165, %164 : vector<8x32xf32>
    %167 = arith.divf %165, %166 : vector<8x32xf32>
    %168 = vector.extract_strided_slice %161 {offsets = [0, 32], sizes = [8, 32], strides = [1, 1]} : vector<8x128xf32> to vector<8x32xf32>
    %169 = arith.negf %168 : vector<8x32xf32>
    %170 = math.exp %169 : vector<8x32xf32>
    %cst_52 = arith.constant 1.000000e+00 : f32
    %171 = vector.broadcast %cst_52 : f32 to vector<8x32xf32>
    %172 = arith.addf %171, %170 : vector<8x32xf32>
    %173 = arith.divf %171, %172 : vector<8x32xf32>
    %174 = vector.extract_strided_slice %161 {offsets = [0, 64], sizes = [8, 32], strides = [1, 1]} : vector<8x128xf32> to vector<8x32xf32>
    %175 = math.tanh %174 : vector<8x32xf32>
    %176 = vector.extract_strided_slice %161 {offsets = [0, 96], sizes = [8, 32], strides = [1, 1]} : vector<8x128xf32> to vector<8x32xf32>
    %177 = arith.negf %176 : vector<8x32xf32>
    %178 = math.exp %177 : vector<8x32xf32>
    %cst_53 = arith.constant 1.000000e+00 : f32
    %179 = vector.broadcast %cst_53 : f32 to vector<8x32xf32>
    %180 = arith.addf %179, %178 : vector<8x32xf32>
    %181 = arith.divf %179, %180 : vector<8x32xf32>
    %182 = arith.mulf %173, %117 : vector<8x32xf32>
    %183 = arith.mulf %167, %175 : vector<8x32xf32>
    %184 = arith.addf %182, %183 : vector<8x32xf32>
    %185 = math.tanh %184 : vector<8x32xf32>
    %186 = arith.mulf %181, %185 : vector<8x32xf32>
    %187 = arith.index_cast %154 : i32 to index
    %c0_54 = arith.constant 0 : index
    %188 = vector.load %arg6[%187, %c0_54] : memref<64x32xf32, #tpu.memory_space<vmem>>, vector<8x32xf32>
    tpu.vector_store %arg6[%187, %c0_54], %186 {strides = array<i32>} : memref<64x32xf32, #tpu.memory_space<vmem>>, vector<8x32xf32>,
    %189 = arith.index_cast %157 : i32 to index
    %c0_55 = arith.constant 0 : index
    %190 = vector.load %arg5[%189, %c0_55] : memref<64x128xf32, #tpu.memory_space<vmem>>, vector<8x128xf32>
    %cst_56 = arith.constant dense<0.000000e+00> : vector<8x128xf32>
    %191 = tpu.matmul %150, %3, %cst_56 {dimension_numbers = #tpu.dot_dimension_numbers<[1], [0], [0], [1], [0, 0, 1, 1], [], []>} : vector<8x32xf32>, vector<32x128xf32>, vector<8x128xf32> -> vector<8x128xf32>
    %192 = arith.addf %190, %191 : vector<8x128xf32>
    %193 = vector.extract_strided_slice %192 {offsets = [0, 0], sizes = [8, 32], strides = [1, 1]} : vector<8x128xf32> to vector<8x32xf32>
    %194 = arith.negf %193 : vector<8x32xf32>
    %195 = math.exp %194 : vector<8x32xf32>
    %cst_57 = arith.constant 1.000000e+00 : f32
    %196 = vector.broadcast %cst_57 : f32 to vector<8x32xf32>
    %197 = arith.addf %196, %195 : vector<8x32xf32>
    %198 = arith.divf %196, %197 : vector<8x32xf32>
    %199 = vector.extract_strided_slice %192 {offsets = [0, 32], sizes = [8, 32], strides = [1, 1]} : vector<8x128xf32> to vector<8x32xf32>
    %200 = arith.negf %199 : vector<8x32xf32>
    %201 = math.exp %200 : vector<8x32xf32>
    %cst_58 = arith.constant 1.000000e+00 : f32
    %202 = vector.broadcast %cst_58 : f32 to vector<8x32xf32>
    %203 = arith.addf %202, %201 : vector<8x32xf32>
    %204 = arith.divf %202, %203 : vector<8x32xf32>
    %205 = vector.extract_strided_slice %192 {offsets = [0, 64], sizes = [8, 32], strides = [1, 1]} : vector<8x128xf32> to vector<8x32xf32>
    %206 = math.tanh %205 : vector<8x32xf32>
    %207 = vector.extract_strided_slice %192 {offsets = [0, 96], sizes = [8, 32], strides = [1, 1]} : vector<8x128xf32> to vector<8x32xf32>
    %208 = arith.negf %207 : vector<8x32xf32>
    %209 = math.exp %208 : vector<8x32xf32>
    %cst_59 = arith.constant 1.000000e+00 : f32
    %210 = vector.broadcast %cst_59 : f32 to vector<8x32xf32>
    %211 = arith.addf %210, %209 : vector<8x32xf32>
    %212 = arith.divf %210, %211 : vector<8x32xf32>
    %213 = arith.mulf %204, %148 : vector<8x32xf32>
    %214 = arith.mulf %198, %206 : vector<8x32xf32>
    %215 = arith.addf %213, %214 : vector<8x32xf32>
    %216 = math.tanh %215 : vector<8x32xf32>
    %217 = arith.mulf %212, %216 : vector<8x32xf32>
    %218 = arith.index_cast %157 : i32 to index
    %c0_60 = arith.constant 0 : index
    %219 = vector.load %arg7[%218, %c0_60] : memref<64x32xf32, #tpu.memory_space<vmem>>, vector<8x32xf32>
    tpu.vector_store %arg7[%218, %c0_60], %217 {strides = array<i32>} : memref<64x32xf32, #tpu.memory_space<vmem>>, vector<8x32xf32>,
    %c3_i32 = arith.constant 3 : i32
    %c8_i32_61 = arith.constant 8 : i32
    %220 = arith.muli %c3_i32, %c8_i32_61 : i32
    %221 = tpu.assume_multiple %220, 8 : i32
    %c7_i32_62 = arith.constant 7 : i32
    %222 = arith.subi %c7_i32_62, %c3_i32 : i32
    %c8_i32_63 = arith.constant 8 : i32
    %223 = arith.muli %222, %c8_i32_63 : i32
    %224 = tpu.assume_multiple %223, 8 : i32
    %225 = arith.index_cast %221 : i32 to index
    %c0_64 = arith.constant 0 : index
    %226 = vector.load %arg4[%225, %c0_64] : memref<64x128xf32, #tpu.memory_space<vmem>>, vector<8x128xf32>
    %cst_65 = arith.constant dense<0.000000e+00> : vector<8x128xf32>
    %227 = tpu.matmul %186, %2, %cst_65 {dimension_numbers = #tpu.dot_dimension_numbers<[1], [0], [0], [1], [0, 0, 1, 1], [], []>} : vector<8x32xf32>, vector<32x128xf32>, vector<8x128xf32> -> vector<8x128xf32>
    %228 = arith.addf %226, %227 : vector<8x128xf32>
    %229 = vector.extract_strided_slice %228 {offsets = [0, 0], sizes = [8, 32], strides = [1, 1]} : vector<8x128xf32> to vector<8x32xf32>
    %230 = arith.negf %229 : vector<8x32xf32>
    %231 = math.exp %230 : vector<8x32xf32>
    %cst_66 = arith.constant 1.000000e+00 : f32
    %232 = vector.broadcast %cst_66 : f32 to vector<8x32xf32>
    %233 = arith.addf %232, %231 : vector<8x32xf32>
    %234 = arith.divf %232, %233 : vector<8x32xf32>
    %235 = vector.extract_strided_slice %228 {offsets = [0, 32], sizes = [8, 32], strides = [1, 1]} : vector<8x128xf32> to vector<8x32xf32>
    %236 = arith.negf %235 : vector<8x32xf32>
    %237 = math.exp %236 : vector<8x32xf32>
    %cst_67 = arith.constant 1.000000e+00 : f32
    %238 = vector.broadcast %cst_67 : f32 to vector<8x32xf32>
    %239 = arith.addf %238, %237 : vector<8x32xf32>
    %240 = arith.divf %238, %239 : vector<8x32xf32>
    %241 = vector.extract_strided_slice %228 {offsets = [0, 64], sizes = [8, 32], strides = [1, 1]} : vector<8x128xf32> to vector<8x32xf32>
    %242 = math.tanh %241 : vector<8x32xf32>
    %243 = vector.extract_strided_slice %228 {offsets = [0, 96], sizes = [8, 32], strides = [1, 1]} : vector<8x128xf32> to vector<8x32xf32>
    %244 = arith.negf %243 : vector<8x32xf32>
    %245 = math.exp %244 : vector<8x32xf32>
    %cst_68 = arith.constant 1.000000e+00 : f32
    %246 = vector.broadcast %cst_68 : f32 to vector<8x32xf32>
    %247 = arith.addf %246, %245 : vector<8x32xf32>
    %248 = arith.divf %246, %247 : vector<8x32xf32>
    %249 = arith.mulf %240, %184 : vector<8x32xf32>
    %250 = arith.mulf %234, %242 : vector<8x32xf32>
    %251 = arith.addf %249, %250 : vector<8x32xf32>
    %252 = math.tanh %251 : vector<8x32xf32>
    %253 = arith.mulf %248, %252 : vector<8x32xf32>
    %254 = arith.index_cast %221 : i32 to index
    %c0_69 = arith.constant 0 : index
    %255 = vector.load %arg6[%254, %c0_69] : memref<64x32xf32, #tpu.memory_space<vmem>>, vector<8x32xf32>
    tpu.vector_store %arg6[%254, %c0_69], %253 {strides = array<i32>} : memref<64x32xf32, #tpu.memory_space<vmem>>, vector<8x32xf32>,
    %256 = arith.index_cast %224 : i32 to index
    %c0_70 = arith.constant 0 : index
    %257 = vector.load %arg5[%256, %c0_70] : memref<64x128xf32, #tpu.memory_space<vmem>>, vector<8x128xf32>
    %cst_71 = arith.constant dense<0.000000e+00> : vector<8x128xf32>
    %258 = tpu.matmul %217, %3, %cst_71 {dimension_numbers = #tpu.dot_dimension_numbers<[1], [0], [0], [1], [0, 0, 1, 1], [], []>} : vector<8x32xf32>, vector<32x128xf32>, vector<8x128xf32> -> vector<8x128xf32>
    %259 = arith.addf %257, %258 : vector<8x128xf32>
    %260 = vector.extract_strided_slice %259 {offsets = [0, 0], sizes = [8, 32], strides = [1, 1]} : vector<8x128xf32> to vector<8x32xf32>
    %261 = arith.negf %260 : vector<8x32xf32>
    %262 = math.exp %261 : vector<8x32xf32>
    %cst_72 = arith.constant 1.000000e+00 : f32
    %263 = vector.broadcast %cst_72 : f32 to vector<8x32xf32>
    %264 = arith.addf %263, %262 : vector<8x32xf32>
    %265 = arith.divf %263, %264 : vector<8x32xf32>
    %266 = vector.extract_strided_slice %259 {offsets = [0, 32], sizes = [8, 32], strides = [1, 1]} : vector<8x128xf32> to vector<8x32xf32>
    %267 = arith.negf %266 : vector<8x32xf32>
    %268 = math.exp %267 : vector<8x32xf32>
    %cst_73 = arith.constant 1.000000e+00 : f32
    %269 = vector.broadcast %cst_73 : f32 to vector<8x32xf32>
    %270 = arith.addf %269, %268 : vector<8x32xf32>
    %271 = arith.divf %269, %270 : vector<8x32xf32>
    %272 = vector.extract_strided_slice %259 {offsets = [0, 64], sizes = [8, 32], strides = [1, 1]} : vector<8x128xf32> to vector<8x32xf32>
    %273 = math.tanh %272 : vector<8x32xf32>
    %274 = vector.extract_strided_slice %259 {offsets = [0, 96], sizes = [8, 32], strides = [1, 1]} : vector<8x128xf32> to vector<8x32xf32>
    %275 = arith.negf %274 : vector<8x32xf32>
    %276 = math.exp %275 : vector<8x32xf32>
    %cst_74 = arith.constant 1.000000e+00 : f32
    %277 = vector.broadcast %cst_74 : f32 to vector<8x32xf32>
    %278 = arith.addf %277, %276 : vector<8x32xf32>
    %279 = arith.divf %277, %278 : vector<8x32xf32>
    %280 = arith.mulf %271, %215 : vector<8x32xf32>
    %281 = arith.mulf %265, %273 : vector<8x32xf32>
    %282 = arith.addf %280, %281 : vector<8x32xf32>
    %283 = math.tanh %282 : vector<8x32xf32>
    %284 = arith.mulf %279, %283 : vector<8x32xf32>
    %285 = arith.index_cast %224 : i32 to index
    %c0_75 = arith.constant 0 : index
    %286 = vector.load %arg7[%285, %c0_75] : memref<64x32xf32, #tpu.memory_space<vmem>>, vector<8x32xf32>
    tpu.vector_store %arg7[%285, %c0_75], %284 {strides = array<i32>} : memref<64x32xf32, #tpu.memory_space<vmem>>, vector<8x32xf32>,
    %c4_i32 = arith.constant 4 : i32
    %c8_i32_76 = arith.constant 8 : i32
    %287 = arith.muli %c4_i32, %c8_i32_76 : i32
    %288 = tpu.assume_multiple %287, 8 : i32
    %c7_i32_77 = arith.constant 7 : i32
    %289 = arith.subi %c7_i32_77, %c4_i32 : i32
    %c8_i32_78 = arith.constant 8 : i32
    %290 = arith.muli %289, %c8_i32_78 : i32
    %291 = tpu.assume_multiple %290, 8 : i32
    %292 = arith.index_cast %288 : i32 to index
    %c0_79 = arith.constant 0 : index
    %293 = vector.load %arg4[%292, %c0_79] : memref<64x128xf32, #tpu.memory_space<vmem>>, vector<8x128xf32>
    %cst_80 = arith.constant dense<0.000000e+00> : vector<8x128xf32>
    %294 = tpu.matmul %253, %2, %cst_80 {dimension_numbers = #tpu.dot_dimension_numbers<[1], [0], [0], [1], [0, 0, 1, 1], [], []>} : vector<8x32xf32>, vector<32x128xf32>, vector<8x128xf32> -> vector<8x128xf32>
    %295 = arith.addf %293, %294 : vector<8x128xf32>
    %296 = vector.extract_strided_slice %295 {offsets = [0, 0], sizes = [8, 32], strides = [1, 1]} : vector<8x128xf32> to vector<8x32xf32>
    %297 = arith.negf %296 : vector<8x32xf32>
    %298 = math.exp %297 : vector<8x32xf32>
    %cst_81 = arith.constant 1.000000e+00 : f32
    %299 = vector.broadcast %cst_81 : f32 to vector<8x32xf32>
    %300 = arith.addf %299, %298 : vector<8x32xf32>
    %301 = arith.divf %299, %300 : vector<8x32xf32>
    %302 = vector.extract_strided_slice %295 {offsets = [0, 32], sizes = [8, 32], strides = [1, 1]} : vector<8x128xf32> to vector<8x32xf32>
    %303 = arith.negf %302 : vector<8x32xf32>
    %304 = math.exp %303 : vector<8x32xf32>
    %cst_82 = arith.constant 1.000000e+00 : f32
    %305 = vector.broadcast %cst_82 : f32 to vector<8x32xf32>
    %306 = arith.addf %305, %304 : vector<8x32xf32>
    %307 = arith.divf %305, %306 : vector<8x32xf32>
    %308 = vector.extract_strided_slice %295 {offsets = [0, 64], sizes = [8, 32], strides = [1, 1]} : vector<8x128xf32> to vector<8x32xf32>
    %309 = math.tanh %308 : vector<8x32xf32>
    %310 = vector.extract_strided_slice %295 {offsets = [0, 96], sizes = [8, 32], strides = [1, 1]} : vector<8x128xf32> to vector<8x32xf32>
    %311 = arith.negf %310 : vector<8x32xf32>
    %312 = math.exp %311 : vector<8x32xf32>
    %cst_83 = arith.constant 1.000000e+00 : f32
    %313 = vector.broadcast %cst_83 : f32 to vector<8x32xf32>
    %314 = arith.addf %313, %312 : vector<8x32xf32>
    %315 = arith.divf %313, %314 : vector<8x32xf32>
    %316 = arith.mulf %307, %251 : vector<8x32xf32>
    %317 = arith.mulf %301, %309 : vector<8x32xf32>
    %318 = arith.addf %316, %317 : vector<8x32xf32>
    %319 = math.tanh %318 : vector<8x32xf32>
    %320 = arith.mulf %315, %319 : vector<8x32xf32>
    %321 = arith.index_cast %288 : i32 to index
    %c0_84 = arith.constant 0 : index
    %322 = vector.load %arg6[%321, %c0_84] : memref<64x32xf32, #tpu.memory_space<vmem>>, vector<8x32xf32>
    tpu.vector_store %arg6[%321, %c0_84], %320 {strides = array<i32>} : memref<64x32xf32, #tpu.memory_space<vmem>>, vector<8x32xf32>,
    %323 = arith.index_cast %291 : i32 to index
    %c0_85 = arith.constant 0 : index
    %324 = vector.load %arg5[%323, %c0_85] : memref<64x128xf32, #tpu.memory_space<vmem>>, vector<8x128xf32>
    %cst_86 = arith.constant dense<0.000000e+00> : vector<8x128xf32>
    %325 = tpu.matmul %284, %3, %cst_86 {dimension_numbers = #tpu.dot_dimension_numbers<[1], [0], [0], [1], [0, 0, 1, 1], [], []>} : vector<8x32xf32>, vector<32x128xf32>, vector<8x128xf32> -> vector<8x128xf32>
    %326 = arith.addf %324, %325 : vector<8x128xf32>
    %327 = vector.extract_strided_slice %326 {offsets = [0, 0], sizes = [8, 32], strides = [1, 1]} : vector<8x128xf32> to vector<8x32xf32>
    %328 = arith.negf %327 : vector<8x32xf32>
    %329 = math.exp %328 : vector<8x32xf32>
    %cst_87 = arith.constant 1.000000e+00 : f32
    %330 = vector.broadcast %cst_87 : f32 to vector<8x32xf32>
    %331 = arith.addf %330, %329 : vector<8x32xf32>
    %332 = arith.divf %330, %331 : vector<8x32xf32>
    %333 = vector.extract_strided_slice %326 {offsets = [0, 32], sizes = [8, 32], strides = [1, 1]} : vector<8x128xf32> to vector<8x32xf32>
    %334 = arith.negf %333 : vector<8x32xf32>
    %335 = math.exp %334 : vector<8x32xf32>
    %cst_88 = arith.constant 1.000000e+00 : f32
    %336 = vector.broadcast %cst_88 : f32 to vector<8x32xf32>
    %337 = arith.addf %336, %335 : vector<8x32xf32>
    %338 = arith.divf %336, %337 : vector<8x32xf32>
    %339 = vector.extract_strided_slice %326 {offsets = [0, 64], sizes = [8, 32], strides = [1, 1]} : vector<8x128xf32> to vector<8x32xf32>
    %340 = math.tanh %339 : vector<8x32xf32>
    %341 = vector.extract_strided_slice %326 {offsets = [0, 96], sizes = [8, 32], strides = [1, 1]} : vector<8x128xf32> to vector<8x32xf32>
    %342 = arith.negf %341 : vector<8x32xf32>
    %343 = math.exp %342 : vector<8x32xf32>
    %cst_89 = arith.constant 1.000000e+00 : f32
    %344 = vector.broadcast %cst_89 : f32 to vector<8x32xf32>
    %345 = arith.addf %344, %343 : vector<8x32xf32>
    %346 = arith.divf %344, %345 : vector<8x32xf32>
    %347 = arith.mulf %338, %282 : vector<8x32xf32>
    %348 = arith.mulf %332, %340 : vector<8x32xf32>
    %349 = arith.addf %347, %348 : vector<8x32xf32>
    %350 = math.tanh %349 : vector<8x32xf32>
    %351 = arith.mulf %346, %350 : vector<8x32xf32>
    %352 = arith.index_cast %291 : i32 to index
    %c0_90 = arith.constant 0 : index
    %353 = vector.load %arg7[%352, %c0_90] : memref<64x32xf32, #tpu.memory_space<vmem>>, vector<8x32xf32>
    tpu.vector_store %arg7[%352, %c0_90], %351 {strides = array<i32>} : memref<64x32xf32, #tpu.memory_space<vmem>>, vector<8x32xf32>,
    %c5_i32 = arith.constant 5 : i32
    %c8_i32_91 = arith.constant 8 : i32
    %354 = arith.muli %c5_i32, %c8_i32_91 : i32
    %355 = tpu.assume_multiple %354, 8 : i32
    %c7_i32_92 = arith.constant 7 : i32
    %356 = arith.subi %c7_i32_92, %c5_i32 : i32
    %c8_i32_93 = arith.constant 8 : i32
    %357 = arith.muli %356, %c8_i32_93 : i32
    %358 = tpu.assume_multiple %357, 8 : i32
    %359 = arith.index_cast %355 : i32 to index
    %c0_94 = arith.constant 0 : index
    %360 = vector.load %arg4[%359, %c0_94] : memref<64x128xf32, #tpu.memory_space<vmem>>, vector<8x128xf32>
    %cst_95 = arith.constant dense<0.000000e+00> : vector<8x128xf32>
    %361 = tpu.matmul %320, %2, %cst_95 {dimension_numbers = #tpu.dot_dimension_numbers<[1], [0], [0], [1], [0, 0, 1, 1], [], []>} : vector<8x32xf32>, vector<32x128xf32>, vector<8x128xf32> -> vector<8x128xf32>
    %362 = arith.addf %360, %361 : vector<8x128xf32>
    %363 = vector.extract_strided_slice %362 {offsets = [0, 0], sizes = [8, 32], strides = [1, 1]} : vector<8x128xf32> to vector<8x32xf32>
    %364 = arith.negf %363 : vector<8x32xf32>
    %365 = math.exp %364 : vector<8x32xf32>
    %cst_96 = arith.constant 1.000000e+00 : f32
    %366 = vector.broadcast %cst_96 : f32 to vector<8x32xf32>
    %367 = arith.addf %366, %365 : vector<8x32xf32>
    %368 = arith.divf %366, %367 : vector<8x32xf32>
    %369 = vector.extract_strided_slice %362 {offsets = [0, 32], sizes = [8, 32], strides = [1, 1]} : vector<8x128xf32> to vector<8x32xf32>
    %370 = arith.negf %369 : vector<8x32xf32>
    %371 = math.exp %370 : vector<8x32xf32>
    %cst_97 = arith.constant 1.000000e+00 : f32
    %372 = vector.broadcast %cst_97 : f32 to vector<8x32xf32>
    %373 = arith.addf %372, %371 : vector<8x32xf32>
    %374 = arith.divf %372, %373 : vector<8x32xf32>
    %375 = vector.extract_strided_slice %362 {offsets = [0, 64], sizes = [8, 32], strides = [1, 1]} : vector<8x128xf32> to vector<8x32xf32>
    %376 = math.tanh %375 : vector<8x32xf32>
    %377 = vector.extract_strided_slice %362 {offsets = [0, 96], sizes = [8, 32], strides = [1, 1]} : vector<8x128xf32> to vector<8x32xf32>
    %378 = arith.negf %377 : vector<8x32xf32>
    %379 = math.exp %378 : vector<8x32xf32>
    %cst_98 = arith.constant 1.000000e+00 : f32
    %380 = vector.broadcast %cst_98 : f32 to vector<8x32xf32>
    %381 = arith.addf %380, %379 : vector<8x32xf32>
    %382 = arith.divf %380, %381 : vector<8x32xf32>
    %383 = arith.mulf %374, %318 : vector<8x32xf32>
    %384 = arith.mulf %368, %376 : vector<8x32xf32>
    %385 = arith.addf %383, %384 : vector<8x32xf32>
    %386 = math.tanh %385 : vector<8x32xf32>
    %387 = arith.mulf %382, %386 : vector<8x32xf32>
    %388 = arith.index_cast %355 : i32 to index
    %c0_99 = arith.constant 0 : index
    %389 = vector.load %arg6[%388, %c0_99] : memref<64x32xf32, #tpu.memory_space<vmem>>, vector<8x32xf32>
    tpu.vector_store %arg6[%388, %c0_99], %387 {strides = array<i32>} : memref<64x32xf32, #tpu.memory_space<vmem>>, vector<8x32xf32>,
    %390 = arith.index_cast %358 : i32 to index
    %c0_100 = arith.constant 0 : index
    %391 = vector.load %arg5[%390, %c0_100] : memref<64x128xf32, #tpu.memory_space<vmem>>, vector<8x128xf32>
    %cst_101 = arith.constant dense<0.000000e+00> : vector<8x128xf32>
    %392 = tpu.matmul %351, %3, %cst_101 {dimension_numbers = #tpu.dot_dimension_numbers<[1], [0], [0], [1], [0, 0, 1, 1], [], []>} : vector<8x32xf32>, vector<32x128xf32>, vector<8x128xf32> -> vector<8x128xf32>
    %393 = arith.addf %391, %392 : vector<8x128xf32>
    %394 = vector.extract_strided_slice %393 {offsets = [0, 0], sizes = [8, 32], strides = [1, 1]} : vector<8x128xf32> to vector<8x32xf32>
    %395 = arith.negf %394 : vector<8x32xf32>
    %396 = math.exp %395 : vector<8x32xf32>
    %cst_102 = arith.constant 1.000000e+00 : f32
    %397 = vector.broadcast %cst_102 : f32 to vector<8x32xf32>
    %398 = arith.addf %397, %396 : vector<8x32xf32>
    %399 = arith.divf %397, %398 : vector<8x32xf32>
    %400 = vector.extract_strided_slice %393 {offsets = [0, 32], sizes = [8, 32], strides = [1, 1]} : vector<8x128xf32> to vector<8x32xf32>
    %401 = arith.negf %400 : vector<8x32xf32>
    %402 = math.exp %401 : vector<8x32xf32>
    %cst_103 = arith.constant 1.000000e+00 : f32
    %403 = vector.broadcast %cst_103 : f32 to vector<8x32xf32>
    %404 = arith.addf %403, %402 : vector<8x32xf32>
    %405 = arith.divf %403, %404 : vector<8x32xf32>
    %406 = vector.extract_strided_slice %393 {offsets = [0, 64], sizes = [8, 32], strides = [1, 1]} : vector<8x128xf32> to vector<8x32xf32>
    %407 = math.tanh %406 : vector<8x32xf32>
    %408 = vector.extract_strided_slice %393 {offsets = [0, 96], sizes = [8, 32], strides = [1, 1]} : vector<8x128xf32> to vector<8x32xf32>
    %409 = arith.negf %408 : vector<8x32xf32>
    %410 = math.exp %409 : vector<8x32xf32>
    %cst_104 = arith.constant 1.000000e+00 : f32
    %411 = vector.broadcast %cst_104 : f32 to vector<8x32xf32>
    %412 = arith.addf %411, %410 : vector<8x32xf32>
    %413 = arith.divf %411, %412 : vector<8x32xf32>
    %414 = arith.mulf %405, %349 : vector<8x32xf32>
    %415 = arith.mulf %399, %407 : vector<8x32xf32>
    %416 = arith.addf %414, %415 : vector<8x32xf32>
    %417 = math.tanh %416 : vector<8x32xf32>
    %418 = arith.mulf %413, %417 : vector<8x32xf32>
    %419 = arith.index_cast %358 : i32 to index
    %c0_105 = arith.constant 0 : index
    %420 = vector.load %arg7[%419, %c0_105] : memref<64x32xf32, #tpu.memory_space<vmem>>, vector<8x32xf32>
    tpu.vector_store %arg7[%419, %c0_105], %418 {strides = array<i32>} : memref<64x32xf32, #tpu.memory_space<vmem>>, vector<8x32xf32>,
    %c6_i32 = arith.constant 6 : i32
    %c8_i32_106 = arith.constant 8 : i32
    %421 = arith.muli %c6_i32, %c8_i32_106 : i32
    %422 = tpu.assume_multiple %421, 8 : i32
    %c7_i32_107 = arith.constant 7 : i32
    %423 = arith.subi %c7_i32_107, %c6_i32 : i32
    %c8_i32_108 = arith.constant 8 : i32
    %424 = arith.muli %423, %c8_i32_108 : i32
    %425 = tpu.assume_multiple %424, 8 : i32
    %426 = arith.index_cast %422 : i32 to index
    %c0_109 = arith.constant 0 : index
    %427 = vector.load %arg4[%426, %c0_109] : memref<64x128xf32, #tpu.memory_space<vmem>>, vector<8x128xf32>
    %cst_110 = arith.constant dense<0.000000e+00> : vector<8x128xf32>
    %428 = tpu.matmul %387, %2, %cst_110 {dimension_numbers = #tpu.dot_dimension_numbers<[1], [0], [0], [1], [0, 0, 1, 1], [], []>} : vector<8x32xf32>, vector<32x128xf32>, vector<8x128xf32> -> vector<8x128xf32>
    %429 = arith.addf %427, %428 : vector<8x128xf32>
    %430 = vector.extract_strided_slice %429 {offsets = [0, 0], sizes = [8, 32], strides = [1, 1]} : vector<8x128xf32> to vector<8x32xf32>
    %431 = arith.negf %430 : vector<8x32xf32>
    %432 = math.exp %431 : vector<8x32xf32>
    %cst_111 = arith.constant 1.000000e+00 : f32
    %433 = vector.broadcast %cst_111 : f32 to vector<8x32xf32>
    %434 = arith.addf %433, %432 : vector<8x32xf32>
    %435 = arith.divf %433, %434 : vector<8x32xf32>
    %436 = vector.extract_strided_slice %429 {offsets = [0, 32], sizes = [8, 32], strides = [1, 1]} : vector<8x128xf32> to vector<8x32xf32>
    %437 = arith.negf %436 : vector<8x32xf32>
    %438 = math.exp %437 : vector<8x32xf32>
    %cst_112 = arith.constant 1.000000e+00 : f32
    %439 = vector.broadcast %cst_112 : f32 to vector<8x32xf32>
    %440 = arith.addf %439, %438 : vector<8x32xf32>
    %441 = arith.divf %439, %440 : vector<8x32xf32>
    %442 = vector.extract_strided_slice %429 {offsets = [0, 64], sizes = [8, 32], strides = [1, 1]} : vector<8x128xf32> to vector<8x32xf32>
    %443 = math.tanh %442 : vector<8x32xf32>
    %444 = vector.extract_strided_slice %429 {offsets = [0, 96], sizes = [8, 32], strides = [1, 1]} : vector<8x128xf32> to vector<8x32xf32>
    %445 = arith.negf %444 : vector<8x32xf32>
    %446 = math.exp %445 : vector<8x32xf32>
    %cst_113 = arith.constant 1.000000e+00 : f32
    %447 = vector.broadcast %cst_113 : f32 to vector<8x32xf32>
    %448 = arith.addf %447, %446 : vector<8x32xf32>
    %449 = arith.divf %447, %448 : vector<8x32xf32>
    %450 = arith.mulf %441, %385 : vector<8x32xf32>
    %451 = arith.mulf %435, %443 : vector<8x32xf32>
    %452 = arith.addf %450, %451 : vector<8x32xf32>
    %453 = math.tanh %452 : vector<8x32xf32>
    %454 = arith.mulf %449, %453 : vector<8x32xf32>
    %455 = arith.index_cast %422 : i32 to index
    %c0_114 = arith.constant 0 : index
    %456 = vector.load %arg6[%455, %c0_114] : memref<64x32xf32, #tpu.memory_space<vmem>>, vector<8x32xf32>
    tpu.vector_store %arg6[%455, %c0_114], %454 {strides = array<i32>} : memref<64x32xf32, #tpu.memory_space<vmem>>, vector<8x32xf32>,
    %457 = arith.index_cast %425 : i32 to index
    %c0_115 = arith.constant 0 : index
    %458 = vector.load %arg5[%457, %c0_115] : memref<64x128xf32, #tpu.memory_space<vmem>>, vector<8x128xf32>
    %cst_116 = arith.constant dense<0.000000e+00> : vector<8x128xf32>
    %459 = tpu.matmul %418, %3, %cst_116 {dimension_numbers = #tpu.dot_dimension_numbers<[1], [0], [0], [1], [0, 0, 1, 1], [], []>} : vector<8x32xf32>, vector<32x128xf32>, vector<8x128xf32> -> vector<8x128xf32>
    %460 = arith.addf %458, %459 : vector<8x128xf32>
    %461 = vector.extract_strided_slice %460 {offsets = [0, 0], sizes = [8, 32], strides = [1, 1]} : vector<8x128xf32> to vector<8x32xf32>
    %462 = arith.negf %461 : vector<8x32xf32>
    %463 = math.exp %462 : vector<8x32xf32>
    %cst_117 = arith.constant 1.000000e+00 : f32
    %464 = vector.broadcast %cst_117 : f32 to vector<8x32xf32>
    %465 = arith.addf %464, %463 : vector<8x32xf32>
    %466 = arith.divf %464, %465 : vector<8x32xf32>
    %467 = vector.extract_strided_slice %460 {offsets = [0, 32], sizes = [8, 32], strides = [1, 1]} : vector<8x128xf32> to vector<8x32xf32>
    %468 = arith.negf %467 : vector<8x32xf32>
    %469 = math.exp %468 : vector<8x32xf32>
    %cst_118 = arith.constant 1.000000e+00 : f32
    %470 = vector.broadcast %cst_118 : f32 to vector<8x32xf32>
    %471 = arith.addf %470, %469 : vector<8x32xf32>
    %472 = arith.divf %470, %471 : vector<8x32xf32>
    %473 = vector.extract_strided_slice %460 {offsets = [0, 64], sizes = [8, 32], strides = [1, 1]} : vector<8x128xf32> to vector<8x32xf32>
    %474 = math.tanh %473 : vector<8x32xf32>
    %475 = vector.extract_strided_slice %460 {offsets = [0, 96], sizes = [8, 32], strides = [1, 1]} : vector<8x128xf32> to vector<8x32xf32>
    %476 = arith.negf %475 : vector<8x32xf32>
    %477 = math.exp %476 : vector<8x32xf32>
    %cst_119 = arith.constant 1.000000e+00 : f32
    %478 = vector.broadcast %cst_119 : f32 to vector<8x32xf32>
    %479 = arith.addf %478, %477 : vector<8x32xf32>
    %480 = arith.divf %478, %479 : vector<8x32xf32>
    %481 = arith.mulf %472, %416 : vector<8x32xf32>
    %482 = arith.mulf %466, %474 : vector<8x32xf32>
    %483 = arith.addf %481, %482 : vector<8x32xf32>
    %484 = math.tanh %483 : vector<8x32xf32>
    %485 = arith.mulf %480, %484 : vector<8x32xf32>
    %486 = arith.index_cast %425 : i32 to index
    %c0_120 = arith.constant 0 : index
    %487 = vector.load %arg7[%486, %c0_120] : memref<64x32xf32, #tpu.memory_space<vmem>>, vector<8x32xf32>
    tpu.vector_store %arg7[%486, %c0_120], %485 {strides = array<i32>} : memref<64x32xf32, #tpu.memory_space<vmem>>, vector<8x32xf32>,
    %c7_i32_121 = arith.constant 7 : i32
    %c8_i32_122 = arith.constant 8 : i32
    %488 = arith.muli %c7_i32_121, %c8_i32_122 : i32
    %489 = tpu.assume_multiple %488, 8 : i32
    %c7_i32_123 = arith.constant 7 : i32
    %490 = arith.subi %c7_i32_123, %c7_i32_121 : i32
    %c8_i32_124 = arith.constant 8 : i32
    %491 = arith.muli %490, %c8_i32_124 : i32
    %492 = tpu.assume_multiple %491, 8 : i32
    %493 = arith.index_cast %489 : i32 to index
    %c0_125 = arith.constant 0 : index
    %494 = vector.load %arg4[%493, %c0_125] : memref<64x128xf32, #tpu.memory_space<vmem>>, vector<8x128xf32>
    %cst_126 = arith.constant dense<0.000000e+00> : vector<8x128xf32>
    %495 = tpu.matmul %454, %2, %cst_126 {dimension_numbers = #tpu.dot_dimension_numbers<[1], [0], [0], [1], [0, 0, 1, 1], [], []>} : vector<8x32xf32>, vector<32x128xf32>, vector<8x128xf32> -> vector<8x128xf32>
    %496 = arith.addf %494, %495 : vector<8x128xf32>
    %497 = vector.extract_strided_slice %496 {offsets = [0, 0], sizes = [8, 32], strides = [1, 1]} : vector<8x128xf32> to vector<8x32xf32>
    %498 = arith.negf %497 : vector<8x32xf32>
    %499 = math.exp %498 : vector<8x32xf32>
    %cst_127 = arith.constant 1.000000e+00 : f32
    %500 = vector.broadcast %cst_127 : f32 to vector<8x32xf32>
    %501 = arith.addf %500, %499 : vector<8x32xf32>
    %502 = arith.divf %500, %501 : vector<8x32xf32>
    %503 = vector.extract_strided_slice %496 {offsets = [0, 32], sizes = [8, 32], strides = [1, 1]} : vector<8x128xf32> to vector<8x32xf32>
    %504 = arith.negf %503 : vector<8x32xf32>
    %505 = math.exp %504 : vector<8x32xf32>
    %cst_128 = arith.constant 1.000000e+00 : f32
    %506 = vector.broadcast %cst_128 : f32 to vector<8x32xf32>
    %507 = arith.addf %506, %505 : vector<8x32xf32>
    %508 = arith.divf %506, %507 : vector<8x32xf32>
    %509 = vector.extract_strided_slice %496 {offsets = [0, 64], sizes = [8, 32], strides = [1, 1]} : vector<8x128xf32> to vector<8x32xf32>
    %510 = math.tanh %509 : vector<8x32xf32>
    %511 = vector.extract_strided_slice %496 {offsets = [0, 96], sizes = [8, 32], strides = [1, 1]} : vector<8x128xf32> to vector<8x32xf32>
    %512 = arith.negf %511 : vector<8x32xf32>
    %513 = math.exp %512 : vector<8x32xf32>
    %cst_129 = arith.constant 1.000000e+00 : f32
    %514 = vector.broadcast %cst_129 : f32 to vector<8x32xf32>
    %515 = arith.addf %514, %513 : vector<8x32xf32>
    %516 = arith.divf %514, %515 : vector<8x32xf32>
    %517 = arith.mulf %508, %452 : vector<8x32xf32>
    %518 = arith.mulf %502, %510 : vector<8x32xf32>
    %519 = arith.addf %517, %518 : vector<8x32xf32>
    %520 = math.tanh %519 : vector<8x32xf32>
    %521 = arith.mulf %516, %520 : vector<8x32xf32>
    %522 = arith.index_cast %489 : i32 to index
    %c0_130 = arith.constant 0 : index
    %523 = vector.load %arg6[%522, %c0_130] : memref<64x32xf32, #tpu.memory_space<vmem>>, vector<8x32xf32>
    tpu.vector_store %arg6[%522, %c0_130], %521 {strides = array<i32>} : memref<64x32xf32, #tpu.memory_space<vmem>>, vector<8x32xf32>,
    %524 = arith.index_cast %492 : i32 to index
    %c0_131 = arith.constant 0 : index
    %525 = vector.load %arg5[%524, %c0_131] : memref<64x128xf32, #tpu.memory_space<vmem>>, vector<8x128xf32>
    %cst_132 = arith.constant dense<0.000000e+00> : vector<8x128xf32>
    %526 = tpu.matmul %485, %3, %cst_132 {dimension_numbers = #tpu.dot_dimension_numbers<[1], [0], [0], [1], [0, 0, 1, 1], [], []>} : vector<8x32xf32>, vector<32x128xf32>, vector<8x128xf32> -> vector<8x128xf32>
    %527 = arith.addf %525, %526 : vector<8x128xf32>
    %528 = vector.extract_strided_slice %527 {offsets = [0, 0], sizes = [8, 32], strides = [1, 1]} : vector<8x128xf32> to vector<8x32xf32>
    %529 = arith.negf %528 : vector<8x32xf32>
    %530 = math.exp %529 : vector<8x32xf32>
    %cst_133 = arith.constant 1.000000e+00 : f32
    %531 = vector.broadcast %cst_133 : f32 to vector<8x32xf32>
    %532 = arith.addf %531, %530 : vector<8x32xf32>
    %533 = arith.divf %531, %532 : vector<8x32xf32>
    %534 = vector.extract_strided_slice %527 {offsets = [0, 32], sizes = [8, 32], strides = [1, 1]} : vector<8x128xf32> to vector<8x32xf32>
    %535 = arith.negf %534 : vector<8x32xf32>
    %536 = math.exp %535 : vector<8x32xf32>
    %cst_134 = arith.constant 1.000000e+00 : f32
    %537 = vector.broadcast %cst_134 : f32 to vector<8x32xf32>
    %538 = arith.addf %537, %536 : vector<8x32xf32>
    %539 = arith.divf %537, %538 : vector<8x32xf32>
    %540 = vector.extract_strided_slice %527 {offsets = [0, 64], sizes = [8, 32], strides = [1, 1]} : vector<8x128xf32> to vector<8x32xf32>
    %541 = math.tanh %540 : vector<8x32xf32>
    %542 = vector.extract_strided_slice %527 {offsets = [0, 96], sizes = [8, 32], strides = [1, 1]} : vector<8x128xf32> to vector<8x32xf32>
    %543 = arith.negf %542 : vector<8x32xf32>
    %544 = math.exp %543 : vector<8x32xf32>
    %cst_135 = arith.constant 1.000000e+00 : f32
    %545 = vector.broadcast %cst_135 : f32 to vector<8x32xf32>
    %546 = arith.addf %545, %544 : vector<8x32xf32>
    %547 = arith.divf %545, %546 : vector<8x32xf32>
    %548 = arith.mulf %539, %483 : vector<8x32xf32>
    %549 = arith.mulf %533, %541 : vector<8x32xf32>
    %550 = arith.addf %548, %549 : vector<8x32xf32>
    %551 = math.tanh %550 : vector<8x32xf32>
    %552 = arith.mulf %547, %551 : vector<8x32xf32>
    %553 = arith.index_cast %492 : i32 to index
    %c0_136 = arith.constant 0 : index
    %554 = vector.load %arg7[%553, %c0_136] : memref<64x32xf32, #tpu.memory_space<vmem>>, vector<8x32xf32>
    tpu.vector_store %arg7[%553, %c0_136], %552 {strides = array<i32>} : memref<64x32xf32, #tpu.memory_space<vmem>>, vector<8x32xf32>,
    %c8_i32_137 = arith.constant 8 : i32
    %c0_138 = arith.constant 0 : index
    %c0_139 = arith.constant 0 : index
    %555 = vector.load %arg6[%c0_138, %c0_139] : memref<64x32xf32, #tpu.memory_space<vmem>>, vector<64x32xf32>
    %cst_140 = arith.constant dense<0.000000e+00> : vector<64x128xf32>
    %556 = tpu.matmul %555, %4, %cst_140 {dimension_numbers = #tpu.dot_dimension_numbers<[1], [0], [0], [1], [0, 0, 1, 1], [], []>} : vector<64x32xf32>, vector<32x128xf32>, vector<64x128xf32> -> vector<64x128xf32>
    %c0_141 = arith.constant 0 : index
    %c0_142 = arith.constant 0 : index
    %557 = vector.load %arg7[%c0_141, %c0_142] : memref<64x32xf32, #tpu.memory_space<vmem>>, vector<64x32xf32>
    %cst_143 = arith.constant dense<0.000000e+00> : vector<64x128xf32>
    %558 = tpu.matmul %557, %5, %cst_143 {dimension_numbers = #tpu.dot_dimension_numbers<[1], [0], [0], [1], [0, 0, 1, 1], [], []>} : vector<64x32xf32>, vector<32x128xf32>, vector<64x128xf32> -> vector<64x128xf32>
    %559 = arith.addf %556, %558 : vector<64x128xf32>
    %560 = vector.broadcast %8 : vector<1x128xf32> to vector<64x128xf32>
    %561 = arith.addf %559, %560 : vector<64x128xf32>
    %c0_144 = arith.constant 0 : index
    %c0_145 = arith.constant 0 : index
    %562 = vector.load %arg8[%c0_144, %c0_145] : memref<64x128xf32, #tpu.memory_space<vmem>>, vector<64x128xf32>
    tpu.vector_store %arg8[%c0_144, %c0_145], %561 {strides = array<i32>} : memref<64x128xf32, #tpu.memory_space<vmem>>, vector<64x128xf32>,
    %c0_i32_146 = arith.constant 0 : i32
    %c8_i32_147 = arith.constant 8 : i32
    %563 = arith.muli %c0_i32_146, %c8_i32_147 : i32
    %564 = tpu.assume_multiple %563, 8 : i32
    %565 = arith.index_cast %564 : i32 to index
    %c0_148 = arith.constant 0 : index
    %566 = vector.load %arg8[%565, %c0_148] : memref<64x128xf32, #tpu.memory_space<vmem>>, vector<8x128xf32>
    %cst_149 = arith.constant dense<0.000000e+00> : vector<8x128xf32>
    %567 = tpu.matmul %17, %6, %cst_149 {dimension_numbers = #tpu.dot_dimension_numbers<[1], [0], [0], [1], [0, 0, 1, 1], [], []>} : vector<8x32xf32>, vector<32x128xf32>, vector<8x128xf32> -> vector<8x128xf32>
    %568 = arith.addf %566, %567 : vector<8x128xf32>
    %569 = vector.extract_strided_slice %568 {offsets = [0, 0], sizes = [8, 32], strides = [1, 1]} : vector<8x128xf32> to vector<8x32xf32>
    %570 = arith.negf %569 : vector<8x32xf32>
    %571 = math.exp %570 : vector<8x32xf32>
    %cst_150 = arith.constant 1.000000e+00 : f32
    %572 = vector.broadcast %cst_150 : f32 to vector<8x32xf32>
    %573 = arith.addf %572, %571 : vector<8x32xf32>
    %574 = arith.divf %572, %573 : vector<8x32xf32>
    %575 = vector.extract_strided_slice %568 {offsets = [0, 32], sizes = [8, 32], strides = [1, 1]} : vector<8x128xf32> to vector<8x32xf32>
    %576 = arith.negf %575 : vector<8x32xf32>
    %577 = math.exp %576 : vector<8x32xf32>
    %cst_151 = arith.constant 1.000000e+00 : f32
    %578 = vector.broadcast %cst_151 : f32 to vector<8x32xf32>
    %579 = arith.addf %578, %577 : vector<8x32xf32>
    %580 = arith.divf %578, %579 : vector<8x32xf32>
    %581 = vector.extract_strided_slice %568 {offsets = [0, 64], sizes = [8, 32], strides = [1, 1]} : vector<8x128xf32> to vector<8x32xf32>
    %582 = math.tanh %581 : vector<8x32xf32>
    %583 = vector.extract_strided_slice %568 {offsets = [0, 96], sizes = [8, 32], strides = [1, 1]} : vector<8x128xf32> to vector<8x32xf32>
    %584 = arith.negf %583 : vector<8x32xf32>
    %585 = math.exp %584 : vector<8x32xf32>
    %cst_152 = arith.constant 1.000000e+00 : f32
    %586 = vector.broadcast %cst_152 : f32 to vector<8x32xf32>
    %587 = arith.addf %586, %585 : vector<8x32xf32>
    %588 = arith.divf %586, %587 : vector<8x32xf32>
    %589 = arith.mulf %580, %17 : vector<8x32xf32>
    %590 = arith.mulf %574, %582 : vector<8x32xf32>
    %591 = arith.addf %589, %590 : vector<8x32xf32>
    %592 = math.tanh %591 : vector<8x32xf32>
    %593 = arith.mulf %588, %592 : vector<8x32xf32>
    %cst_153 = arith.constant dense<0.000000e+00> : vector<8x128xf32>
    %594 = tpu.matmul %593, %11, %cst_153 {dimension_numbers = #tpu.dot_dimension_numbers<[1], [0], [0], [1], [0, 0, 1, 1], [], []>} : vector<8x32xf32>, vector<32x128xf32>, vector<8x128xf32> -> vector<8x128xf32>
    %595 = vector.broadcast %18 : vector<8x1xf32> to vector<8x128xf32>
    %596 = vector.broadcast %10 : vector<1x128xf32> to vector<8x128xf32>
    %597 = arith.mulf %595, %596 : vector<8x128xf32>
    %598 = arith.addf %594, %597 : vector<8x128xf32>
    %599 = vector.broadcast %9 : vector<1x128xf32> to vector<8x128xf32>
    %600 = arith.addf %598, %599 : vector<8x128xf32>
    %601 = vector.extract_strided_slice %600 {offsets = [0, 0], sizes = [8, 1], strides = [1, 1]} : vector<8x128xf32> to vector<8x1xf32>
    %602 = arith.negf %601 : vector<8x1xf32>
    %603 = math.exp %602 : vector<8x1xf32>
    %cst_154 = arith.constant 1.000000e+00 : f32
    %604 = vector.broadcast %cst_154 : f32 to vector<8x1xf32>
    %605 = arith.addf %604, %603 : vector<8x1xf32>
    %606 = arith.divf %604, %605 : vector<8x1xf32>
    %607 = vector.extract_strided_slice %600 {offsets = [0, 1], sizes = [8, 1], strides = [1, 1]} : vector<8x128xf32> to vector<8x1xf32>
    %608 = arith.negf %607 : vector<8x1xf32>
    %609 = math.exp %608 : vector<8x1xf32>
    %cst_155 = arith.constant 1.000000e+00 : f32
    %610 = vector.broadcast %cst_155 : f32 to vector<8x1xf32>
    %611 = arith.addf %610, %609 : vector<8x1xf32>
    %612 = arith.divf %610, %611 : vector<8x1xf32>
    %613 = vector.extract_strided_slice %600 {offsets = [0, 2], sizes = [8, 1], strides = [1, 1]} : vector<8x128xf32> to vector<8x1xf32>
    %614 = math.tanh %613 : vector<8x1xf32>
    %615 = vector.extract_strided_slice %600 {offsets = [0, 3], sizes = [8, 1], strides = [1, 1]} : vector<8x128xf32> to vector<8x1xf32>
    %616 = arith.negf %615 : vector<8x1xf32>
    %617 = math.exp %616 : vector<8x1xf32>
    %cst_156 = arith.constant 1.000000e+00 : f32
    %618 = vector.broadcast %cst_156 : f32 to vector<8x1xf32>
    %619 = arith.addf %618, %617 : vector<8x1xf32>
    %620 = arith.divf %618, %619 : vector<8x1xf32>
    %621 = arith.mulf %612, %18 : vector<8x1xf32>
    %622 = arith.mulf %606, %614 : vector<8x1xf32>
    %623 = arith.addf %621, %622 : vector<8x1xf32>
    %624 = math.tanh %623 : vector<8x1xf32>
    %625 = arith.mulf %620, %624 : vector<8x1xf32>
    %cst_157 = arith.constant 4.61512041 : f32
    %626 = vector.broadcast %cst_157 : f32 to vector<8x1xf32>
    %627 = arith.mulf %626, %625 : vector<8x1xf32>
    %628 = math.exp %627 : vector<8x1xf32>
    %cst_158 = arith.constant 1.000000e+00 : f32
    %629 = vector.broadcast %cst_158 : f32 to vector<8x1xf32>
    %630 = arith.subf %628, %629 : vector<8x1xf32>
    %631 = arith.addf %18, %630 : vector<8x1xf32>
    %c1_i32_159 = arith.constant 1 : i32
    %c8_i32_160 = arith.constant 8 : i32
    %632 = arith.muli %c1_i32_159, %c8_i32_160 : i32
    %633 = tpu.assume_multiple %632, 8 : i32
    %634 = arith.index_cast %633 : i32 to index
    %c0_161 = arith.constant 0 : index
    %635 = vector.load %arg8[%634, %c0_161] : memref<64x128xf32, #tpu.memory_space<vmem>>, vector<8x128xf32>
    %cst_162 = arith.constant dense<0.000000e+00> : vector<8x128xf32>
    %636 = tpu.matmul %593, %6, %cst_162 {dimension_numbers = #tpu.dot_dimension_numbers<[1], [0], [0], [1], [0, 0, 1, 1], [], []>} : vector<8x32xf32>, vector<32x128xf32>, vector<8x128xf32> -> vector<8x128xf32>
    %637 = arith.addf %635, %636 : vector<8x128xf32>
    %638 = vector.extract_strided_slice %637 {offsets = [0, 0], sizes = [8, 32], strides = [1, 1]} : vector<8x128xf32> to vector<8x32xf32>
    %639 = arith.negf %638 : vector<8x32xf32>
    %640 = math.exp %639 : vector<8x32xf32>
    %cst_163 = arith.constant 1.000000e+00 : f32
    %641 = vector.broadcast %cst_163 : f32 to vector<8x32xf32>
    %642 = arith.addf %641, %640 : vector<8x32xf32>
    %643 = arith.divf %641, %642 : vector<8x32xf32>
    %644 = vector.extract_strided_slice %637 {offsets = [0, 32], sizes = [8, 32], strides = [1, 1]} : vector<8x128xf32> to vector<8x32xf32>
    %645 = arith.negf %644 : vector<8x32xf32>
    %646 = math.exp %645 : vector<8x32xf32>
    %cst_164 = arith.constant 1.000000e+00 : f32
    %647 = vector.broadcast %cst_164 : f32 to vector<8x32xf32>
    %648 = arith.addf %647, %646 : vector<8x32xf32>
    %649 = arith.divf %647, %648 : vector<8x32xf32>
    %650 = vector.extract_strided_slice %637 {offsets = [0, 64], sizes = [8, 32], strides = [1, 1]} : vector<8x128xf32> to vector<8x32xf32>
    %651 = math.tanh %650 : vector<8x32xf32>
    %652 = vector.extract_strided_slice %637 {offsets = [0, 96], sizes = [8, 32], strides = [1, 1]} : vector<8x128xf32> to vector<8x32xf32>
    %653 = arith.negf %652 : vector<8x32xf32>
    %654 = math.exp %653 : vector<8x32xf32>
    %cst_165 = arith.constant 1.000000e+00 : f32
    %655 = vector.broadcast %cst_165 : f32 to vector<8x32xf32>
    %656 = arith.addf %655, %654 : vector<8x32xf32>
    %657 = arith.divf %655, %656 : vector<8x32xf32>
    %658 = arith.mulf %649, %591 : vector<8x32xf32>
    %659 = arith.mulf %643, %651 : vector<8x32xf32>
    %660 = arith.addf %658, %659 : vector<8x32xf32>
    %661 = math.tanh %660 : vector<8x32xf32>
    %662 = arith.mulf %657, %661 : vector<8x32xf32>
    %cst_166 = arith.constant dense<0.000000e+00> : vector<8x128xf32>
    %663 = tpu.matmul %662, %11, %cst_166 {dimension_numbers = #tpu.dot_dimension_numbers<[1], [0], [0], [1], [0, 0, 1, 1], [], []>} : vector<8x32xf32>, vector<32x128xf32>, vector<8x128xf32> -> vector<8x128xf32>
    %664 = vector.broadcast %625 : vector<8x1xf32> to vector<8x128xf32>
    %665 = vector.broadcast %10 : vector<1x128xf32> to vector<8x128xf32>
    %666 = arith.mulf %664, %665 : vector<8x128xf32>
    %667 = arith.addf %663, %666 : vector<8x128xf32>
    %668 = vector.broadcast %9 : vector<1x128xf32> to vector<8x128xf32>
    %669 = arith.addf %667, %668 : vector<8x128xf32>
    %670 = vector.extract_strided_slice %669 {offsets = [0, 0], sizes = [8, 1], strides = [1, 1]} : vector<8x128xf32> to vector<8x1xf32>
    %671 = arith.negf %670 : vector<8x1xf32>
    %672 = math.exp %671 : vector<8x1xf32>
    %cst_167 = arith.constant 1.000000e+00 : f32
    %673 = vector.broadcast %cst_167 : f32 to vector<8x1xf32>
    %674 = arith.addf %673, %672 : vector<8x1xf32>
    %675 = arith.divf %673, %674 : vector<8x1xf32>
    %676 = vector.extract_strided_slice %669 {offsets = [0, 1], sizes = [8, 1], strides = [1, 1]} : vector<8x128xf32> to vector<8x1xf32>
    %677 = arith.negf %676 : vector<8x1xf32>
    %678 = math.exp %677 : vector<8x1xf32>
    %cst_168 = arith.constant 1.000000e+00 : f32
    %679 = vector.broadcast %cst_168 : f32 to vector<8x1xf32>
    %680 = arith.addf %679, %678 : vector<8x1xf32>
    %681 = arith.divf %679, %680 : vector<8x1xf32>
    %682 = vector.extract_strided_slice %669 {offsets = [0, 2], sizes = [8, 1], strides = [1, 1]} : vector<8x128xf32> to vector<8x1xf32>
    %683 = math.tanh %682 : vector<8x1xf32>
    %684 = vector.extract_strided_slice %669 {offsets = [0, 3], sizes = [8, 1], strides = [1, 1]} : vector<8x128xf32> to vector<8x1xf32>
    %685 = arith.negf %684 : vector<8x1xf32>
    %686 = math.exp %685 : vector<8x1xf32>
    %cst_169 = arith.constant 1.000000e+00 : f32
    %687 = vector.broadcast %cst_169 : f32 to vector<8x1xf32>
    %688 = arith.addf %687, %686 : vector<8x1xf32>
    %689 = arith.divf %687, %688 : vector<8x1xf32>
    %690 = arith.mulf %681, %623 : vector<8x1xf32>
    %691 = arith.mulf %675, %683 : vector<8x1xf32>
    %692 = arith.addf %690, %691 : vector<8x1xf32>
    %693 = math.tanh %692 : vector<8x1xf32>
    %694 = arith.mulf %689, %693 : vector<8x1xf32>
    %cst_170 = arith.constant 4.61512041 : f32
    %695 = vector.broadcast %cst_170 : f32 to vector<8x1xf32>
    %696 = arith.mulf %695, %694 : vector<8x1xf32>
    %697 = math.exp %696 : vector<8x1xf32>
    %cst_171 = arith.constant 1.000000e+00 : f32
    %698 = vector.broadcast %cst_171 : f32 to vector<8x1xf32>
    %699 = arith.subf %697, %698 : vector<8x1xf32>
    %700 = arith.addf %631, %699 : vector<8x1xf32>
    %c2_i32_172 = arith.constant 2 : i32
    %c8_i32_173 = arith.constant 8 : i32
    %701 = arith.muli %c2_i32_172, %c8_i32_173 : i32
    %702 = tpu.assume_multiple %701, 8 : i32
    %703 = arith.index_cast %702 : i32 to index
    %c0_174 = arith.constant 0 : index
    %704 = vector.load %arg8[%703, %c0_174] : memref<64x128xf32, #tpu.memory_space<vmem>>, vector<8x128xf32>
    %cst_175 = arith.constant dense<0.000000e+00> : vector<8x128xf32>
    %705 = tpu.matmul %662, %6, %cst_175 {dimension_numbers = #tpu.dot_dimension_numbers<[1], [0], [0], [1], [0, 0, 1, 1], [], []>} : vector<8x32xf32>, vector<32x128xf32>, vector<8x128xf32> -> vector<8x128xf32>
    %706 = arith.addf %704, %705 : vector<8x128xf32>
    %707 = vector.extract_strided_slice %706 {offsets = [0, 0], sizes = [8, 32], strides = [1, 1]} : vector<8x128xf32> to vector<8x32xf32>
    %708 = arith.negf %707 : vector<8x32xf32>
    %709 = math.exp %708 : vector<8x32xf32>
    %cst_176 = arith.constant 1.000000e+00 : f32
    %710 = vector.broadcast %cst_176 : f32 to vector<8x32xf32>
    %711 = arith.addf %710, %709 : vector<8x32xf32>
    %712 = arith.divf %710, %711 : vector<8x32xf32>
    %713 = vector.extract_strided_slice %706 {offsets = [0, 32], sizes = [8, 32], strides = [1, 1]} : vector<8x128xf32> to vector<8x32xf32>
    %714 = arith.negf %713 : vector<8x32xf32>
    %715 = math.exp %714 : vector<8x32xf32>
    %cst_177 = arith.constant 1.000000e+00 : f32
    %716 = vector.broadcast %cst_177 : f32 to vector<8x32xf32>
    %717 = arith.addf %716, %715 : vector<8x32xf32>
    %718 = arith.divf %716, %717 : vector<8x32xf32>
    %719 = vector.extract_strided_slice %706 {offsets = [0, 64], sizes = [8, 32], strides = [1, 1]} : vector<8x128xf32> to vector<8x32xf32>
    %720 = math.tanh %719 : vector<8x32xf32>
    %721 = vector.extract_strided_slice %706 {offsets = [0, 96], sizes = [8, 32], strides = [1, 1]} : vector<8x128xf32> to vector<8x32xf32>
    %722 = arith.negf %721 : vector<8x32xf32>
    %723 = math.exp %722 : vector<8x32xf32>
    %cst_178 = arith.constant 1.000000e+00 : f32
    %724 = vector.broadcast %cst_178 : f32 to vector<8x32xf32>
    %725 = arith.addf %724, %723 : vector<8x32xf32>
    %726 = arith.divf %724, %725 : vector<8x32xf32>
    %727 = arith.mulf %718, %660 : vector<8x32xf32>
    %728 = arith.mulf %712, %720 : vector<8x32xf32>
    %729 = arith.addf %727, %728 : vector<8x32xf32>
    %730 = math.tanh %729 : vector<8x32xf32>
    %731 = arith.mulf %726, %730 : vector<8x32xf32>
    %cst_179 = arith.constant dense<0.000000e+00> : vector<8x128xf32>
    %732 = tpu.matmul %731, %11, %cst_179 {dimension_numbers = #tpu.dot_dimension_numbers<[1], [0], [0], [1], [0, 0, 1, 1], [], []>} : vector<8x32xf32>, vector<32x128xf32>, vector<8x128xf32> -> vector<8x128xf32>
    %733 = vector.broadcast %694 : vector<8x1xf32> to vector<8x128xf32>
    %734 = vector.broadcast %10 : vector<1x128xf32> to vector<8x128xf32>
    %735 = arith.mulf %733, %734 : vector<8x128xf32>
    %736 = arith.addf %732, %735 : vector<8x128xf32>
    %737 = vector.broadcast %9 : vector<1x128xf32> to vector<8x128xf32>
    %738 = arith.addf %736, %737 : vector<8x128xf32>
    %739 = vector.extract_strided_slice %738 {offsets = [0, 0], sizes = [8, 1], strides = [1, 1]} : vector<8x128xf32> to vector<8x1xf32>
    %740 = arith.negf %739 : vector<8x1xf32>
    %741 = math.exp %740 : vector<8x1xf32>
    %cst_180 = arith.constant 1.000000e+00 : f32
    %742 = vector.broadcast %cst_180 : f32 to vector<8x1xf32>
    %743 = arith.addf %742, %741 : vector<8x1xf32>
    %744 = arith.divf %742, %743 : vector<8x1xf32>
    %745 = vector.extract_strided_slice %738 {offsets = [0, 1], sizes = [8, 1], strides = [1, 1]} : vector<8x128xf32> to vector<8x1xf32>
    %746 = arith.negf %745 : vector<8x1xf32>
    %747 = math.exp %746 : vector<8x1xf32>
    %cst_181 = arith.constant 1.000000e+00 : f32
    %748 = vector.broadcast %cst_181 : f32 to vector<8x1xf32>
    %749 = arith.addf %748, %747 : vector<8x1xf32>
    %750 = arith.divf %748, %749 : vector<8x1xf32>
    %751 = vector.extract_strided_slice %738 {offsets = [0, 2], sizes = [8, 1], strides = [1, 1]} : vector<8x128xf32> to vector<8x1xf32>
    %752 = math.tanh %751 : vector<8x1xf32>
    %753 = vector.extract_strided_slice %738 {offsets = [0, 3], sizes = [8, 1], strides = [1, 1]} : vector<8x128xf32> to vector<8x1xf32>
    %754 = arith.negf %753 : vector<8x1xf32>
    %755 = math.exp %754 : vector<8x1xf32>
    %cst_182 = arith.constant 1.000000e+00 : f32
    %756 = vector.broadcast %cst_182 : f32 to vector<8x1xf32>
    %757 = arith.addf %756, %755 : vector<8x1xf32>
    %758 = arith.divf %756, %757 : vector<8x1xf32>
    %759 = arith.mulf %750, %692 : vector<8x1xf32>
    %760 = arith.mulf %744, %752 : vector<8x1xf32>
    %761 = arith.addf %759, %760 : vector<8x1xf32>
    %762 = math.tanh %761 : vector<8x1xf32>
    %763 = arith.mulf %758, %762 : vector<8x1xf32>
    %cst_183 = arith.constant 4.61512041 : f32
    %764 = vector.broadcast %cst_183 : f32 to vector<8x1xf32>
    %765 = arith.mulf %764, %763 : vector<8x1xf32>
    %766 = math.exp %765 : vector<8x1xf32>
    %cst_184 = arith.constant 1.000000e+00 : f32
    %767 = vector.broadcast %cst_184 : f32 to vector<8x1xf32>
    %768 = arith.subf %766, %767 : vector<8x1xf32>
    %769 = arith.addf %700, %768 : vector<8x1xf32>
    %c3_i32_185 = arith.constant 3 : i32
    %c8_i32_186 = arith.constant 8 : i32
    %770 = arith.muli %c3_i32_185, %c8_i32_186 : i32
    %771 = tpu.assume_multiple %770, 8 : i32
    %772 = arith.index_cast %771 : i32 to index
    %c0_187 = arith.constant 0 : index
    %773 = vector.load %arg8[%772, %c0_187] : memref<64x128xf32, #tpu.memory_space<vmem>>, vector<8x128xf32>
    %cst_188 = arith.constant dense<0.000000e+00> : vector<8x128xf32>
    %774 = tpu.matmul %731, %6, %cst_188 {dimension_numbers = #tpu.dot_dimension_numbers<[1], [0], [0], [1], [0, 0, 1, 1], [], []>} : vector<8x32xf32>, vector<32x128xf32>, vector<8x128xf32> -> vector<8x128xf32>
    %775 = arith.addf %773, %774 : vector<8x128xf32>
    %776 = vector.extract_strided_slice %775 {offsets = [0, 0], sizes = [8, 32], strides = [1, 1]} : vector<8x128xf32> to vector<8x32xf32>
    %777 = arith.negf %776 : vector<8x32xf32>
    %778 = math.exp %777 : vector<8x32xf32>
    %cst_189 = arith.constant 1.000000e+00 : f32
    %779 = vector.broadcast %cst_189 : f32 to vector<8x32xf32>
    %780 = arith.addf %779, %778 : vector<8x32xf32>
    %781 = arith.divf %779, %780 : vector<8x32xf32>
    %782 = vector.extract_strided_slice %775 {offsets = [0, 32], sizes = [8, 32], strides = [1, 1]} : vector<8x128xf32> to vector<8x32xf32>
    %783 = arith.negf %782 : vector<8x32xf32>
    %784 = math.exp %783 : vector<8x32xf32>
    %cst_190 = arith.constant 1.000000e+00 : f32
    %785 = vector.broadcast %cst_190 : f32 to vector<8x32xf32>
    %786 = arith.addf %785, %784 : vector<8x32xf32>
    %787 = arith.divf %785, %786 : vector<8x32xf32>
    %788 = vector.extract_strided_slice %775 {offsets = [0, 64], sizes = [8, 32], strides = [1, 1]} : vector<8x128xf32> to vector<8x32xf32>
    %789 = math.tanh %788 : vector<8x32xf32>
    %790 = vector.extract_strided_slice %775 {offsets = [0, 96], sizes = [8, 32], strides = [1, 1]} : vector<8x128xf32> to vector<8x32xf32>
    %791 = arith.negf %790 : vector<8x32xf32>
    %792 = math.exp %791 : vector<8x32xf32>
    %cst_191 = arith.constant 1.000000e+00 : f32
    %793 = vector.broadcast %cst_191 : f32 to vector<8x32xf32>
    %794 = arith.addf %793, %792 : vector<8x32xf32>
    %795 = arith.divf %793, %794 : vector<8x32xf32>
    %796 = arith.mulf %787, %729 : vector<8x32xf32>
    %797 = arith.mulf %781, %789 : vector<8x32xf32>
    %798 = arith.addf %796, %797 : vector<8x32xf32>
    %799 = math.tanh %798 : vector<8x32xf32>
    %800 = arith.mulf %795, %799 : vector<8x32xf32>
    %cst_192 = arith.constant dense<0.000000e+00> : vector<8x128xf32>
    %801 = tpu.matmul %800, %11, %cst_192 {dimension_numbers = #tpu.dot_dimension_numbers<[1], [0], [0], [1], [0, 0, 1, 1], [], []>} : vector<8x32xf32>, vector<32x128xf32>, vector<8x128xf32> -> vector<8x128xf32>
    %802 = vector.broadcast %763 : vector<8x1xf32> to vector<8x128xf32>
    %803 = vector.broadcast %10 : vector<1x128xf32> to vector<8x128xf32>
    %804 = arith.mulf %802, %803 : vector<8x128xf32>
    %805 = arith.addf %801, %804 : vector<8x128xf32>
    %806 = vector.broadcast %9 : vector<1x128xf32> to vector<8x128xf32>
    %807 = arith.addf %805, %806 : vector<8x128xf32>
    %808 = vector.extract_strided_slice %807 {offsets = [0, 0], sizes = [8, 1], strides = [1, 1]} : vector<8x128xf32> to vector<8x1xf32>
    %809 = arith.negf %808 : vector<8x1xf32>
    %810 = math.exp %809 : vector<8x1xf32>
    %cst_193 = arith.constant 1.000000e+00 : f32
    %811 = vector.broadcast %cst_193 : f32 to vector<8x1xf32>
    %812 = arith.addf %811, %810 : vector<8x1xf32>
    %813 = arith.divf %811, %812 : vector<8x1xf32>
    %814 = vector.extract_strided_slice %807 {offsets = [0, 1], sizes = [8, 1], strides = [1, 1]} : vector<8x128xf32> to vector<8x1xf32>
    %815 = arith.negf %814 : vector<8x1xf32>
    %816 = math.exp %815 : vector<8x1xf32>
    %cst_194 = arith.constant 1.000000e+00 : f32
    %817 = vector.broadcast %cst_194 : f32 to vector<8x1xf32>
    %818 = arith.addf %817, %816 : vector<8x1xf32>
    %819 = arith.divf %817, %818 : vector<8x1xf32>
    %820 = vector.extract_strided_slice %807 {offsets = [0, 2], sizes = [8, 1], strides = [1, 1]} : vector<8x128xf32> to vector<8x1xf32>
    %821 = math.tanh %820 : vector<8x1xf32>
    %822 = vector.extract_strided_slice %807 {offsets = [0, 3], sizes = [8, 1], strides = [1, 1]} : vector<8x128xf32> to vector<8x1xf32>
    %823 = arith.negf %822 : vector<8x1xf32>
    %824 = math.exp %823 : vector<8x1xf32>
    %cst_195 = arith.constant 1.000000e+00 : f32
    %825 = vector.broadcast %cst_195 : f32 to vector<8x1xf32>
    %826 = arith.addf %825, %824 : vector<8x1xf32>
    %827 = arith.divf %825, %826 : vector<8x1xf32>
    %828 = arith.mulf %819, %761 : vector<8x1xf32>
    %829 = arith.mulf %813, %821 : vector<8x1xf32>
    %830 = arith.addf %828, %829 : vector<8x1xf32>
    %831 = math.tanh %830 : vector<8x1xf32>
    %832 = arith.mulf %827, %831 : vector<8x1xf32>
    %cst_196 = arith.constant 4.61512041 : f32
    %833 = vector.broadcast %cst_196 : f32 to vector<8x1xf32>
    %834 = arith.mulf %833, %832 : vector<8x1xf32>
    %835 = math.exp %834 : vector<8x1xf32>
    %cst_197 = arith.constant 1.000000e+00 : f32
    %836 = vector.broadcast %cst_197 : f32 to vector<8x1xf32>
    %837 = arith.subf %835, %836 : vector<8x1xf32>
    %838 = arith.addf %769, %837 : vector<8x1xf32>
    %c4_i32_198 = arith.constant 4 : i32
    %c8_i32_199 = arith.constant 8 : i32
    %839 = arith.muli %c4_i32_198, %c8_i32_199 : i32
    %840 = tpu.assume_multiple %839, 8 : i32
    %841 = arith.index_cast %840 : i32 to index
    %c0_200 = arith.constant 0 : index
    %842 = vector.load %arg8[%841, %c0_200] : memref<64x128xf32, #tpu.memory_space<vmem>>, vector<8x128xf32>
    %cst_201 = arith.constant dense<0.000000e+00> : vector<8x128xf32>
    %843 = tpu.matmul %800, %6, %cst_201 {dimension_numbers = #tpu.dot_dimension_numbers<[1], [0], [0], [1], [0, 0, 1, 1], [], []>} : vector<8x32xf32>, vector<32x128xf32>, vector<8x128xf32> -> vector<8x128xf32>
    %844 = arith.addf %842, %843 : vector<8x128xf32>
    %845 = vector.extract_strided_slice %844 {offsets = [0, 0], sizes = [8, 32], strides = [1, 1]} : vector<8x128xf32> to vector<8x32xf32>
    %846 = arith.negf %845 : vector<8x32xf32>
    %847 = math.exp %846 : vector<8x32xf32>
    %cst_202 = arith.constant 1.000000e+00 : f32
    %848 = vector.broadcast %cst_202 : f32 to vector<8x32xf32>
    %849 = arith.addf %848, %847 : vector<8x32xf32>
    %850 = arith.divf %848, %849 : vector<8x32xf32>
    %851 = vector.extract_strided_slice %844 {offsets = [0, 32], sizes = [8, 32], strides = [1, 1]} : vector<8x128xf32> to vector<8x32xf32>
    %852 = arith.negf %851 : vector<8x32xf32>
    %853 = math.exp %852 : vector<8x32xf32>
    %cst_203 = arith.constant 1.000000e+00 : f32
    %854 = vector.broadcast %cst_203 : f32 to vector<8x32xf32>
    %855 = arith.addf %854, %853 : vector<8x32xf32>
    %856 = arith.divf %854, %855 : vector<8x32xf32>
    %857 = vector.extract_strided_slice %844 {offsets = [0, 64], sizes = [8, 32], strides = [1, 1]} : vector<8x128xf32> to vector<8x32xf32>
    %858 = math.tanh %857 : vector<8x32xf32>
    %859 = vector.extract_strided_slice %844 {offsets = [0, 96], sizes = [8, 32], strides = [1, 1]} : vector<8x128xf32> to vector<8x32xf32>
    %860 = arith.negf %859 : vector<8x32xf32>
    %861 = math.exp %860 : vector<8x32xf32>
    %cst_204 = arith.constant 1.000000e+00 : f32
    %862 = vector.broadcast %cst_204 : f32 to vector<8x32xf32>
    %863 = arith.addf %862, %861 : vector<8x32xf32>
    %864 = arith.divf %862, %863 : vector<8x32xf32>
    %865 = arith.mulf %856, %798 : vector<8x32xf32>
    %866 = arith.mulf %850, %858 : vector<8x32xf32>
    %867 = arith.addf %865, %866 : vector<8x32xf32>
    %868 = math.tanh %867 : vector<8x32xf32>
    %869 = arith.mulf %864, %868 : vector<8x32xf32>
    %cst_205 = arith.constant dense<0.000000e+00> : vector<8x128xf32>
    %870 = tpu.matmul %869, %11, %cst_205 {dimension_numbers = #tpu.dot_dimension_numbers<[1], [0], [0], [1], [0, 0, 1, 1], [], []>} : vector<8x32xf32>, vector<32x128xf32>, vector<8x128xf32> -> vector<8x128xf32>
    %871 = vector.broadcast %832 : vector<8x1xf32> to vector<8x128xf32>
    %872 = vector.broadcast %10 : vector<1x128xf32> to vector<8x128xf32>
    %873 = arith.mulf %871, %872 : vector<8x128xf32>
    %874 = arith.addf %870, %873 : vector<8x128xf32>
    %875 = vector.broadcast %9 : vector<1x128xf32> to vector<8x128xf32>
    %876 = arith.addf %874, %875 : vector<8x128xf32>
    %877 = vector.extract_strided_slice %876 {offsets = [0, 0], sizes = [8, 1], strides = [1, 1]} : vector<8x128xf32> to vector<8x1xf32>
    %878 = arith.negf %877 : vector<8x1xf32>
    %879 = math.exp %878 : vector<8x1xf32>
    %cst_206 = arith.constant 1.000000e+00 : f32
    %880 = vector.broadcast %cst_206 : f32 to vector<8x1xf32>
    %881 = arith.addf %880, %879 : vector<8x1xf32>
    %882 = arith.divf %880, %881 : vector<8x1xf32>
    %883 = vector.extract_strided_slice %876 {offsets = [0, 1], sizes = [8, 1], strides = [1, 1]} : vector<8x128xf32> to vector<8x1xf32>
    %884 = arith.negf %883 : vector<8x1xf32>
    %885 = math.exp %884 : vector<8x1xf32>
    %cst_207 = arith.constant 1.000000e+00 : f32
    %886 = vector.broadcast %cst_207 : f32 to vector<8x1xf32>
    %887 = arith.addf %886, %885 : vector<8x1xf32>
    %888 = arith.divf %886, %887 : vector<8x1xf32>
    %889 = vector.extract_strided_slice %876 {offsets = [0, 2], sizes = [8, 1], strides = [1, 1]} : vector<8x128xf32> to vector<8x1xf32>
    %890 = math.tanh %889 : vector<8x1xf32>
    %891 = vector.extract_strided_slice %876 {offsets = [0, 3], sizes = [8, 1], strides = [1, 1]} : vector<8x128xf32> to vector<8x1xf32>
    %892 = arith.negf %891 : vector<8x1xf32>
    %893 = math.exp %892 : vector<8x1xf32>
    %cst_208 = arith.constant 1.000000e+00 : f32
    %894 = vector.broadcast %cst_208 : f32 to vector<8x1xf32>
    %895 = arith.addf %894, %893 : vector<8x1xf32>
    %896 = arith.divf %894, %895 : vector<8x1xf32>
    %897 = arith.mulf %888, %830 : vector<8x1xf32>
    %898 = arith.mulf %882, %890 : vector<8x1xf32>
    %899 = arith.addf %897, %898 : vector<8x1xf32>
    %900 = math.tanh %899 : vector<8x1xf32>
    %901 = arith.mulf %896, %900 : vector<8x1xf32>
    %cst_209 = arith.constant 4.61512041 : f32
    %902 = vector.broadcast %cst_209 : f32 to vector<8x1xf32>
    %903 = arith.mulf %902, %901 : vector<8x1xf32>
    %904 = math.exp %903 : vector<8x1xf32>
    %cst_210 = arith.constant 1.000000e+00 : f32
    %905 = vector.broadcast %cst_210 : f32 to vector<8x1xf32>
    %906 = arith.subf %904, %905 : vector<8x1xf32>
    %907 = arith.addf %838, %906 : vector<8x1xf32>
    %c5_i32_211 = arith.constant 5 : i32
    %c8_i32_212 = arith.constant 8 : i32
    %908 = arith.muli %c5_i32_211, %c8_i32_212 : i32
    %909 = tpu.assume_multiple %908, 8 : i32
    %910 = arith.index_cast %909 : i32 to index
    %c0_213 = arith.constant 0 : index
    %911 = vector.load %arg8[%910, %c0_213] : memref<64x128xf32, #tpu.memory_space<vmem>>, vector<8x128xf32>
    %cst_214 = arith.constant dense<0.000000e+00> : vector<8x128xf32>
    %912 = tpu.matmul %869, %6, %cst_214 {dimension_numbers = #tpu.dot_dimension_numbers<[1], [0], [0], [1], [0, 0, 1, 1], [], []>} : vector<8x32xf32>, vector<32x128xf32>, vector<8x128xf32> -> vector<8x128xf32>
    %913 = arith.addf %911, %912 : vector<8x128xf32>
    %914 = vector.extract_strided_slice %913 {offsets = [0, 0], sizes = [8, 32], strides = [1, 1]} : vector<8x128xf32> to vector<8x32xf32>
    %915 = arith.negf %914 : vector<8x32xf32>
    %916 = math.exp %915 : vector<8x32xf32>
    %cst_215 = arith.constant 1.000000e+00 : f32
    %917 = vector.broadcast %cst_215 : f32 to vector<8x32xf32>
    %918 = arith.addf %917, %916 : vector<8x32xf32>
    %919 = arith.divf %917, %918 : vector<8x32xf32>
    %920 = vector.extract_strided_slice %913 {offsets = [0, 32], sizes = [8, 32], strides = [1, 1]} : vector<8x128xf32> to vector<8x32xf32>
    %921 = arith.negf %920 : vector<8x32xf32>
    %922 = math.exp %921 : vector<8x32xf32>
    %cst_216 = arith.constant 1.000000e+00 : f32
    %923 = vector.broadcast %cst_216 : f32 to vector<8x32xf32>
    %924 = arith.addf %923, %922 : vector<8x32xf32>
    %925 = arith.divf %923, %924 : vector<8x32xf32>
    %926 = vector.extract_strided_slice %913 {offsets = [0, 64], sizes = [8, 32], strides = [1, 1]} : vector<8x128xf32> to vector<8x32xf32>
    %927 = math.tanh %926 : vector<8x32xf32>
    %928 = vector.extract_strided_slice %913 {offsets = [0, 96], sizes = [8, 32], strides = [1, 1]} : vector<8x128xf32> to vector<8x32xf32>
    %929 = arith.negf %928 : vector<8x32xf32>
    %930 = math.exp %929 : vector<8x32xf32>
    %cst_217 = arith.constant 1.000000e+00 : f32
    %931 = vector.broadcast %cst_217 : f32 to vector<8x32xf32>
    %932 = arith.addf %931, %930 : vector<8x32xf32>
    %933 = arith.divf %931, %932 : vector<8x32xf32>
    %934 = arith.mulf %925, %867 : vector<8x32xf32>
    %935 = arith.mulf %919, %927 : vector<8x32xf32>
    %936 = arith.addf %934, %935 : vector<8x32xf32>
    %937 = math.tanh %936 : vector<8x32xf32>
    %938 = arith.mulf %933, %937 : vector<8x32xf32>
    %cst_218 = arith.constant dense<0.000000e+00> : vector<8x128xf32>
    %939 = tpu.matmul %938, %11, %cst_218 {dimension_numbers = #tpu.dot_dimension_numbers<[1], [0], [0], [1], [0, 0, 1, 1], [], []>} : vector<8x32xf32>, vector<32x128xf32>, vector<8x128xf32> -> vector<8x128xf32>
    %940 = vector.broadcast %901 : vector<8x1xf32> to vector<8x128xf32>
    %941 = vector.broadcast %10 : vector<1x128xf32> to vector<8x128xf32>
    %942 = arith.mulf %940, %941 : vector<8x128xf32>
    %943 = arith.addf %939, %942 : vector<8x128xf32>
    %944 = vector.broadcast %9 : vector<1x128xf32> to vector<8x128xf32>
    %945 = arith.addf %943, %944 : vector<8x128xf32>
    %946 = vector.extract_strided_slice %945 {offsets = [0, 0], sizes = [8, 1], strides = [1, 1]} : vector<8x128xf32> to vector<8x1xf32>
    %947 = arith.negf %946 : vector<8x1xf32>
    %948 = math.exp %947 : vector<8x1xf32>
    %cst_219 = arith.constant 1.000000e+00 : f32
    %949 = vector.broadcast %cst_219 : f32 to vector<8x1xf32>
    %950 = arith.addf %949, %948 : vector<8x1xf32>
    %951 = arith.divf %949, %950 : vector<8x1xf32>
    %952 = vector.extract_strided_slice %945 {offsets = [0, 1], sizes = [8, 1], strides = [1, 1]} : vector<8x128xf32> to vector<8x1xf32>
    %953 = arith.negf %952 : vector<8x1xf32>
    %954 = math.exp %953 : vector<8x1xf32>
    %cst_220 = arith.constant 1.000000e+00 : f32
    %955 = vector.broadcast %cst_220 : f32 to vector<8x1xf32>
    %956 = arith.addf %955, %954 : vector<8x1xf32>
    %957 = arith.divf %955, %956 : vector<8x1xf32>
    %958 = vector.extract_strided_slice %945 {offsets = [0, 2], sizes = [8, 1], strides = [1, 1]} : vector<8x128xf32> to vector<8x1xf32>
    %959 = math.tanh %958 : vector<8x1xf32>
    %960 = vector.extract_strided_slice %945 {offsets = [0, 3], sizes = [8, 1], strides = [1, 1]} : vector<8x128xf32> to vector<8x1xf32>
    %961 = arith.negf %960 : vector<8x1xf32>
    %962 = math.exp %961 : vector<8x1xf32>
    %cst_221 = arith.constant 1.000000e+00 : f32
    %963 = vector.broadcast %cst_221 : f32 to vector<8x1xf32>
    %964 = arith.addf %963, %962 : vector<8x1xf32>
    %965 = arith.divf %963, %964 : vector<8x1xf32>
    %966 = arith.mulf %957, %899 : vector<8x1xf32>
    %967 = arith.mulf %951, %959 : vector<8x1xf32>
    %968 = arith.addf %966, %967 : vector<8x1xf32>
    %969 = math.tanh %968 : vector<8x1xf32>
    %970 = arith.mulf %965, %969 : vector<8x1xf32>
    %cst_222 = arith.constant 4.61512041 : f32
    %971 = vector.broadcast %cst_222 : f32 to vector<8x1xf32>
    %972 = arith.mulf %971, %970 : vector<8x1xf32>
    %973 = math.exp %972 : vector<8x1xf32>
    %cst_223 = arith.constant 1.000000e+00 : f32
    %974 = vector.broadcast %cst_223 : f32 to vector<8x1xf32>
    %975 = arith.subf %973, %974 : vector<8x1xf32>
    %976 = arith.addf %907, %975 : vector<8x1xf32>
    %c6_i32_224 = arith.constant 6 : i32
    %c8_i32_225 = arith.constant 8 : i32
    %977 = arith.muli %c6_i32_224, %c8_i32_225 : i32
    %978 = tpu.assume_multiple %977, 8 : i32
    %979 = arith.index_cast %978 : i32 to index
    %c0_226 = arith.constant 0 : index
    %980 = vector.load %arg8[%979, %c0_226] : memref<64x128xf32, #tpu.memory_space<vmem>>, vector<8x128xf32>
    %cst_227 = arith.constant dense<0.000000e+00> : vector<8x128xf32>
    %981 = tpu.matmul %938, %6, %cst_227 {dimension_numbers = #tpu.dot_dimension_numbers<[1], [0], [0], [1], [0, 0, 1, 1], [], []>} : vector<8x32xf32>, vector<32x128xf32>, vector<8x128xf32> -> vector<8x128xf32>
    %982 = arith.addf %980, %981 : vector<8x128xf32>
    %983 = vector.extract_strided_slice %982 {offsets = [0, 0], sizes = [8, 32], strides = [1, 1]} : vector<8x128xf32> to vector<8x32xf32>
    %984 = arith.negf %983 : vector<8x32xf32>
    %985 = math.exp %984 : vector<8x32xf32>
    %cst_228 = arith.constant 1.000000e+00 : f32
    %986 = vector.broadcast %cst_228 : f32 to vector<8x32xf32>
    %987 = arith.addf %986, %985 : vector<8x32xf32>
    %988 = arith.divf %986, %987 : vector<8x32xf32>
    %989 = vector.extract_strided_slice %982 {offsets = [0, 32], sizes = [8, 32], strides = [1, 1]} : vector<8x128xf32> to vector<8x32xf32>
    %990 = arith.negf %989 : vector<8x32xf32>
    %991 = math.exp %990 : vector<8x32xf32>
    %cst_229 = arith.constant 1.000000e+00 : f32
    %992 = vector.broadcast %cst_229 : f32 to vector<8x32xf32>
    %993 = arith.addf %992, %991 : vector<8x32xf32>
    %994 = arith.divf %992, %993 : vector<8x32xf32>
    %995 = vector.extract_strided_slice %982 {offsets = [0, 64], sizes = [8, 32], strides = [1, 1]} : vector<8x128xf32> to vector<8x32xf32>
    %996 = math.tanh %995 : vector<8x32xf32>
    %997 = vector.extract_strided_slice %982 {offsets = [0, 96], sizes = [8, 32], strides = [1, 1]} : vector<8x128xf32> to vector<8x32xf32>
    %998 = arith.negf %997 : vector<8x32xf32>
    %999 = math.exp %998 : vector<8x32xf32>
    %cst_230 = arith.constant 1.000000e+00 : f32
    %1000 = vector.broadcast %cst_230 : f32 to vector<8x32xf32>
    %1001 = arith.addf %1000, %999 : vector<8x32xf32>
    %1002 = arith.divf %1000, %1001 : vector<8x32xf32>
    %1003 = arith.mulf %994, %936 : vector<8x32xf32>
    %1004 = arith.mulf %988, %996 : vector<8x32xf32>
    %1005 = arith.addf %1003, %1004 : vector<8x32xf32>
    %1006 = math.tanh %1005 : vector<8x32xf32>
    %1007 = arith.mulf %1002, %1006 : vector<8x32xf32>
    %cst_231 = arith.constant dense<0.000000e+00> : vector<8x128xf32>
    %1008 = tpu.matmul %1007, %11, %cst_231 {dimension_numbers = #tpu.dot_dimension_numbers<[1], [0], [0], [1], [0, 0, 1, 1], [], []>} : vector<8x32xf32>, vector<32x128xf32>, vector<8x128xf32> -> vector<8x128xf32>
    %1009 = vector.broadcast %970 : vector<8x1xf32> to vector<8x128xf32>
    %1010 = vector.broadcast %10 : vector<1x128xf32> to vector<8x128xf32>
    %1011 = arith.mulf %1009, %1010 : vector<8x128xf32>
    %1012 = arith.addf %1008, %1011 : vector<8x128xf32>
    %1013 = vector.broadcast %9 : vector<1x128xf32> to vector<8x128xf32>
    %1014 = arith.addf %1012, %1013 : vector<8x128xf32>
    %1015 = vector.extract_strided_slice %1014 {offsets = [0, 0], sizes = [8, 1], strides = [1, 1]} : vector<8x128xf32> to vector<8x1xf32>
    %1016 = arith.negf %1015 : vector<8x1xf32>
    %1017 = math.exp %1016 : vector<8x1xf32>
    %cst_232 = arith.constant 1.000000e+00 : f32
    %1018 = vector.broadcast %cst_232 : f32 to vector<8x1xf32>
    %1019 = arith.addf %1018, %1017 : vector<8x1xf32>
    %1020 = arith.divf %1018, %1019 : vector<8x1xf32>
    %1021 = vector.extract_strided_slice %1014 {offsets = [0, 1], sizes = [8, 1], strides = [1, 1]} : vector<8x128xf32> to vector<8x1xf32>
    %1022 = arith.negf %1021 : vector<8x1xf32>
    %1023 = math.exp %1022 : vector<8x1xf32>
    %cst_233 = arith.constant 1.000000e+00 : f32
    %1024 = vector.broadcast %cst_233 : f32 to vector<8x1xf32>
    %1025 = arith.addf %1024, %1023 : vector<8x1xf32>
    %1026 = arith.divf %1024, %1025 : vector<8x1xf32>
    %1027 = vector.extract_strided_slice %1014 {offsets = [0, 2], sizes = [8, 1], strides = [1, 1]} : vector<8x128xf32> to vector<8x1xf32>
    %1028 = math.tanh %1027 : vector<8x1xf32>
    %1029 = vector.extract_strided_slice %1014 {offsets = [0, 3], sizes = [8, 1], strides = [1, 1]} : vector<8x128xf32> to vector<8x1xf32>
    %1030 = arith.negf %1029 : vector<8x1xf32>
    %1031 = math.exp %1030 : vector<8x1xf32>
    %cst_234 = arith.constant 1.000000e+00 : f32
    %1032 = vector.broadcast %cst_234 : f32 to vector<8x1xf32>
    %1033 = arith.addf %1032, %1031 : vector<8x1xf32>
    %1034 = arith.divf %1032, %1033 : vector<8x1xf32>
    %1035 = arith.mulf %1026, %968 : vector<8x1xf32>
    %1036 = arith.mulf %1020, %1028 : vector<8x1xf32>
    %1037 = arith.addf %1035, %1036 : vector<8x1xf32>
    %1038 = math.tanh %1037 : vector<8x1xf32>
    %1039 = arith.mulf %1034, %1038 : vector<8x1xf32>
    %cst_235 = arith.constant 4.61512041 : f32
    %1040 = vector.broadcast %cst_235 : f32 to vector<8x1xf32>
    %1041 = arith.mulf %1040, %1039 : vector<8x1xf32>
    %1042 = math.exp %1041 : vector<8x1xf32>
    %cst_236 = arith.constant 1.000000e+00 : f32
    %1043 = vector.broadcast %cst_236 : f32 to vector<8x1xf32>
    %1044 = arith.subf %1042, %1043 : vector<8x1xf32>
    %1045 = arith.addf %976, %1044 : vector<8x1xf32>
    %c7_i32_237 = arith.constant 7 : i32
    %c8_i32_238 = arith.constant 8 : i32
    %1046 = arith.muli %c7_i32_237, %c8_i32_238 : i32
    %1047 = tpu.assume_multiple %1046, 8 : i32
    %1048 = arith.index_cast %1047 : i32 to index
    %c0_239 = arith.constant 0 : index
    %1049 = vector.load %arg8[%1048, %c0_239] : memref<64x128xf32, #tpu.memory_space<vmem>>, vector<8x128xf32>
    %cst_240 = arith.constant dense<0.000000e+00> : vector<8x128xf32>
    %1050 = tpu.matmul %1007, %6, %cst_240 {dimension_numbers = #tpu.dot_dimension_numbers<[1], [0], [0], [1], [0, 0, 1, 1], [], []>} : vector<8x32xf32>, vector<32x128xf32>, vector<8x128xf32> -> vector<8x128xf32>
    %1051 = arith.addf %1049, %1050 : vector<8x128xf32>
    %1052 = vector.extract_strided_slice %1051 {offsets = [0, 0], sizes = [8, 32], strides = [1, 1]} : vector<8x128xf32> to vector<8x32xf32>
    %1053 = arith.negf %1052 : vector<8x32xf32>
    %1054 = math.exp %1053 : vector<8x32xf32>
    %cst_241 = arith.constant 1.000000e+00 : f32
    %1055 = vector.broadcast %cst_241 : f32 to vector<8x32xf32>
    %1056 = arith.addf %1055, %1054 : vector<8x32xf32>
    %1057 = arith.divf %1055, %1056 : vector<8x32xf32>
    %1058 = vector.extract_strided_slice %1051 {offsets = [0, 32], sizes = [8, 32], strides = [1, 1]} : vector<8x128xf32> to vector<8x32xf32>
    %1059 = arith.negf %1058 : vector<8x32xf32>
    %1060 = math.exp %1059 : vector<8x32xf32>
    %cst_242 = arith.constant 1.000000e+00 : f32
    %1061 = vector.broadcast %cst_242 : f32 to vector<8x32xf32>
    %1062 = arith.addf %1061, %1060 : vector<8x32xf32>
    %1063 = arith.divf %1061, %1062 : vector<8x32xf32>
    %1064 = vector.extract_strided_slice %1051 {offsets = [0, 64], sizes = [8, 32], strides = [1, 1]} : vector<8x128xf32> to vector<8x32xf32>
    %1065 = math.tanh %1064 : vector<8x32xf32>
    %1066 = vector.extract_strided_slice %1051 {offsets = [0, 96], sizes = [8, 32], strides = [1, 1]} : vector<8x128xf32> to vector<8x32xf32>
    %1067 = arith.negf %1066 : vector<8x32xf32>
    %1068 = math.exp %1067 : vector<8x32xf32>
    %cst_243 = arith.constant 1.000000e+00 : f32
    %1069 = vector.broadcast %cst_243 : f32 to vector<8x32xf32>
    %1070 = arith.addf %1069, %1068 : vector<8x32xf32>
    %1071 = arith.divf %1069, %1070 : vector<8x32xf32>
    %1072 = arith.mulf %1063, %1005 : vector<8x32xf32>
    %1073 = arith.mulf %1057, %1065 : vector<8x32xf32>
    %1074 = arith.addf %1072, %1073 : vector<8x32xf32>
    %1075 = math.tanh %1074 : vector<8x32xf32>
    %1076 = arith.mulf %1071, %1075 : vector<8x32xf32>
    %cst_244 = arith.constant dense<0.000000e+00> : vector<8x128xf32>
    %1077 = tpu.matmul %1076, %11, %cst_244 {dimension_numbers = #tpu.dot_dimension_numbers<[1], [0], [0], [1], [0, 0, 1, 1], [], []>} : vector<8x32xf32>, vector<32x128xf32>, vector<8x128xf32> -> vector<8x128xf32>
    %1078 = vector.broadcast %1039 : vector<8x1xf32> to vector<8x128xf32>
    %1079 = vector.broadcast %10 : vector<1x128xf32> to vector<8x128xf32>
    %1080 = arith.mulf %1078, %1079 : vector<8x128xf32>
    %1081 = arith.addf %1077, %1080 : vector<8x128xf32>
    %1082 = vector.broadcast %9 : vector<1x128xf32> to vector<8x128xf32>
    %1083 = arith.addf %1081, %1082 : vector<8x128xf32>
    %1084 = vector.extract_strided_slice %1083 {offsets = [0, 0], sizes = [8, 1], strides = [1, 1]} : vector<8x128xf32> to vector<8x1xf32>
    %1085 = arith.negf %1084 : vector<8x1xf32>
    %1086 = math.exp %1085 : vector<8x1xf32>
    %cst_245 = arith.constant 1.000000e+00 : f32
    %1087 = vector.broadcast %cst_245 : f32 to vector<8x1xf32>
    %1088 = arith.addf %1087, %1086 : vector<8x1xf32>
    %1089 = arith.divf %1087, %1088 : vector<8x1xf32>
    %1090 = vector.extract_strided_slice %1083 {offsets = [0, 1], sizes = [8, 1], strides = [1, 1]} : vector<8x128xf32> to vector<8x1xf32>
    %1091 = arith.negf %1090 : vector<8x1xf32>
    %1092 = math.exp %1091 : vector<8x1xf32>
    %cst_246 = arith.constant 1.000000e+00 : f32
    %1093 = vector.broadcast %cst_246 : f32 to vector<8x1xf32>
    %1094 = arith.addf %1093, %1092 : vector<8x1xf32>
    %1095 = arith.divf %1093, %1094 : vector<8x1xf32>
    %1096 = vector.extract_strided_slice %1083 {offsets = [0, 2], sizes = [8, 1], strides = [1, 1]} : vector<8x128xf32> to vector<8x1xf32>
    %1097 = math.tanh %1096 : vector<8x1xf32>
    %1098 = vector.extract_strided_slice %1083 {offsets = [0, 3], sizes = [8, 1], strides = [1, 1]} : vector<8x128xf32> to vector<8x1xf32>
    %1099 = arith.negf %1098 : vector<8x1xf32>
    %1100 = math.exp %1099 : vector<8x1xf32>
    %cst_247 = arith.constant 1.000000e+00 : f32
    %1101 = vector.broadcast %cst_247 : f32 to vector<8x1xf32>
    %1102 = arith.addf %1101, %1100 : vector<8x1xf32>
    %1103 = arith.divf %1101, %1102 : vector<8x1xf32>
    %1104 = arith.mulf %1095, %1037 : vector<8x1xf32>
    %1105 = arith.mulf %1089, %1097 : vector<8x1xf32>
    %1106 = arith.addf %1104, %1105 : vector<8x1xf32>
    %1107 = math.tanh %1106 : vector<8x1xf32>
    %1108 = arith.mulf %1103, %1107 : vector<8x1xf32>
    %cst_248 = arith.constant 4.61512041 : f32
    %1109 = vector.broadcast %cst_248 : f32 to vector<8x1xf32>
    %1110 = arith.mulf %1109, %1108 : vector<8x1xf32>
    %1111 = math.exp %1110 : vector<8x1xf32>
    %cst_249 = arith.constant 1.000000e+00 : f32
    %1112 = vector.broadcast %cst_249 : f32 to vector<8x1xf32>
    %1113 = arith.subf %1111, %1112 : vector<8x1xf32>
    %1114 = arith.addf %1045, %1113 : vector<8x1xf32>
    %c8_i32_250 = arith.constant 8 : i32
    %c0_251 = arith.constant 0 : index
    %c0_252 = arith.constant 0 : index
    %c0_253 = arith.constant 0 : index
    %1115 = vector.load %arg1[%c0_251, %c0_252, %c0_253] : memref<8x2x8xf32, #tpu.memory_space<vmem>>, vector<8x2x8xf32>
    %1116 = vector.extract_strided_slice %1115 {offsets = [0, 0, 0], sizes = [8, 2, 3], strides = [1, 1, 1]} : vector<8x2x8xf32> to vector<8x2x3xf32>
    %cst_254 = arith.constant 4.61512041 : f32
    %1117 = vector.broadcast %cst_254 : f32 to vector<8x2x3xf32>
    %1118 = arith.mulf %1117, %1116 : vector<8x2x3xf32>
    %1119 = math.exp %1118 : vector<8x2x3xf32>
    %cst_255 = arith.constant 1.000000e+00 : f32
    %1120 = vector.broadcast %cst_255 : f32 to vector<8x2x3xf32>
    %1121 = arith.subf %1119, %1120 : vector<8x2x3xf32>
    %cst_256 = arith.constant dense<0.000000e+00> : vector<8x2xf32>
    %1122 = vector.multi_reduction <add>, %1121, %cst_256 [2] : vector<8x2x3xf32> to vector<8x2xf32>
    %1123 = vector.shape_cast %1122 : vector<8x2xf32> to vector<8x2x1xf32>
    %cst_257 = arith.constant 3.000000e+00 : f32
    %1124 = vector.broadcast %cst_257 : f32 to vector<8x2x1xf32>
    %1125 = arith.divf %1123, %1124 : vector<8x2x1xf32>
    %cst_258 = arith.constant dense<0.000000e+00> : vector<2x1xf32>
    %1126 = vector.multi_reduction <add>, %1125, %cst_258 [0] : vector<8x2x1xf32> to vector<2x1xf32>
    %1127 = vector.extract_strided_slice %1114 {offsets = [0, 0], sizes = [2, 1], strides = [1, 1]} : vector<8x1xf32> to vector<2x1xf32>
    %1128 = arith.divf %1127, %1126 : vector<2x1xf32>
    %c0_259 = arith.constant 0 : index
    %c0_260 = arith.constant 0 : index
    %1129 = vector.load %arg3[%c0_259, %c0_260] : memref<2x1xf32, #tpu.memory_space<vmem>>, vector<2x1xf32>
    tpu.vector_store %arg3[%c0_259, %c0_260], %1128 {strides = array<i32>} : memref<2x1xf32, #tpu.memory_space<vmem>>, vector<2x1xf32>,
    return
  }
}

</mosaic_0001>

<bundles_post_ra>
// kernel: model_forward.1
= control target key start
LH: loop header
LB: loop body
LE: loop exit
PB: predicated region body
PF: predicated region fallthrough
CT: control target
= control target key end

     0   :  { %8 = vsyncpa [#allocation8], 0  ;;  %s3066_s15 = smov [#allocation7]   ;;  %s3067_s17 = smov 128   ;;  %s3738_s0 = inlined_call_operand.vmem [shape: f32[64,8], index: 0, kind: input, shape index: {}]   ;;  %s3739_s1 = inlined_call_operand.vmem [shape: f32[8,2,8], index: 1, kind: input, shape index: {}]   ;;  %s3740_s2 = inlined_call_operand.hbm [shape: f32[216,128], index: 2, kind: input, shape index: {}]   ;;  %s3741_s3 = inlined_call_operand.vmem [shape: f32[2,1], index: 3, kind: output, shape index: {}]  }
   0x1   :  { %s17_s14 = sshll.u32 %s3740_s2, 4  ;;  %s19_s16 = sshll.u32 %s3066_s15, 4  ;;  %s18_s14 = int_to_ptr.hbm [resolvable:$true] %s17_s14  ;;  %s20_s16 = int_to_ptr.vmem [resolvable:$true] %s19_s16 }
   0x2   :  { %s3068_s18 = smov 8  }
   0x3   :  { %25 = dma.hbm_to_vmem [thread:$0]  %s18_s14, 3456, %s20_s16, [#allocation8], %s3067_s17, %s3067_s17, %s3068_s18  }
   0x4   :  { %3064 = dma.done.wait [#allocation8], 3456  }
   0x5   :  { %3065 = vsyncadd [#allocation8], 4294963840  ;;  %vm65_vm0 = vcmask 64512   ;;  %v31_v0 = vld [vmem:[#allocation7 + $0x8] sm:$0xff]  ;;  %v3104_v1 = vld [vmem:[%s3738_s0] sm:$0xff]  ;;  %v3069_v8 = vmov 0.0  }
   0x6   :  { %154 = vmatpush.msra.mxu1 %v31_v0  ;;  %v3111_v2 = vld [vmem:[%s3738_s0 + $0x8] sm:$0xff]  ;;  %v3117_v4 = vld [vmem:[#allocation7 + $0x40] sm:$0xff]  ;;  %v3120_v5 = vld [vmem:[#allocation7 + $0x38] sm:$0xff]  ;;  %s3071_s7 = smov 32   ;;  %vm189_vm9 = vcmask 261120   ;;  %s3072_s8 = smov 126  }
   0x7   :  { %2633 = vmatmul.msk.f32.vlgmr.msra.gmra.mxu1 %vm65_vm0, %v3104_v1  ;;  %v3115_v3 = vld [vmem:[#allocation7 + $0x48] sm:$0xff]  ;;  %v3126_v6 = vld [vmem:[%s3738_s0 + $0x10] sm:$0xff]  ;;  %v3139_v9 = vld [vmem:[%s3738_s0 + $0x18] sm:$0xff]  ;;  %s3073_s9 = smov 1   ;;  %s3074_s10 = smov 2  }
   0x8   :  { %270 = vmatpush.msra.mxu3 %v3115_v3  ;;  %v3131_v7 = vld [vmem:[#allocation7 + $0x30] sm:$0xff]  ;;  %v3151_v10 = vld [vmem:[%s3738_s0 + $0x20] sm:$0xff]  ;;  %v3160_v11 = vld [vmem:[%s3738_s0 + $0x28] sm:$0xff] }
   0x9   :  { %v3167_v12 = vld [vmem:[%s3738_s0 + $0x30] sm:$0xff]  ;;  %v3174_v13 = vld [vmem:[%s3738_s0 + $0x38] sm:$0xff]  ;;  %s3070_s0 = smov 64   ;;  %v3194_v40 = vld [vmem:[#allocation7 + $0x28] sm:$0xff] }
   0xa   :  { %271 = vmatpush.msra.mxu3 %v3117_v4  ;;  %v3196_v41 = vld [vmem:[#allocation7 + $0x20] sm:$0xff]  ;;  %205 = vmatpush.msra.mxu2 %v3194_v40  ;;  %v3199_v43 = vld [vmem:[#allocation7 + $0x18] sm:$0xff]  ;;  %v3204_v44 = vld [vmem:[#allocation7 + $0x10] sm:$0xff] }
   0xb   :  { %v30_v42 = vld [vmem:[#allocation7] sm:$0xff] }
   0xc   :  { %272 = vmatpush.msra.mxu3 %v3120_v5  ;;  %105 = vmatpush.msra.mxu0 %v30_v42 }
   0xd   :  { %206 = vmatpush.msra.mxu2 %v3196_v41  ;;  %2625 = vmatmul.msk.f32.vlgmr.msra.gmra.mxu0 %vm65_vm0, %v3104_v1 }
   0xe   :  { %273 = vmatpush.msra.mxu3 %v3131_v7 }
   0xf   :  { %2634 = vmatmul.msk.f32.gmra.mxu1 %vm65_vm0, %v3111_v2  ;;  %274 = vmatmul.f32.vlgmr.msra.gmra.mxu3 %v3069_v8 }
  0x10   :  { %406 = vmatpush.msrb.mxu3 %v3115_v3  ;;  %207 = vmatpush.msra.mxu2 %v3199_v43 }
  0x12   :  { %407 = vmatpush.msrb.mxu3 %v3117_v4  ;;  %208 = vmatpush.msra.mxu2 %v3204_v44 }
  0x13   :  { %209 = vmatmul.f32.vlgmr.msra.gmra.mxu2 %v3069_v8 }
  0x14   :  { %408 = vmatpush.msrb.mxu3 %v3120_v5  ;;  %338 = vmatpush.msrb.mxu2 %v3194_v40 }
  0x15   :  { %2626 = vmatmul.msk.f32.gmra.mxu0 %vm65_vm0, %v3111_v2 }
  0x16   :  { %409 = vmatpush.msrb.mxu3 %v3131_v7  ;;  %339 = vmatpush.msrb.mxu2 %v3196_v41 }
  0x17   :  { %2635 = vmatmul.msk.f32.gmra.mxu1 %vm65_vm0, %v3126_v6 }
  0x18   :  { %542 = vmatpush.msra.mxu3 %v3115_v3  ;;  %340 = vmatpush.msrb.mxu2 %v3199_v43 }
  0x1a   :  { %543 = vmatpush.msra.mxu3 %v3117_v4  ;;  %341 = vmatpush.msrb.mxu2 %v3204_v44 }
  0x1c   :  { %544 = vmatpush.msra.mxu3 %v3120_v5  ;;  %474 = vmatpush.msra.mxu2 %v3194_v40 }
  0x1d   :  { %2627 = vmatmul.msk.f32.gmra.mxu0 %vm65_vm0, %v3126_v6 }
  0x1e   :  { %545 = vmatpush.msra.mxu3 %v3131_v7  ;;  %475 = vmatpush.msra.mxu2 %v3196_v41 }
  0x1f   :  { %2636 = vmatmul.msk.f32.gmra.mxu1 %vm65_vm0, %v3139_v9 }
  0x20   :  { %476 = vmatpush.msra.mxu2 %v3199_v43 }
  0x22   :  { %477 = vmatpush.msra.mxu2 %v3204_v44 }
  0x25   :  { %2628 = vmatmul.msk.f32.gmra.mxu0 %vm65_vm0, %v3139_v9 }
  0x27   :  { %2637 = vmatmul.msk.f32.gmra.mxu1 %vm65_vm0, %v3151_v10 }
  0x2d   :  { %2629 = vmatmul.msk.f32.gmra.mxu0 %vm65_vm0, %v3151_v10 }
  0x2f   :  { %2638 = vmatmul.msk.f32.gmra.mxu1 %vm65_vm0, %v3160_v11 }
  0x35   :  { %2630 = vmatmul.msk.f32.gmra.mxu0 %vm65_vm0, %v3160_v11 }
  0x37   :  { %2639 = vmatmul.msk.f32.gmra.mxu1 %vm65_vm0, %v3167_v12 }
  0x3d   :  { %2631 = vmatmul.msk.f32.gmra.mxu0 %vm65_vm0, %v3167_v12 }
  0x3f   :  { %2640 = vmatmul.msk.f32.gmra.mxu1 %vm65_vm0, %v3174_v13 }
  0x45   :  { %2632 = vmatmul.msk.f32.gmra.mxu0 %vm65_vm0, %v3174_v13 }
  0x84   :  { %v3178_v14 = vpop.f32.mrf.mxu1 }
  0x8a   :  { %v107_v49 = vpop.f32.mrf.mxu0 }
  0x8c   :  { %v3180_v15 = vpop.f32.mrf.mxu1 }
  0x92   :  { %v275_v21 = vpop.f32.mrf.mxu3 }
  0x94   :  { %v3182_v16 = vpop.f32.mrf.mxu1 }
  0x96   :  { %v210_v50 = vpop.f32.mrf.mxu2 }
  0x97   :  { %v213_v51 = vadd.f32 %v210_v50, %v107_v49  ;;  %v41_v49 = vld [vmem:[#allocation7 + $0x58] sm:$0xff]  ;;  %v40_v50 = vld [vmem:[#allocation7 + $0x50] sm:$0xff] }
  0x99   :  { %v2641_v55 = vmul.f32 -1.442695, %v213_v51 }
  0x9c   :  { %v3184_v17 = vpop.f32.mrf.mxu1 }
  0xa4   :  { %v3186_v18 = vpop.f32.mrf.mxu1 }
  0xac   :  { %v3188_v19 = vpop.f32.mrf.mxu1 }
  0xb4   :  { %v3190_v20 = vpop.f32.mrf.mxu1 }
  0xbc   :  { %v177_v22 = vpop.f32.mrf.mxu1 }
  0xbd   :  { %v278_v23 = vadd.f32 %v275_v21, %v177_v22 }
  0xbf   :  { %2748 = vtanh.f32 %v278_v23  ;;  %v2642_v25 = vmul.f32 -1.442695, %v278_v23 }
  0xc1   :  { %2750 = vpow2.f32 %v2642_v25 }
  0xc5   :  { %v2749_v24 = vpop.eup %2748 }
  0xc6   :  { %301 = vrot.lane.b32.xlu0 %v2749_v24, %s3070_s0 }
  0xc7   :  { %v2751_v26 = vpop.eup %2750 }
  0xc8   :  { %v282_v27 = vadd.f32 1.0, %v2751_v26 }
  0xca   :  { %2752 = vrcp.f32 %v282_v27  ;;  %v294_v33 = vand.u32 2147483648, %v282_v27  ;;  %vm288_vm2 = vweird.f32 %v282_v27  ;;  %v292_v34 = vand.u32 2147483647, %v282_v27 }
  0xcc   :  { %v295_v36 = vor.u32 1.1754944e-38, %v294_v33  ;;  %vm293_vm4 = vcmp.eq.f32.partialorder %v292_v34, 8.507059e+37 }
  0xd0   :  { %v2753_v28 = vpop.eup %2752 }
  0xd1   :  { %v284_v29 = vmul.f32 %v2753_v28, %v282_v27  ;;  %vm289_vm1 = vweird.f32 %v2753_v28 }
  0xd2   :  { %vm290_vm3 = vmor %vm288_vm2, %vm289_vm1 }
  0xd3   :  { %v285_v30 = vsub.f32 1.0, %v284_v29 }
  0xd5   :  { %v286_v31 = vmul.f32 %v2753_v28, %v285_v30 }
  0xd7   :  { %v287_v32 = vadd.f32 %v2753_v28, %v286_v31 }
  0xd9   :  { %v291_v35 = vsel %vm290_vm3, %v2753_v28, %v287_v32 }
  0xda   :  { %v296_v38 = vsel %vm293_vm4, %v295_v36, %v291_v35 }
  0xdb   :  { %v299_v45 = vmul.f32 0.0, %v296_v38 }
 0x138   :  { %v302_v37 = vpop.permute.xlu0 %301 }
 0x139   :  { %v304_v39 = vmul.f32 %v302_v37, %v296_v38 }
 0x13b   :  { %306 = vrot.lane.b32.xlu0 %v304_v39, %s3071_s7 }
 0x1ad   :  { %v307_v46 = vpop.permute.xlu0 %306 }
 0x1ae   :  { %v3221_v47 = vadd.f32 %v307_v46, %v299_v45  ;;  %v43_v46 = vld [vmem:[#allocation7 + $0x68] sm:$0xff] }
 0x1af   :  { %1389 = vmatpush.msrb.mxu1 %v43_v46 }
 0x1b0   :  { %2754 = vtanh.f32 %v3221_v47 }
 0x1b1   :  { %2756 = vtanh.f32 %v213_v51 }
 0x1b2   :  { %2758 = vpow2.f32 %v2641_v55 }
 0x1b6   :  { %v2755_v48 = vpop.eup %2754 }
 0x1b7   :  { %312 = vrot.lane.b32.xlu1 %v2755_v48, %s3070_s0  ;;  %v2757_v54 = vpop.eup %2756  ;;  %v42_v48 = vld [vmem:[#allocation7 + $0x60] sm:$0xff] }
 0x1b8   :  { %236 = vrot.lane.b32.xlu2 %v2757_v54, %s3070_s0  ;;  %v2759_v56 = vpop.eup %2758  ;;  %1390 = vmatpush.msrb.mxu1 %v42_v48 }
 0x1b9   :  { %v217_v57 = vadd.f32 1.0, %v2759_v56 }
 0x1ba   :  { %1391 = vmatpush.msrb.mxu1 %v41_v49 }
 0x1bb   :  { %2760 = vrcp.f32 %v217_v57  ;;  %v229_v60 = vand.u32 2147483648, %v217_v57  ;;  %vm223_vm5 = vweird.f32 %v217_v57  ;;  %v227_v62 = vand.u32 2147483647, %v217_v57 }
 0x1bc   :  { %1392 = vmatpush.msrb.mxu1 %v40_v50 }
 0x1bd   :  { %v230_v0 = vor.u32 1.1754944e-38, %v229_v60  ;;  %vm228_vm8 = vcmp.eq.f32.partialorder %v227_v62, 8.507059e+37 }
 0x1c1   :  { %v2761_v58 = vpop.eup %2760 }
 0x1c2   :  { %v219_v59 = vmul.f32 %v2761_v58, %v217_v57  ;;  %vm224_vm6 = vweird.f32 %v2761_v58 }
 0x1c3   :  { %vm225_vm7 = vmor %vm223_vm5, %vm224_vm6 }
 0x1c4   :  { %v220_v61 = vsub.f32 1.0, %v219_v59 }
 0x1c6   :  { %v221_v63 = vmul.f32 %v2761_v58, %v220_v61 }
 0x1c8   :  { %v222_v1 = vadd.f32 %v2761_v58, %v221_v63 }
 0x1ca   :  { %v226_v6 = vsel %vm225_vm7, %v2761_v58, %v222_v1  ;;  %v110_v58 = vpop.f32.mrf.mxu0 }
 0x1cb   :  { %v231_v9 = vsel %vm228_vm8, %v230_v0, %v226_v6 }
 0x1cc   :  { %v234_v21 = vmul.f32 0.0, %v231_v9 }
 0x212   :  { %v237_v2 = vpop.permute.xlu2 %236 }
 0x213   :  { %v239_v10 = vmul.f32 %v237_v2, %v231_v9 }
 0x215   :  { %241 = vrot.lane.b32.xlu0 %v239_v10, %s3071_s7 }
 0x229   :  { %v313_v52 = vpop.permute.xlu1 %312 }
 0x22a   :  { %v315_v53 = vmul.f32 %v313_v52, %v296_v38 }
 0x22c   :  { %317 = vrot.lane.b32.xlu1 %v315_v53, %s3071_s7 }
 0x287   :  { %v242_v22 = vpop.permute.xlu0 %241 }
 0x288   :  { %v3245_v23 = vadd.f32 %v242_v22, %v234_v21 }
 0x29e   :  { %v318_v11 = vpop.permute.xlu1 %317 }
 0x29f   :  { %321 = vst.msk [vmem:[#allocation5 + $0x38] sm:$0xff] %vm189_vm9, %v318_v11  ;;  %2645 = vmatmul.msk.f32.vlgmr.msrb.gmra.mxu3 %vm189_vm9, %v318_v11 }
 0x2a0   :  { %678 = vmatpush.msrb.mxu3 %v3115_v3 }
 0x2a2   :  { %679 = vmatpush.msrb.mxu3 %v3117_v4 }
 0x2a4   :  { %680 = vmatpush.msrb.mxu3 %v3120_v5 }
 0x2a6   :  { %681 = vmatpush.msrb.mxu3 %v3131_v7 }
 0x322   :  { %v411_v12 = vpop.f32.mrf.mxu3 }
 0x323   :  { %v414_v13 = vadd.f32 %v411_v12, %v3190_v20 }
 0x325   :  { %2762 = vtanh.f32 %v414_v13  ;;  %v2646_v26 = vmul.f32 -1.442695, %v414_v13 }
 0x326   :  { %2764 = vtanh.f32 %v3245_v23 }
 0x327   :  { %2766 = vpow2.f32 %v2646_v26 }
 0x32b   :  { %v2763_v24 = vpop.eup %2762 }
 0x32c   :  { %437 = vrot.lane.b32.xlu2 %v2763_v24, %s3070_s0  ;;  %v2765_v25 = vpop.eup %2764 }
 0x32d   :  { %v2767_v27 = vpop.eup %2766 }
 0x32e   :  { %v418_v28 = vadd.f32 1.0, %v2767_v27 }
 0x330   :  { %2768 = vrcp.f32 %v418_v28  ;;  %v430_v33 = vand.u32 2147483648, %v418_v28  ;;  %vm424_vm11 = vweird.f32 %v418_v28  ;;  %v428_v34 = vand.u32 2147483647, %v418_v28 }
 0x332   :  { %v431_v36 = vor.u32 1.1754944e-38, %v430_v33  ;;  %vm429_vm13 = vcmp.eq.f32.partialorder %v428_v34, 8.507059e+37 }
 0x334   :  { %247 = vrot.lane.b32.xlu2 %v2765_v25, %s3070_s0 }
 0x336   :  { %v2769_v29 = vpop.eup %2768 }
 0x337   :  { %v420_v20 = vmul.f32 %v2769_v29, %v418_v28  ;;  %vm425_vm10 = vweird.f32 %v2769_v29 }
 0x338   :  { %vm426_vm12 = vmor %vm424_vm11, %vm425_vm10 }
 0x339   :  { %v421_v30 = vsub.f32 1.0, %v420_v20 }
 0x33b   :  { %v422_v31 = vmul.f32 %v2769_v29, %v421_v30 }
 0x33d   :  { %v423_v32 = vadd.f32 %v2769_v29, %v422_v31 }
 0x33f   :  { %v427_v35 = vsel %vm426_vm12, %v2769_v29, %v423_v32 }
 0x340   :  { %v432_v37 = vsel %vm429_vm13, %v431_v36, %v427_v35 }
 0x341   :  { %v435_v51 = vmul.f32 %v432_v37, %v3221_v47 }
 0x386   :  { %v438_v38 = vpop.permute.xlu2 %437 }
 0x387   :  { %v440_v39 = vmul.f32 %v438_v38, %v432_v37 }
 0x389   :  { %442 = vrot.lane.b32.xlu1 %v440_v39, %s3071_s7 }
 0x38e   :  { %v248_v42 = vpop.permute.xlu2 %247 }
 0x38f   :  { %v250_v45 = vmul.f32 %v248_v42, %v231_v9 }
 0x391   :  { %252 = vrot.lane.b32.xlu1 %v250_v45, %s3071_s7 }
 0x3fb   :  { %v443_v52 = vpop.permute.xlu1 %442 }
 0x3fc   :  { %v3253_v53 = vadd.f32 %v443_v52, %v435_v51 }
 0x3fe   :  { %2770 = vtanh.f32 %v3253_v53 }
 0x403   :  { %v253_v54 = vpop.permute.xlu1 %252 }
 0x404   :  { %v2771_v55 = vpop.eup %2770  ;;  %255 = vst.msk [vmem:[#allocation4] sm:$0xff] %vm189_vm9, %v253_v54  ;;  %2643 = vmatmul.msk.f32.vlgmr.msrb.gmra.mxu2 %vm189_vm9, %v253_v54 }
 0x405   :  { %448 = vrot.lane.b32.xlu0 %v2771_v55, %s3070_s0  ;;  %610 = vmatpush.msrb.mxu2 %v3194_v40 }
 0x407   :  { %611 = vmatpush.msrb.mxu2 %v3196_v41 }
 0x409   :  { %612 = vmatpush.msrb.mxu2 %v3199_v43 }
 0x40b   :  { %v1272_v47 = vld [vmem:[#allocation4] sm:$0xff]  ;;  %613 = vmatpush.msrb.mxu2 %v3204_v44 }
 0x40c   :  { %2679 = vmatmul.msk.f32.vlgmr.msrb.gmra.mxu1 %vm189_vm9, %v1272_v47 }
 0x477   :  { %v449_v56 = vpop.permute.xlu0 %448 }
 0x478   :  { %v451_v57 = vmul.f32 %v449_v56, %v432_v37 }
 0x47a   :  { %453 = vrot.lane.b32.xlu2 %v451_v57, %s3071_s7 }
 0x487   :  { %v343_v59 = vpop.f32.mrf.mxu2 }
 0x488   :  { %v346_v60 = vadd.f32 %v343_v59, %v110_v58 }
 0x48a   :  { %2772 = vtanh.f32 %v346_v60  ;;  %v2644_v63 = vmul.f32 -1.442695, %v346_v60  ;;  %v113_v60 = vpop.f32.mrf.mxu0 }
 0x48c   :  { %2774 = vpow2.f32 %v2644_v63 }
 0x490   :  { %v2773_v61 = vpop.eup %2772 }
 0x491   :  { %369 = vrot.lane.b32.xlu0 %v2773_v61, %s3070_s0 }
 0x492   :  { %v2775_v0 = vpop.eup %2774 }
 0x493   :  { %v350_v1 = vadd.f32 1.0, %v2775_v0 }
 0x495   :  { %2776 = vrcp.f32 %v350_v1  ;;  %v362_v12 = vand.u32 2147483648, %v350_v1  ;;  %vm356_vm15 = vweird.f32 %v350_v1  ;;  %v360_v13 = vand.u32 2147483647, %v350_v1 }
 0x497   :  { %v363_v22 = vor.u32 1.1754944e-38, %v362_v12  ;;  %vm361_vm1 = vcmp.eq.f32.partialorder %v360_v13, 8.507059e+37 }
 0x49b   :  { %v2777_v2 = vpop.eup %2776 }
 0x49c   :  { %v352_v6 = vmul.f32 %v2777_v2, %v350_v1  ;;  %vm357_vm14 = vweird.f32 %v2777_v2 }
 0x49d   :  { %vm358_vm0 = vmor %vm356_vm15, %vm357_vm14 }
 0x49e   :  { %v353_v9 = vsub.f32 1.0, %v352_v6 }
 0x4a0   :  { %v354_v10 = vmul.f32 %v2777_v2, %v353_v9 }
 0x4a2   :  { %v355_v11 = vadd.f32 %v2777_v2, %v354_v10 }
 0x4a4   :  { %v359_v21 = vsel %vm358_vm0, %v2777_v2, %v355_v11 }
 0x4a5   :  { %v364_v25 = vsel %vm361_vm1, %v363_v22, %v359_v21 }
 0x4a6   :  { %v367_v29 = vmul.f32 %v364_v25, %v3245_v23 }
 0x4d4   :  { %v454_v62 = vpop.permute.xlu2 %453 }
 0x4d5   :  { %457 = vst.msk [vmem:[#allocation5 + $0x30] sm:$0xff] %vm189_vm9, %v454_v62  ;;  %2649 = vmatmul.msk.f32.vlgmr.msra.gmra.mxu3 %vm189_vm9, %v454_v62 }
 0x4d6   :  { %814 = vmatpush.msra.mxu3 %v3115_v3 }
 0x4d8   :  { %815 = vmatpush.msra.mxu3 %v3117_v4 }
 0x4da   :  { %816 = vmatpush.msra.mxu3 %v3120_v5 }
 0x4dc   :  { %817 = vmatpush.msra.mxu3 %v3131_v7 }
 0x503   :  { %v370_v24 = vpop.permute.xlu0 %369 }
 0x504   :  { %v372_v26 = vmul.f32 %v370_v24, %v364_v25 }
 0x506   :  { %374 = vrot.lane.b32.xlu2 %v372_v26, %s3071_s7 }
 0x558   :  { %v547_v27 = vpop.f32.mrf.mxu3 }
 0x559   :  { %v550_v28 = vadd.f32 %v547_v27, %v3188_v19 }
 0x55b   :  { %2778 = vtanh.f32 %v550_v28  ;;  %v2650_v33 = vmul.f32 -1.442695, %v550_v28 }
 0x560   :  { %v375_v20 = vpop.permute.xlu2 %374 }
 0x561   :  { %v2779_v30 = vpop.eup %2778  ;;  %v3275_v31 = vadd.f32 %v375_v20, %v367_v29 }
 0x562   :  { %573 = vrot.lane.b32.xlu1 %v2779_v30, %s3070_s0 }
 0x563   :  { %2780 = vtanh.f32 %v3275_v31 }
 0x564   :  { %2782 = vpow2.f32 %v2650_v33 }
 0x569   :  { %v2781_v32 = vpop.eup %2780 }
 0x56a   :  { %380 = vrot.lane.b32.xlu1 %v2781_v32, %s3070_s0  ;;  %v2783_v34 = vpop.eup %2782 }
 0x56b   :  { %v554_v35 = vadd.f32 1.0, %v2783_v34 }
 0x56d   :  { %2784 = vrcp.f32 %v554_v35  ;;  %v566_v39 = vand.u32 2147483648, %v554_v35  ;;  %vm560_vm3 = vweird.f32 %v554_v35  ;;  %v564_v42 = vand.u32 2147483647, %v554_v35 }
 0x56f   :  { %v567_v46 = vor.u32 1.1754944e-38, %v566_v39  ;;  %vm565_vm5 = vcmp.eq.f32.partialorder %v564_v42, 8.507059e+37 }
 0x573   :  { %v2785_v19 = vpop.eup %2784 }
 0x574   :  { %v556_v36 = vmul.f32 %v2785_v19, %v554_v35  ;;  %vm561_vm2 = vweird.f32 %v2785_v19 }
 0x575   :  { %vm562_vm4 = vmor %vm560_vm3, %vm561_vm2 }
 0x576   :  { %v557_v37 = vsub.f32 1.0, %v556_v36 }
 0x578   :  { %v558_v23 = vmul.f32 %v2785_v19, %v557_v37 }
 0x57a   :  { %v559_v38 = vadd.f32 %v2785_v19, %v558_v23 }
 0x57c   :  { %v563_v45 = vsel %vm562_vm4, %v2785_v19, %v559_v38 }
 0x57d   :  { %v568_v49 = vsel %vm565_vm5, %v567_v46, %v563_v45 }
 0x57e   :  { %v571_v54 = vmul.f32 %v568_v49, %v3253_v53 }
 0x5d4   :  { %v574_v48 = vpop.permute.xlu1 %573 }
 0x5d5   :  { %v576_v50 = vmul.f32 %v574_v48, %v568_v49 }
 0x5d7   :  { %578 = vrot.lane.b32.xlu0 %v576_v50, %s3071_s7 }
 0x5dc   :  { %v381_v51 = vpop.permute.xlu1 %380 }
 0x5dd   :  { %v383_v52 = vmul.f32 %v381_v51, %v364_v25 }
 0x5df   :  { %385 = vrot.lane.b32.xlu0 %v383_v52, %s3071_s7 }
 0x649   :  { %v579_v55 = vpop.permute.xlu0 %578 }
 0x64a   :  { %v3283_v47 = vadd.f32 %v579_v55, %v571_v54 }
 0x64c   :  { %2786 = vtanh.f32 %v3283_v47 }
 0x651   :  { %v386_v56 = vpop.permute.xlu0 %385 }
 0x652   :  { %v2787_v57 = vpop.eup %2786  ;;  %389 = vst.msk [vmem:[#allocation4 + $0x8] sm:$0xff] %vm189_vm9, %v386_v56  ;;  %2647 = vmatmul.msk.f32.vlgmr.msra.gmra.mxu2 %vm189_vm9, %v386_v56 }
 0x653   :  { %584 = vrot.lane.b32.xlu2 %v2787_v57, %s3070_s0  ;;  %746 = vmatpush.msra.mxu2 %v3194_v40 }
 0x655   :  { %747 = vmatpush.msra.mxu2 %v3196_v41 }
 0x657   :  { %748 = vmatpush.msra.mxu2 %v3199_v43 }
 0x659   :  { %v1273_v53 = vld [vmem:[#allocation4 + $0x8] sm:$0xff]  ;;  %749 = vmatpush.msra.mxu2 %v3204_v44 }
 0x65a   :  { %2680 = vmatmul.msk.f32.gmra.mxu1 %vm189_vm9, %v1273_v53 }
 0x6ad   :  { %v585_v58 = vpop.permute.xlu2 %584 }
 0x6ae   :  { %v587_v59 = vmul.f32 %v585_v58, %v568_v49 }
 0x6b0   :  { %589 = vrot.lane.b32.xlu1 %v587_v59, %s3071_s7 }
 0x6d5   :  { %v479_v61 = vpop.f32.mrf.mxu2 }
 0x6d6   :  { %v482_v62 = vadd.f32 %v479_v61, %v113_v60  ;;  %v116_v61 = vpop.f32.mrf.mxu0 }
 0x6d8   :  { %2788 = vtanh.f32 %v482_v62  ;;  %v2648_v0 = vmul.f32 -1.442695, %v482_v62 }
 0x6da   :  { %2790 = vpow2.f32 %v2648_v0 }
 0x6de   :  { %v2789_v63 = vpop.eup %2788 }
 0x6df   :  { %505 = vrot.lane.b32.xlu2 %v2789_v63, %s3070_s0 }
 0x6e0   :  { %v2791_v1 = vpop.eup %2790 }
 0x6e1   :  { %v486_v2 = vadd.f32 1.0, %v2791_v1 }
 0x6e3   :  { %2792 = vrcp.f32 %v486_v2  ;;  %v498_v21 = vand.u32 2147483648, %v486_v2  ;;  %vm492_vm7 = vweird.f32 %v486_v2  ;;  %v496_v22 = vand.u32 2147483647, %v486_v2 }
 0x6e5   :  { %v499_v25 = vor.u32 1.1754944e-38, %v498_v21  ;;  %vm497_vm10 = vcmp.eq.f32.partialorder %v496_v22, 8.507059e+37 }
 0x6e9   :  { %v2793_v9 = vpop.eup %2792 }
 0x6ea   :  { %v488_v10 = vmul.f32 %v2793_v9, %v486_v2  ;;  %vm493_vm6 = vweird.f32 %v2793_v9 }
 0x6eb   :  { %vm494_vm8 = vmor %vm492_vm7, %vm493_vm6 }
 0x6ec   :  { %v489_v11 = vsub.f32 1.0, %v488_v10 }
 0x6ee   :  { %v490_v12 = vmul.f32 %v2793_v9, %v489_v11 }
 0x6f0   :  { %v491_v13 = vadd.f32 %v2793_v9, %v490_v12 }
 0x6f2   :  { %v495_v24 = vsel %vm494_vm8, %v2793_v9, %v491_v13 }
 0x6f3   :  { %v500_v27 = vsel %vm497_vm10, %v499_v25, %v495_v24 }
 0x6f4   :  { %v503_v30 = vmul.f32 %v500_v27, %v3275_v31 }
 0x722   :  { %v590_v6 = vpop.permute.xlu1 %589 }
 0x723   :  { %593 = vst.msk [vmem:[#allocation5 + $0x28] sm:$0xff] %vm189_vm9, %v590_v6  ;;  %2653 = vmatmul.msk.f32.vlgmr.msrb.gmra.mxu3 %vm189_vm9, %v590_v6 }
 0x724   :  { %950 = vmatpush.msrb.mxu3 %v3115_v3 }
 0x726   :  { %951 = vmatpush.msrb.mxu3 %v3117_v4 }
 0x728   :  { %952 = vmatpush.msrb.mxu3 %v3120_v5 }
 0x72a   :  { %953 = vmatpush.msrb.mxu3 %v3131_v7 }
 0x739   :  { %v506_v26 = vpop.permute.xlu2 %505 }
 0x73a   :  { %v508_v28 = vmul.f32 %v506_v26, %v500_v27 }
 0x73c   :  { %510 = vrot.lane.b32.xlu1 %v508_v28, %s3071_s7 }
 0x7a6   :  { %v683_v29 = vpop.f32.mrf.mxu3 }
 0x7a7   :  { %v686_v20 = vadd.f32 %v683_v29, %v3186_v18 }
 0x7a9   :  { %2794 = vtanh.f32 %v686_v20  ;;  %v2654_v19 = vmul.f32 -1.442695, %v686_v20 }
 0x7ae   :  { %v511_v32 = vpop.permute.xlu1 %510 }
 0x7af   :  { %v2795_v33 = vpop.eup %2794  ;;  %v3305_v34 = vadd.f32 %v511_v32, %v503_v30 }
 0x7b0   :  { %709 = vrot.lane.b32.xlu0 %v2795_v33, %s3070_s0 }
 0x7b1   :  { %2796 = vtanh.f32 %v3305_v34 }
 0x7b2   :  { %2798 = vpow2.f32 %v2654_v19 }
 0x7b7   :  { %v2797_v35 = vpop.eup %2796 }
 0x7b8   :  { %516 = vrot.lane.b32.xlu0 %v2797_v35, %s3070_s0  ;;  %v2799_v36 = vpop.eup %2798 }
 0x7b9   :  { %v690_v37 = vadd.f32 1.0, %v2799_v36 }
 0x7bb   :  { %2800 = vrcp.f32 %v690_v37  ;;  %v702_v42 = vand.u32 2147483648, %v690_v37  ;;  %vm696_vm12 = vweird.f32 %v690_v37  ;;  %v700_v45 = vand.u32 2147483647, %v690_v37 }
 0x7bd   :  { %v703_v48 = vor.u32 1.1754944e-38, %v702_v42  ;;  %vm701_vm14 = vcmp.eq.f32.partialorder %v700_v45, 8.507059e+37 }
 0x7c1   :  { %v2801_v18 = vpop.eup %2800 }
 0x7c2   :  { %v692_v23 = vmul.f32 %v2801_v18, %v690_v37  ;;  %vm697_vm11 = vweird.f32 %v2801_v18 }
 0x7c3   :  { %vm698_vm13 = vmor %vm696_vm12, %vm697_vm11 }
 0x7c4   :  { %v693_v38 = vsub.f32 1.0, %v692_v23 }
 0x7c6   :  { %v694_v31 = vmul.f32 %v2801_v18, %v693_v38 }
 0x7c8   :  { %v695_v39 = vadd.f32 %v2801_v18, %v694_v31 }
 0x7ca   :  { %v699_v46 = vsel %vm698_vm13, %v2801_v18, %v695_v39 }
 0x7cb   :  { %v704_v50 = vsel %vm701_vm14, %v703_v48, %v699_v46 }
 0x7cc   :  { %v707_v55 = vmul.f32 %v704_v50, %v3283_v47 }
 0x822   :  { %v710_v49 = vpop.permute.xlu0 %709 }
 0x823   :  { %v712_v51 = vmul.f32 %v710_v49, %v704_v50 }
 0x825   :  { %714 = vrot.lane.b32.xlu2 %v712_v51, %s3071_s7 }
 0x82a   :  { %v517_v52 = vpop.permute.xlu0 %516 }
 0x82b   :  { %v519_v54 = vmul.f32 %v517_v52, %v500_v27 }
 0x82d   :  { %521 = vrot.lane.b32.xlu2 %v519_v54, %s3071_s7 }
 0x87f   :  { %v715_v56 = vpop.permute.xlu2 %714 }
 0x880   :  { %v3313_v57 = vadd.f32 %v715_v56, %v707_v55 }
 0x882   :  { %2802 = vtanh.f32 %v3313_v57 }
 0x887   :  { %v522_v53 = vpop.permute.xlu2 %521 }
 0x888   :  { %v2803_v58 = vpop.eup %2802  ;;  %525 = vst.msk [vmem:[#allocation4 + $0x10] sm:$0xff] %vm189_vm9, %v522_v53  ;;  %2651 = vmatmul.msk.f32.vlgmr.msrb.gmra.mxu2 %vm189_vm9, %v522_v53 }
 0x889   :  { %720 = vrot.lane.b32.xlu1 %v2803_v58, %s3070_s0  ;;  %882 = vmatpush.msrb.mxu2 %v3194_v40 }
 0x88b   :  { %883 = vmatpush.msrb.mxu2 %v3196_v41 }
 0x88d   :  { %884 = vmatpush.msrb.mxu2 %v3199_v43 }
 0x88f   :  { %v1274_v47 = vld [vmem:[#allocation4 + $0x10] sm:$0xff]  ;;  %885 = vmatpush.msrb.mxu2 %v3204_v44 }
 0x890   :  { %2681 = vmatmul.msk.f32.gmra.mxu1 %vm189_vm9, %v1274_v47 }
 0x8fb   :  { %v721_v59 = vpop.permute.xlu1 %720 }
 0x8fc   :  { %v723_v60 = vmul.f32 %v721_v59, %v704_v50 }
 0x8fe   :  { %725 = vrot.lane.b32.xlu0 %v723_v60, %s3071_s7 }
 0x90b   :  { %v615_v62 = vpop.f32.mrf.mxu2 }
 0x90c   :  { %v618_v63 = vadd.f32 %v615_v62, %v116_v61  ;;  %v119_v61 = vpop.f32.mrf.mxu0 }
 0x90e   :  { %2804 = vtanh.f32 %v618_v63  ;;  %v2652_v1 = vmul.f32 -1.442695, %v618_v63 }
 0x910   :  { %2806 = vpow2.f32 %v2652_v1 }
 0x914   :  { %v2805_v0 = vpop.eup %2804 }
 0x915   :  { %641 = vrot.lane.b32.xlu1 %v2805_v0, %s3070_s0 }
 0x916   :  { %v2807_v2 = vpop.eup %2806 }
 0x917   :  { %v622_v6 = vadd.f32 1.0, %v2807_v2 }
 0x919   :  { %2808 = vrcp.f32 %v622_v6  ;;  %v634_v22 = vand.u32 2147483648, %v622_v6  ;;  %vm628_vm0 = vweird.f32 %v622_v6  ;;  %v632_v24 = vand.u32 2147483647, %v622_v6 }
 0x91b   :  { %v635_v26 = vor.u32 1.1754944e-38, %v634_v22  ;;  %vm633_vm2 = vcmp.eq.f32.partialorder %v632_v24, 8.507059e+37 }
 0x91f   :  { %v2809_v10 = vpop.eup %2808 }
 0x920   :  { %v624_v11 = vmul.f32 %v2809_v10, %v622_v6  ;;  %vm629_vm15 = vweird.f32 %v2809_v10 }
 0x921   :  { %vm630_vm1 = vmor %vm628_vm0, %vm629_vm15 }
 0x922   :  { %v625_v12 = vsub.f32 1.0, %v624_v11 }
 0x924   :  { %v626_v13 = vmul.f32 %v2809_v10, %v625_v12 }
 0x926   :  { %v627_v21 = vadd.f32 %v2809_v10, %v626_v13 }
 0x928   :  { %v631_v25 = vsel %vm630_vm1, %v2809_v10, %v627_v21 }
 0x929   :  { %v636_v28 = vsel %vm633_vm2, %v635_v26, %v631_v25 }
 0x92a   :  { %v639_v32 = vmul.f32 %v636_v28, %v3305_v34 }
 0x970   :  { %v726_v9 = vpop.permute.xlu0 %725 }
 0x971   :  { %729 = vst.msk [vmem:[#allocation5 + $0x20] sm:$0xff] %vm189_vm9, %v726_v9  ;;  %2657 = vmatmul.msk.f32.vlgmr.msra.gmra.mxu3 %vm189_vm9, %v726_v9 }
 0x972   :  { %1086 = vmatpush.msra.mxu3 %v3115_v3 }
 0x974   :  { %1087 = vmatpush.msra.mxu3 %v3117_v4 }
 0x976   :  { %1088 = vmatpush.msra.mxu3 %v3120_v5 }
 0x978   :  { %1089 = vmatpush.msra.mxu3 %v3131_v7 }
 0x987   :  { %v642_v27 = vpop.permute.xlu1 %641 }
 0x988   :  { %v644_v29 = vmul.f32 %v642_v27, %v636_v28 }
 0x98a   :  { %646 = vrot.lane.b32.xlu0 %v644_v29, %s3071_s7 }
 0x9f4   :  { %v819_v20 = vpop.f32.mrf.mxu3 }
 0x9f5   :  { %v822_v30 = vadd.f32 %v819_v20, %v3184_v17 }
 0x9f7   :  { %2810 = vtanh.f32 %v822_v30  ;;  %v2658_v37 = vmul.f32 -1.442695, %v822_v30 }
 0x9fc   :  { %v647_v33 = vpop.permute.xlu0 %646 }
 0x9fd   :  { %v2811_v35 = vpop.eup %2810  ;;  %v3335_v19 = vadd.f32 %v647_v33, %v639_v32 }
 0x9fe   :  { %845 = vrot.lane.b32.xlu2 %v2811_v35, %s3070_s0 }
 0x9ff   :  { %2812 = vtanh.f32 %v3335_v19 }
 0xa00   :  { %2814 = vpow2.f32 %v2658_v37 }
 0xa05   :  { %v2813_v36 = vpop.eup %2812 }
 0xa06   :  { %652 = vrot.lane.b32.xlu2 %v2813_v36, %s3070_s0  ;;  %v2815_v18 = vpop.eup %2814 }
 0xa07   :  { %v826_v23 = vadd.f32 1.0, %v2815_v18 }
 0xa09   :  { %2816 = vrcp.f32 %v826_v23  ;;  %v838_v42 = vand.u32 2147483648, %v826_v23  ;;  %vm832_vm4 = vweird.f32 %v826_v23  ;;  %v836_v45 = vand.u32 2147483647, %v826_v23 }
 0xa0b   :  { %v839_v48 = vor.u32 1.1754944e-38, %v838_v42  ;;  %vm837_vm6 = vcmp.eq.f32.partialorder %v836_v45, 8.507059e+37 }
 0xa0f   :  { %v2817_v17 = vpop.eup %2816 }
 0xa10   :  { %v828_v38 = vmul.f32 %v2817_v17, %v826_v23  ;;  %vm833_vm3 = vweird.f32 %v2817_v17 }
 0xa11   :  { %vm834_vm5 = vmor %vm832_vm4, %vm833_vm3 }
 0xa12   :  { %v829_v31 = vsub.f32 1.0, %v828_v38 }
 0xa14   :  { %v830_v34 = vmul.f32 %v2817_v17, %v829_v31 }
 0xa16   :  { %v831_v39 = vadd.f32 %v2817_v17, %v830_v34 }
 0xa18   :  { %v835_v46 = vsel %vm834_vm5, %v2817_v17, %v831_v39 }
 0xa19   :  { %v840_v50 = vsel %vm837_vm6, %v839_v48, %v835_v46 }
 0xa1a   :  { %v843_v55 = vmul.f32 %v840_v50, %v3313_v57 }
 0xa58   :  { %v846_v49 = vpop.permute.xlu2 %845 }
 0xa59   :  { %v848_v51 = vmul.f32 %v846_v49, %v840_v50 }
 0xa5b   :  { %850 = vrot.lane.b32.xlu1 %v848_v51, %s3071_s7 }
 0xa60   :  { %v653_v52 = vpop.permute.xlu2 %652 }
 0xa61   :  { %v655_v54 = vmul.f32 %v653_v52, %v636_v28 }
 0xa63   :  { %657 = vrot.lane.b32.xlu1 %v655_v54, %s3071_s7 }
 0xacd   :  { %v851_v56 = vpop.permute.xlu1 %850 }
 0xace   :  { %v3343_v53 = vadd.f32 %v851_v56, %v843_v55 }
 0xad0   :  { %2818 = vtanh.f32 %v3343_v53 }
 0xad5   :  { %v658_v58 = vpop.permute.xlu1 %657 }
 0xad6   :  { %v2819_v47 = vpop.eup %2818  ;;  %661 = vst.msk [vmem:[#allocation4 + $0x18] sm:$0xff] %vm189_vm9, %v658_v58  ;;  %2655 = vmatmul.msk.f32.vlgmr.msra.gmra.mxu2 %vm189_vm9, %v658_v58  ;;  %v122_v58 = vpop.f32.mrf.mxu0 }
 0xad7   :  { %856 = vrot.lane.b32.xlu0 %v2819_v47, %s3070_s0  ;;  %1018 = vmatpush.msra.mxu2 %v3194_v40 }
 0xad9   :  { %1019 = vmatpush.msra.mxu2 %v3196_v41 }
 0xadb   :  { %1020 = vmatpush.msra.mxu2 %v3199_v43 }
 0xadd   :  { %v1275_v57 = vld [vmem:[#allocation4 + $0x18] sm:$0xff]  ;;  %1021 = vmatpush.msra.mxu2 %v3204_v44 }
 0xade   :  { %2682 = vmatmul.msk.f32.gmra.mxu1 %vm189_vm9, %v1275_v57 }
 0xb49   :  { %v857_v59 = vpop.permute.xlu0 %856 }
 0xb4a   :  { %v859_v60 = vmul.f32 %v857_v59, %v840_v50 }
 0xb4c   :  { %861 = vrot.lane.b32.xlu2 %v859_v60, %s3071_s7 }
 0xb59   :  { %v751_v62 = vpop.f32.mrf.mxu2 }
 0xb5a   :  { %v754_v63 = vadd.f32 %v751_v62, %v119_v61 }
 0xb5c   :  { %2820 = vtanh.f32 %v754_v63  ;;  %v2656_v2 = vmul.f32 -1.442695, %v754_v63 }
 0xb5e   :  { %2822 = vpow2.f32 %v2656_v2 }
 0xb62   :  { %v2821_v0 = vpop.eup %2820 }
 0xb63   :  { %777 = vrot.lane.b32.xlu0 %v2821_v0, %s3070_s0 }
 0xb64   :  { %v2823_v6 = vpop.eup %2822 }
 0xb65   :  { %v758_v9 = vadd.f32 1.0, %v2823_v6 }
 0xb67   :  { %2824 = vrcp.f32 %v758_v9  ;;  %v770_v22 = vand.u32 2147483648, %v758_v9  ;;  %vm764_vm8 = vweird.f32 %v758_v9  ;;  %v768_v24 = vand.u32 2147483647, %v758_v9 }
 0xb69   :  { %vm769_vm11 = vcmp.eq.f32.partialorder %v768_v24, 8.507059e+37 }
 0xb6d   :  { %v2825_v10 = vpop.eup %2824 }
 0xb6e   :  { %v760_v11 = vmul.f32 %v2825_v10, %v758_v9  ;;  %vm765_vm7 = vweird.f32 %v2825_v10 }
 0xb6f   :  { %vm766_vm10 = vmor %vm764_vm8, %vm765_vm7 }
 0xb70   :  { %v761_v12 = vsub.f32 1.0, %v760_v11 }
 0xb72   :  { %v762_v13 = vmul.f32 %v2825_v10, %v761_v12 }
 0xb74   :  { %v763_v21 = vadd.f32 %v2825_v10, %v762_v13 }
 0xba6   :  { %v862_v1 = vpop.permute.xlu2 %861 }
 0xba7   :  { %865 = vst.msk [vmem:[#allocation5 + $0x18] sm:$0xff] %vm189_vm9, %v862_v1  ;;  %2661 = vmatmul.msk.f32.vlgmr.msrb.gmra.mxu3 %vm189_vm9, %v862_v1 }
 0xba8   :  { %1221 = vmatpush.msrb.mxu3 %v3115_v3  ;;  %v767_v3 = vsel %vm766_vm10, %v2825_v10, %v763_v21 }
 0xbaa   :  { %1222 = vmatpush.msrb.mxu3 %v3117_v4  ;;  %v771_v4 = vor.u32 1.1754944e-38, %v770_v22 }
 0xbac   :  { %1223 = vmatpush.msrb.mxu3 %v3120_v5  ;;  %v772_v5 = vsel %vm769_vm11, %v771_v4, %v767_v3 }
 0xbad   :  { %v775_v28 = vmul.f32 %v772_v5, %v3335_v19 }
 0xbae   :  { %1224 = vmatpush.msrb.mxu3 %v3131_v7 }
 0xbd5   :  { %v778_v25 = vpop.permute.xlu0 %777 }
 0xbd6   :  { %v780_v26 = vmul.f32 %v778_v25, %v772_v5 }
 0xbd8   :  { %782 = vrot.lane.b32.xlu2 %v780_v26, %s3071_s7 }
 0xc2a   :  { %v955_v7 = vpop.f32.mrf.mxu3 }
 0xc2b   :  { %v958_v27 = vadd.f32 %v955_v7, %v3182_v16 }
 0xc2d   :  { %2826 = vtanh.f32 %v958_v27  ;;  %v2662_v33 = vmul.f32 -1.442695, %v958_v27 }
 0xc32   :  { %v783_v29 = vpop.permute.xlu2 %782 }
 0xc33   :  { %v2827_v20 = vpop.eup %2826  ;;  %v3365_v30 = vadd.f32 %v783_v29, %v775_v28 }
 0xc34   :  { %981 = vrot.lane.b32.xlu1 %v2827_v20, %s3070_s0 }
 0xc35   :  { %2828 = vtanh.f32 %v3365_v30 }
 0xc36   :  { %2830 = vpow2.f32 %v2662_v33 }
 0xc3b   :  { %v2829_v32 = vpop.eup %2828 }
 0xc3c   :  { %788 = vrot.lane.b32.xlu1 %v2829_v32, %s3070_s0  ;;  %v2831_v35 = vpop.eup %2830 }
 0xc3d   :  { %v962_v36 = vadd.f32 1.0, %v2831_v35 }
 0xc3f   :  { %2832 = vrcp.f32 %v962_v36  ;;  %v974_v17 = vand.u32 2147483648, %v962_v36  ;;  %vm968_vm13 = vweird.f32 %v962_v36  ;;  %v972_v38 = vand.u32 2147483647, %v962_v36 }
 0xc41   :  { %v975_v34 = vor.u32 1.1754944e-38, %v974_v17  ;;  %vm973_vm15 = vcmp.eq.f32.partialorder %v972_v38, 8.507059e+37 }
 0xc45   :  { %v2833_v16 = vpop.eup %2832 }
 0xc46   :  { %v964_v37 = vmul.f32 %v2833_v16, %v962_v36  ;;  %vm969_vm12 = vweird.f32 %v2833_v16 }
 0xc47   :  { %vm970_vm14 = vmor %vm968_vm13, %vm969_vm12 }
 0xc48   :  { %v965_v18 = vsub.f32 1.0, %v964_v37 }
 0xc4a   :  { %v966_v19 = vmul.f32 %v2833_v16, %v965_v18 }
 0xc4c   :  { %v967_v23 = vadd.f32 %v2833_v16, %v966_v19 }
 0xc4e   :  { %v971_v31 = vsel %vm970_vm14, %v2833_v16, %v967_v23 }
 0xc4f   :  { %v976_v42 = vsel %vm973_vm15, %v975_v34, %v971_v31 }
 0xc50   :  { %v979_v49 = vmul.f32 %v976_v42, %v3343_v53 }
 0xca6   :  { %v982_v39 = vpop.permute.xlu1 %981 }
 0xca7   :  { %v984_v45 = vmul.f32 %v982_v39, %v976_v42 }
 0xca9   :  { %986 = vrot.lane.b32.xlu0 %v984_v45, %s3071_s7 }
 0xcae   :  { %v789_v46 = vpop.permute.xlu1 %788 }
 0xcaf   :  { %v791_v48 = vmul.f32 %v789_v46, %v772_v5  ;;  %v125_v46 = vpop.f32.mrf.mxu0 }
 0xcb1   :  { %793 = vrot.lane.b32.xlu0 %v791_v48, %s3071_s7 }
 0xd1b   :  { %v987_v50 = vpop.permute.xlu0 %986 }
 0xd1c   :  { %v3373_v51 = vadd.f32 %v987_v50, %v979_v49 }
 0xd1e   :  { %2834 = vtanh.f32 %v3373_v51 }
 0xd23   :  { %v794_v52 = vpop.permute.xlu0 %793 }
 0xd24   :  { %v2835_v54 = vpop.eup %2834  ;;  %797 = vst.msk [vmem:[#allocation4 + $0x20] sm:$0xff] %vm189_vm9, %v794_v52  ;;  %2659 = vmatmul.msk.f32.vlgmr.msrb.gmra.mxu2 %vm189_vm9, %v794_v52 }
 0xd25   :  { %992 = vrot.lane.b32.xlu2 %v2835_v54, %s3070_s0  ;;  %1154 = vmatpush.msrb.mxu2 %v3194_v40 }
 0xd27   :  { %1155 = vmatpush.msrb.mxu2 %v3196_v41 }
 0xd29   :  { %1156 = vmatpush.msrb.mxu2 %v3199_v43 }
 0xd2b   :  { %v1276_v55 = vld [vmem:[#allocation4 + $0x20] sm:$0xff]  ;;  %1157 = vmatpush.msrb.mxu2 %v3204_v44 }
 0xd2c   :  { %2683 = vmatmul.msk.f32.gmra.mxu1 %vm189_vm9, %v1276_v55 }
 0xd7f   :  { %v993_v56 = vpop.permute.xlu2 %992 }
 0xd80   :  { %v995_v53 = vmul.f32 %v993_v56, %v976_v42 }
 0xd82   :  { %997 = vrot.lane.b32.xlu1 %v995_v53, %s3071_s7 }
 0xda7   :  { %v887_v47 = vpop.f32.mrf.mxu2 }
 0xda8   :  { %v890_v57 = vadd.f32 %v887_v47, %v122_v58 }
 0xdaa   :  { %2836 = vtanh.f32 %v890_v57  ;;  %v2660_v40 = vmul.f32 -1.442695, %v890_v57 }
 0xdac   :  { %2838 = vpow2.f32 %v2660_v40 }
 0xdb0   :  { %v2837_v59 = vpop.eup %2836 }
 0xdb1   :  { %913 = vrot.lane.b32.xlu2 %v2837_v59, %s3070_s0 }
 0xdb2   :  { %v2839_v41 = vpop.eup %2838 }
 0xdb3   :  { %v894_v43 = vadd.f32 1.0, %v2839_v41 }
 0xdb5   :  { %2840 = vrcp.f32 %v894_v43  ;;  %v906_v1 = vand.u32 2147483648, %v894_v43  ;;  %vm900_vm1 = vweird.f32 %v894_v43  ;;  %v904_v2 = vand.u32 2147483647, %v894_v43 }
 0xdb7   :  { %v907_v9 = vor.u32 1.1754944e-38, %v906_v1  ;;  %vm905_vm3 = vcmp.eq.f32.partialorder %v904_v2, 8.507059e+37 }
 0xdbb   :  { %v2841_v44 = vpop.eup %2840 }
 0xdbc   :  { %v896_v61 = vmul.f32 %v2841_v44, %v894_v43  ;;  %vm901_vm0 = vweird.f32 %v2841_v44 }
 0xdbd   :  { %vm902_vm2 = vmor %vm900_vm1, %vm901_vm0 }
 0xdbe   :  { %v897_v62 = vsub.f32 1.0, %v896_v61 }
 0xdc0   :  { %v898_v63 = vmul.f32 %v2841_v44, %v897_v62 }
 0xdc2   :  { %v899_v0 = vadd.f32 %v2841_v44, %v898_v63 }
 0xdc4   :  { %v903_v6 = vsel %vm902_vm2, %v2841_v44, %v899_v0 }
 0xdc5   :  { %v908_v11 = vsel %vm905_vm3, %v907_v9, %v903_v6 }
 0xdc6   :  { %v911_v22 = vmul.f32 %v908_v11, %v3365_v30 }
 0xdf4   :  { %v998_v60 = vpop.permute.xlu1 %997 }
 0xdf5   :  { %1001 = vst.msk [vmem:[#allocation5 + $0x10] sm:$0xff] %vm189_vm9, %v998_v60  ;;  %2665 = vmatmul.msk.f32.vlgmr.msra.gmra.mxu3 %vm189_vm9, %v998_v60 }
 0xe0b   :  { %v914_v10 = vpop.permute.xlu2 %913 }
 0xe0c   :  { %v916_v12 = vmul.f32 %v914_v10, %v908_v11 }
 0xe0e   :  { %918 = vrot.lane.b32.xlu1 %v916_v12, %s3071_s7 }
 0xe78   :  { %v1091_v13 = vpop.f32.mrf.mxu3 }
 0xe79   :  { %v1094_v21 = vadd.f32 %v1091_v13, %v3180_v15 }
 0xe7b   :  { %2842 = vtanh.f32 %v1094_v21  ;;  %v2666_v5 = vmul.f32 -1.442695, %v1094_v21 }
 0xe80   :  { %v919_v24 = vpop.permute.xlu1 %918 }
 0xe81   :  { %v2843_v3 = vpop.eup %2842  ;;  %v3391_v4 = vadd.f32 %v919_v24, %v911_v22 }
 0xe82   :  { %1117 = vrot.lane.b32.xlu0 %v2843_v3, %s3070_s0 }
 0xe83   :  { %2844 = vtanh.f32 %v3391_v4 }
 0xe84   :  { %2846 = vpow2.f32 %v2666_v5 }
 0xe89   :  { %v2845_v25 = vpop.eup %2844 }
 0xe8a   :  { %924 = vrot.lane.b32.xlu0 %v2845_v25, %s3070_s0  ;;  %v2847_v26 = vpop.eup %2846 }
 0xe8b   :  { %v1098_v7 = vadd.f32 1.0, %v2847_v26 }
 0xe8d   :  { %2848 = vrcp.f32 %v1098_v7  ;;  %v1110_v30 = vand.u32 2147483648, %v1098_v7  ;;  %vm1104_vm5 = vweird.f32 %v1098_v7  ;;  %v1108_v32 = vand.u32 2147483647, %v1098_v7 }
 0xe8f   :  { %v1111_v35 = vor.u32 1.1754944e-38, %v1110_v30  ;;  %vm1109_vm7 = vcmp.eq.f32.partialorder %v1108_v32, 8.507059e+37 }
 0xe93   :  { %v2849_v15 = vpop.eup %2848 }
 0xe94   :  { %v1100_v27 = vmul.f32 %v2849_v15, %v1098_v7  ;;  %vm1105_vm4 = vweird.f32 %v2849_v15 }
 0xe95   :  { %vm1106_vm6 = vmor %vm1104_vm5, %vm1105_vm4 }
 0xe96   :  { %v1101_v28 = vsub.f32 1.0, %v1100_v27 }
 0xe98   :  { %v1102_v29 = vmul.f32 %v2849_v15, %v1101_v28 }
 0xe9a   :  { %v1103_v20 = vadd.f32 %v2849_v15, %v1102_v29 }
 0xe9c   :  { %v1107_v33 = vsel %vm1106_vm6, %v2849_v15, %v1103_v20 }
 0xe9d   :  { %v1112_v16 = vsel %vm1109_vm7, %v1111_v35, %v1107_v33 }
 0xe9e   :  { %v1115_v23 = vmul.f32 %v1112_v16, %v3373_v51 }
 0xef4   :  { %v1118_v36 = vpop.permute.xlu0 %1117 }
 0xef5   :  { %v1120_v37 = vmul.f32 %v1118_v36, %v1112_v16  ;;  %v47_v36 = vld [vmem:[#allocation7 + $0x88] sm:$0xff] }
 0xef6   :  { %1324 = vmatpush.msrb.mxu0 %v47_v36 }
 0xef7   :  { %1122 = vrot.lane.b32.xlu2 %v1120_v37, %s3071_s7  ;;  %v3425_v37 = vld [vmem:[#allocation7 + $0xa8] sm:$0xff] }
 0xefc   :  { %v925_v18 = vpop.permute.xlu0 %924 }
 0xefd   :  { %v927_v19 = vmul.f32 %v925_v18, %v908_v11 }
 0xeff   :  { %929 = vrot.lane.b32.xlu2 %v927_v19, %s3071_s7  ;;  %v45_v19 = vld [vmem:[#allocation7 + $0x78] sm:$0xff] }
 0xf51   :  { %v1123_v17 = vpop.permute.xlu2 %1122 }
 0xf52   :  { %v3399_v38 = vadd.f32 %v1123_v17, %v1115_v23  ;;  %v44_v17 = vld [vmem:[#allocation7 + $0x70] sm:$0xff] }
 0xf54   :  { %2850 = vtanh.f32 %v3399_v38 }
 0xf59   :  { %v930_v31 = vpop.permute.xlu2 %929 }
 0xf5a   :  { %v2851_v34 = vpop.eup %2850  ;;  %933 = vst.msk [vmem:[#allocation4 + $0x28] sm:$0xff] %vm189_vm9, %v930_v31  ;;  %2663 = vmatmul.msk.f32.vlgmr.msra.gmra.mxu2 %vm189_vm9, %v930_v31  ;;  %v3431_v31 = vld [vmem:[#allocation7 + $0x98] sm:$0xff] }
 0xf5b   :  { %1128 = vrot.lane.b32.xlu1 %v2851_v34, %s3070_s0  ;;  %1448 = vmatpush.msra.mxu2 %v3425_v37  ;;  %v3434_v34 = vld [vmem:[#allocation7 + $0x90] sm:$0xff] }
 0xf61   :  { %v1277_v39 = vld [vmem:[#allocation4 + $0x28] sm:$0xff] }
 0xf62   :  { %2684 = vmatmul.msk.f32.gmra.mxu1 %vm189_vm9, %v1277_v39 }
 0xfcd   :  { %v1129_v42 = vpop.permute.xlu1 %1128 }
 0xfce   :  { %v1131_v45 = vmul.f32 %v1129_v42, %v1112_v16  ;;  %v46_v16 = vld [vmem:[#allocation7 + $0x80] sm:$0xff] }
 0xfcf   :  { %1325 = vmatpush.msrb.mxu0 %v46_v16 }
 0xfd0   :  { %1133 = vrot.lane.b32.xlu0 %v1131_v45, %s3071_s7  ;;  %v1282_v45 = vld [vmem:[#allocation5 + $0x10] sm:$0xff] }
 0xfd1   :  { %1326 = vmatpush.msrb.mxu0 %v45_v19 }
 0xfd3   :  { %1327 = vmatpush.msrb.mxu0 %v44_v17 }
 0xfdd   :  { %v1023_v48 = vpop.f32.mrf.mxu2 }
 0xfde   :  { %v1026_v49 = vadd.f32 %v1023_v48, %v125_v46  ;;  %v1283_v46 = vld [vmem:[#allocation5 + $0x18] sm:$0xff]  ;;  %v1284_v48 = vld [vmem:[#allocation5 + $0x20] sm:$0xff] }
 0xfe0   :  { %2852 = vtanh.f32 %v1026_v49  ;;  %v2664_v51 = vmul.f32 -1.442695, %v1026_v49  ;;  %v1285_v49 = vld [vmem:[#allocation5 + $0x28] sm:$0xff] }
 0xfe2   :  { %2854 = vpow2.f32 %v2664_v51  ;;  %v1287_v51 = vld [vmem:[#allocation5 + $0x38] sm:$0xff] }
 0xfe6   :  { %v2853_v50 = vpop.eup %2852 }
 0xfe7   :  { %1049 = vrot.lane.b32.xlu1 %v2853_v50, %s3070_s0  ;;  %v1286_v50 = vld [vmem:[#allocation5 + $0x30] sm:$0xff] }
 0xfe8   :  { %v2855_v52 = vpop.eup %2854 }
 0xfe9   :  { %v1030_v54 = vadd.f32 1.0, %v2855_v52  ;;  %v3456_v52 = vpop.f32.mrf.mxu0 }
 0xfeb   :  { %2856 = vrcp.f32 %v1030_v54  ;;  %v1042_v59 = vand.u32 2147483648, %v1030_v54  ;;  %vm1036_vm10 = vweird.f32 %v1030_v54  ;;  %v1040_v40 = vand.u32 2147483647, %v1030_v54 }
 0xfed   :  { %v1043_v43 = vor.u32 1.1754944e-38, %v1042_v59  ;;  %vm1041_vm12 = vcmp.eq.f32.partialorder %v1040_v40, 8.507059e+37 }
 0xff1   :  { %v2857_v56 = vpop.eup %2856 }
 0xff2   :  { %v1032_v53 = vmul.f32 %v2857_v56, %v1030_v54  ;;  %vm1037_vm8 = vweird.f32 %v2857_v56 }
 0xff3   :  { %vm1038_vm11 = vmor %vm1036_vm10, %vm1037_vm8 }
 0xff4   :  { %v1033_v58 = vsub.f32 1.0, %v1032_v53  ;;  %v1394_v53 = vpop.f32.mrf.mxu1 }
 0xff6   :  { %v1034_v47 = vmul.f32 %v2857_v56, %v1033_v58 }
 0xff8   :  { %v1035_v57 = vadd.f32 %v2857_v56, %v1034_v47 }
 0xffa   :  { %v1039_v41 = vsel %vm1038_vm11, %v2857_v56, %v1035_v57 }
 0xffb   :  { %v1044_v44 = vsel %vm1041_vm12, %v1043_v43, %v1039_v41 }
 0xffc   :  { %v1047_v0 = vmul.f32 %v1044_v44, %v3391_v4 }
0x1042   :  { %v1134_v55 = vpop.permute.xlu0 %1133 }
0x1043   :  { %1137 = vst.msk [vmem:[#allocation5 + $0x8] sm:$0xff] %vm189_vm9, %v1134_v55  ;;  %2669 = vmatmul.msk.f32.vlgmr.msrb.gmra.mxu3 %vm189_vm9, %v1134_v55  ;;  %v3460_v55 = vld [vmem:[#allocation7 + $0xb0] sm:$0xff] }
0x1044   :  { %v3463_v56 = vperm.slane %v3460_v55, 0 }
0x104a   :  { %v1281_v42 = vld [vmem:[#allocation5 + $0x8] sm:$0xff] }
0x1059   :  { %v1050_v60 = vpop.permute.xlu1 %1049 }
0x105a   :  { %v1052_v61 = vmul.f32 %v1050_v60, %v1044_v44 }
0x105c   :  { %1054 = vrot.lane.b32.xlu0 %v1052_v61, %s3071_s7 }
0x10c6   :  { %v1226_v62 = vpop.f32.mrf.mxu3 }
0x10c7   :  { %v1229_v63 = vadd.f32 %v1226_v62, %v3178_v14 }
0x10c9   :  { %2858 = vtanh.f32 %v1229_v63  ;;  %v2670_v10 = vmul.f32 -1.442695, %v1229_v63 }
0x10ce   :  { %v1055_v1 = vpop.permute.xlu0 %1054 }
0x10cf   :  { %v2859_v2 = vpop.eup %2858  ;;  %v3413_v6 = vadd.f32 %v1055_v1, %v1047_v0 }
0x10d0   :  { %1252 = vrot.lane.b32.xlu2 %v2859_v2, %s3070_s0 }
0x10d1   :  { %2860 = vtanh.f32 %v3413_v6 }
0x10d2   :  { %2862 = vpow2.f32 %v2670_v10 }
0x10d7   :  { %v2861_v9 = vpop.eup %2860 }
0x10d8   :  { %1060 = vrot.lane.b32.xlu2 %v2861_v9, %s3070_s0  ;;  %v2863_v11 = vpop.eup %2862 }
0x10d9   :  { %v1233_v12 = vadd.f32 1.0, %v2863_v11 }
0x10db   :  { %2864 = vrcp.f32 %v1233_v12  ;;  %v1245_v3 = vand.u32 2147483648, %v1233_v12  ;;  %vm1239_vm14 = vweird.f32 %v1233_v12  ;;  %v1243_v4 = vand.u32 2147483647, %v1233_v12 }
0x10dd   :  { %v1246_v5 = vor.u32 1.1754944e-38, %v1245_v3  ;;  %vm1244_vm0 = vcmp.eq.f32.partialorder %v1243_v4, 8.507059e+37  ;;  %v3469_v4 = vld [vmem:[#allocation7 + $0xd0] sm:$0xff] }
0x10de   :  { %1513 = vmatpush.msra.mxu3 %v3469_v4 }
0x10e1   :  { %v2865_v14 = vpop.eup %2864 }
0x10e2   :  { %v1235_v13 = vmul.f32 %v2865_v14, %v1233_v12  ;;  %vm1240_vm13 = vweird.f32 %v2865_v14 }
0x10e3   :  { %vm1241_vm15 = vmor %vm1239_vm14, %vm1240_vm13 }
0x10e4   :  { %v1236_v21 = vsub.f32 1.0, %v1235_v13 }
0x10e6   :  { %v1237_v22 = vmul.f32 %v2865_v14, %v1236_v21 }
0x10e8   :  { %v1238_v24 = vadd.f32 %v2865_v14, %v1237_v22 }
0x10ea   :  { %v1242_v25 = vsel %vm1241_vm15, %v2865_v14, %v1238_v24 }
0x10eb   :  { %v1247_v7 = vsel %vm1244_vm0, %v1246_v5, %v1242_v25  ;;  %v3471_v25 = vld [vmem:[#allocation7 + $0xc8] sm:$0xff]  ;;  %v3474_v5 = vld [vmem:[#allocation7 + $0xc0] sm:$0xff] }
0x10ec   :  { %v1250_v29 = vmul.f32 %v1247_v7, %v3399_v38  ;;  %v3429_v38 = vld [vmem:[#allocation7 + $0xa0] sm:$0xff]  ;;  %1514 = vmatpush.msra.mxu3 %v3471_v25 }
0x10ed   :  { %1449 = vmatpush.msra.mxu2 %v3429_v38 }
0x10ee   :  { %1515 = vmatpush.msra.mxu3 %v3474_v5 }
0x10ef   :  { %1450 = vmatpush.msra.mxu2 %v3431_v31 }
0x10f1   :  { %1451 = vmatpush.msra.mxu2 %v3434_v34 }
0x112a   :  { %v1253_v26 = vpop.permute.xlu2 %1252 }
0x112b   :  { %v1255_v15 = vmul.f32 %v1253_v26, %v1247_v7  ;;  %v3477_v26 = vld [vmem:[#allocation7 + $0xb8] sm:$0xff] }
0x112c   :  { %1516 = vmatpush.msra.mxu3 %v3477_v26 }
0x112d   :  { %1257 = vrot.lane.b32.xlu1 %v1255_v15, %s3071_s7 }
0x112e   :  { %1648 = vmatpush.msrb.mxu3 %v3469_v4 }
0x1130   :  { %1649 = vmatpush.msrb.mxu3 %v3471_v25 }
0x1132   :  { %v1061_v27 = vpop.permute.xlu2 %1060  ;;  %1650 = vmatpush.msrb.mxu3 %v3474_v5 }
0x1133   :  { %v1063_v28 = vmul.f32 %v1061_v27, %v1044_v44 }
0x1134   :  { %1651 = vmatpush.msrb.mxu3 %v3477_v26 }
0x1135   :  { %1065 = vrot.lane.b32.xlu1 %v1063_v28, %s3071_s7 }
0x119f   :  { %v1258_v20 = vpop.permute.xlu1 %1257 }
0x11a0   :  { %v1260_v30 = vadd.f32 %v1258_v20, %v1250_v29  ;;  %v1397_v29 = vpop.f32.mrf.mxu1 }
0x11a2   :  { %2866 = vtanh.f32 %v1260_v30 }
0x11a7   :  { %v1066_v32 = vpop.permute.xlu1 %1065 }
0x11a8   :  { %v2867_v33 = vpop.eup %2866  ;;  %1069 = vst.msk [vmem:[#allocation4 + $0x30] sm:$0xff] %vm189_vm9, %v1066_v32  ;;  %2667 = vmatmul.msk.f32.vlgmr.msrb.gmra.mxu2 %vm189_vm9, %v1066_v32 }
0x11a9   :  { %1263 = vrot.lane.b32.xlu0 %v2867_v33, %s3070_s0  ;;  %1579 = vmatpush.msrb.mxu2 %v3425_v37 }
0x11ab   :  { %1580 = vmatpush.msrb.mxu2 %v3429_v38 }
0x11ad   :  { %1581 = vmatpush.msrb.mxu2 %v3431_v31 }
0x11af   :  { %v1278_v35 = vld [vmem:[#allocation4 + $0x30] sm:$0xff]  ;;  %1582 = vmatpush.msrb.mxu2 %v3434_v34 }
0x11b0   :  { %2685 = vmatmul.msk.f32.gmra.mxu1 %vm189_vm9, %v1278_v35  ;;  %1452 = vmatmul.f32.vlgmr.msra.gmra.mxu2 %v3069_v8 }
0x11b1   :  { %1713 = vmatpush.msra.mxu2 %v3425_v37 }
0x11b3   :  { %1714 = vmatpush.msra.mxu2 %v3429_v38 }
0x11b5   :  { %1715 = vmatpush.msra.mxu2 %v3431_v31 }
0x11b7   :  { %1716 = vmatpush.msra.mxu2 %v3434_v34 }
0x121b   :  { %v1264_v18 = vpop.permute.xlu0 %1263 }
0x121c   :  { %v1266_v23 = vmul.f32 %v1264_v18, %v1247_v7 }
0x121e   :  { %1268 = vrot.lane.b32.xlu2 %v1266_v23, %s3071_s7 }
0x122b   :  { %v3458_v54 = vpop.f32.mrf.mxu2 }
0x1233   :  { %v1453_v57 = vpop.f32.mrf.mxu2 }
0x1278   :  { %v1269_v39 = vpop.permute.xlu2 %1268 }
0x1279   :  { %1271 = vst.msk [vmem:[#allocation5] sm:$0xff] %vm189_vm9, %v1269_v39 }
0x1280   :  { %v1280_v8 = vld [vmem:[#allocation5] sm:$0xff] }
0x1281   :  { %2671 = vmatmul.msk.f32.vlgmr.msrb.gmra.mxu0 %vm189_vm9, %v1280_v8 }
0x1289   :  { %2672 = vmatmul.msk.f32.gmra.mxu0 %vm189_vm9, %v1281_v42 }
0x1291   :  { %2673 = vmatmul.msk.f32.gmra.mxu0 %vm189_vm9, %v1282_v45 }
0x1299   :  { %2674 = vmatmul.msk.f32.gmra.mxu0 %vm189_vm9, %v1283_v46 }
0x12a1   :  { %2675 = vmatmul.msk.f32.gmra.mxu0 %vm189_vm9, %v1284_v48 }
0x12a9   :  { %2676 = vmatmul.msk.f32.gmra.mxu0 %vm189_vm9, %v1285_v49 }
0x12b1   :  { %2677 = vmatmul.msk.f32.gmra.mxu0 %vm189_vm9, %v1286_v50 }
0x12b9   :  { %2678 = vmatmul.msk.f32.gmra.mxu0 %vm189_vm9, %v1287_v51 }
0x12fe   :  { %v1329_v58 = vpop.f32.mrf.mxu0 }
0x12ff   :  { %v1395_v47 = vadd.f32 %v1394_v53, %v1329_v58 }
0x1301   :  { %v1419_v59 = vadd.f32 %v3463_v56, %v1395_v47 }
0x1303   :  { %v1456_v40 = vadd.f32 %v1453_v57, %v1419_v59 }
0x1305   :  { %2868 = vtanh.f32 %v1456_v40  ;;  %v2687_v43 = vmul.f32 -1.442695, %v1456_v40 }
0x1306   :  { %v1332_v28 = vpop.f32.mrf.mxu0 }
0x1307   :  { %2870 = vpow2.f32 %v2687_v43  ;;  %v1398_v20 = vadd.f32 %v1397_v29, %v1332_v28 }
0x1309   :  { %v1420_v30 = vadd.f32 %v3463_v56, %v1398_v20 }
0x130b   :  { %v2869_v41 = vpop.eup %2868 }
0x130c   :  { %1479 = vrot.lane.b32.xlu0 %v2869_v41, %s3070_s0 }
0x130d   :  { %v2871_v60 = vpop.eup %2870 }
0x130e   :  { %v1460_v44 = vadd.f32 1.0, %v2871_v60  ;;  %v1335_v43 = vpop.f32.mrf.mxu0  ;;  %v1400_v60 = vpop.f32.mrf.mxu1 }
0x1310   :  { %2872 = vrcp.f32 %v1460_v44  ;;  %v1472_v2 = vand.u32 2147483648, %v1460_v44  ;;  %vm1466_vm2 = vweird.f32 %v1460_v44  ;;  %v1470_v9 = vand.u32 2147483647, %v1460_v44 }
0x1312   :  { %v1473_v11 = vor.u32 1.1754944e-38, %v1472_v2  ;;  %vm1471_vm4 = vcmp.eq.f32.partialorder %v1470_v9, 8.507059e+37 }
0x1316   :  { %v2873_v61 = vpop.eup %2872 }
0x1317   :  { %v1462_v62 = vmul.f32 %v2873_v61, %v1460_v44  ;;  %vm1467_vm1 = vweird.f32 %v2873_v61  ;;  %v1401_v44 = vadd.f32 %v1400_v60, %v1335_v43 }
0x1318   :  { %vm1468_vm3 = vmor %vm1466_vm2, %vm1467_vm1 }
0x1319   :  { %v1463_v63 = vsub.f32 1.0, %v1462_v62 }
0x131b   :  { %v1464_v0 = vmul.f32 %v2873_v61, %v1463_v63 }
0x131d   :  { %v1465_v1 = vadd.f32 %v2873_v61, %v1464_v0 }
0x131f   :  { %v1469_v10 = vsel %vm1468_vm3, %v2873_v61, %v1465_v1  ;;  %v1421_v61 = vadd.f32 %v3463_v56, %v1401_v44 }
0x1320   :  { %v1474_v14 = vsel %vm1471_vm4, %v1473_v11, %v1469_v10 }
0x1321   :  { %v1477_v21 = vmul.f32 0.0, %v1474_v14 }
0x137e   :  { %v1480_v12 = vpop.permute.xlu0 %1479 }
0x137f   :  { %v1482_v13 = vmul.f32 %v1480_v12, %v1474_v14 }
0x1381   :  { %1484 = vrot.lane.b32.xlu1 %v1482_v13, %s3071_s7 }
0x13f3   :  { %v1485_v22 = vpop.permute.xlu1 %1484 }
0x13f4   :  { %v1487_v24 = vadd.f32 %v1485_v22, %v1477_v21 }
0x13f6   :  { %2874 = vtanh.f32 %v1487_v24 }
0x13fc   :  { %v2875_v3 = vpop.eup %2874 }
0x13fd   :  { %1490 = vrot.lane.b32.xlu2 %v2875_v3, %s3070_s0 }
0x1457   :  { %v1491_v7 = vpop.permute.xlu2 %1490 }
0x1458   :  { %v1493_v15 = vmul.f32 %v1491_v7, %v1474_v14 }
0x145a   :  { %1497 = vrot.lane.b32.xlu0 %v1493_v15, %s3071_s7 }
0x14cc   :  { %v1498_v27 = vpop.permute.xlu0 %1497 }
0x14cd   :  { %2688 = vmatmul.msk.f32.vlgmr.msra.gmra.mxu3 %vm189_vm9, %v1498_v27  ;;  %2691 = vmatmul.msk.f32.vlgmr.msrb.gmra.mxu2 %vm189_vm9, %v1498_v27 }
0x14ce   :  { %1847 = vmatpush.msrb.mxu2 %v3425_v37  ;;  %1782 = vmatpush.msra.mxu3 %v3469_v4 }
0x14d0   :  { %1848 = vmatpush.msrb.mxu2 %v3429_v38  ;;  %1783 = vmatpush.msra.mxu3 %v3471_v25 }
0x14d2   :  { %1849 = vmatpush.msrb.mxu2 %v3431_v31  ;;  %1784 = vmatpush.msra.mxu3 %v3474_v5 }
0x14d4   :  { %1850 = vmatpush.msrb.mxu2 %v3434_v34  ;;  %1785 = vmatpush.msra.mxu3 %v3477_v26 }
0x1550   :  { %v1584_v32 = vpop.f32.mrf.mxu2 }
0x1551   :  { %v1587_v33 = vadd.f32 %v1584_v32, %v1420_v30 }
0x1553   :  { %2876 = vtanh.f32 %v1587_v33  ;;  %v2692_v36 = vmul.f32 -1.442695, %v1587_v33 }
0x1555   :  { %2878 = vpow2.f32 %v2692_v36  ;;  %v1338_v36 = vpop.f32.mrf.mxu0 }
0x1559   :  { %v2877_v35 = vpop.eup %2876 }
0x155a   :  { %1610 = vrot.lane.b32.xlu1 %v2877_v35, %s3070_s0 }
0x155b   :  { %v2879_v16 = vpop.eup %2878 }
0x155c   :  { %v1591_v18 = vadd.f32 1.0, %v2879_v16  ;;  %v1403_v16 = vpop.f32.mrf.mxu1 }
0x155e   :  { %2880 = vrcp.f32 %v1591_v18  ;;  %v1603_v42 = vand.u32 2147483648, %v1591_v18  ;;  %vm1597_vm6 = vweird.f32 %v1591_v18  ;;  %v1601_v45 = vand.u32 2147483647, %v1591_v18 }
0x1560   :  { %v1604_v48 = vor.u32 1.1754944e-38, %v1603_v42  ;;  %vm1602_vm8 = vcmp.eq.f32.partialorder %v1601_v45, 8.507059e+37 }
0x1564   :  { %v2881_v19 = vpop.eup %2880 }
0x1565   :  { %v1593_v23 = vmul.f32 %v2881_v19, %v1591_v18  ;;  %vm1598_vm5 = vweird.f32 %v2881_v19  ;;  %v1404_v18 = vadd.f32 %v1403_v16, %v1338_v36  ;;  %v1406_v36 = vpop.f32.mrf.mxu1 }
0x1566   :  { %vm1599_vm7 = vmor %vm1597_vm6, %vm1598_vm5 }
0x1567   :  { %v1594_v17 = vsub.f32 1.0, %v1593_v23 }
0x1569   :  { %v1595_v39 = vmul.f32 %v2881_v19, %v1594_v17 }
0x156b   :  { %v1596_v8 = vadd.f32 %v2881_v19, %v1595_v39 }
0x156d   :  { %v1600_v46 = vsel %vm1599_vm7, %v2881_v19, %v1596_v8  ;;  %v1422_v19 = vadd.f32 %v3463_v56, %v1404_v18 }
0x156e   :  { %v1605_v50 = vsel %vm1602_vm8, %v1604_v48, %v1600_v46 }
0x156f   :  { %v1608_v53 = vmul.f32 %v1605_v50, %v1487_v24 }
0x15cc   :  { %v1611_v49 = vpop.permute.xlu1 %1610 }
0x15cd   :  { %v1613_v51 = vmul.f32 %v1611_v49, %v1605_v50 }
0x15cf   :  { %1615 = vrot.lane.b32.xlu2 %v1613_v51, %s3071_s7 }
0x1629   :  { %v1616_v58 = vpop.permute.xlu2 %1615 }
0x162a   :  { %v1618_v47 = vadd.f32 %v1616_v58, %v1608_v53  ;;  %v1518_v58 = vpop.f32.mrf.mxu3 }
0x162c   :  { %2882 = vtanh.f32 %v1618_v47 }
0x1632   :  { %v2883_v57 = vpop.eup %2882 }
0x1633   :  { %1621 = vrot.lane.b32.xlu0 %v2883_v57, %s3070_s0 }
0x16a5   :  { %v1622_v59 = vpop.permute.xlu0 %1621 }
0x16a6   :  { %v1624_v40 = vmul.f32 %v1622_v59, %v1605_v50  ;;  %v3529_v50 = vperm.slane %v3460_v55, 2 }
0x16a8   :  { %1632 = vrot.lane.b32.xlu1 %v1624_v40, %s3071_s7  ;;  %v1495_v53 = vmul.f32 0.0, %v3529_v50 }
0x16aa   :  { %v1519_v40 = vadd.f32 %v1518_v58, %v1495_v53  ;;  %v3075_v53 = vmov 3  }
0x16ab   :  { %2746 = vset.pattern.permute.xlu1 %v3075_v53  ;;  %2747 = vset.pattern.permute.xlu0 %v3075_v53 }
0x171a   :  { %v1633_v41 = vpop.permute.xlu1 %1632 }
0x171b   :  { %2693 = vmatmul.msk.f32.vlgmr.msrb.gmra.mxu3 %vm189_vm9, %v1633_v41  ;;  %2696 = vmatmul.msk.f32.vlgmr.msra.gmra.mxu2 %vm189_vm9, %v1633_v41  ;;  %v3533_v41 = vperm.slane %v3460_v55, 1 }
0x171c   :  { %1981 = vmatpush.msra.mxu2 %v3425_v37  ;;  %1916 = vmatpush.msrb.mxu3 %v3469_v4 }
0x171d   :  { %v1522_v44 = vadd.f32 %v3533_v41, %v1519_v40 }
0x171e   :  { %1982 = vmatpush.msra.mxu2 %v3429_v38  ;;  %1917 = vmatpush.msrb.mxu3 %v3471_v25 }
0x1720   :  { %1983 = vmatpush.msra.mxu2 %v3431_v31  ;;  %1918 = vmatpush.msrb.mxu3 %v3474_v5 }
0x1722   :  { %1984 = vmatpush.msra.mxu2 %v3434_v34  ;;  %1919 = vmatpush.msrb.mxu3 %v3477_v26 }
0x179e   :  { %v1718_v62 = vpop.f32.mrf.mxu2 }
0x179f   :  { %v1721_v63 = vadd.f32 %v1718_v62, %v1421_v61 }
0x17a1   :  { %2884 = vtanh.f32 %v1721_v63  ;;  %v2697_v1 = vmul.f32 -1.442695, %v1721_v63 }
0x17a3   :  { %2886 = vpow2.f32 %v2697_v1 }
0x17a7   :  { %v2885_v0 = vpop.eup %2884 }
0x17a8   :  { %1744 = vrot.lane.b32.xlu2 %v2885_v0, %s3070_s0 }
0x17a9   :  { %v2887_v2 = vpop.eup %2886 }
0x17aa   :  { %v1725_v9 = vadd.f32 1.0, %v2887_v2 }
0x17ac   :  { %2888 = vrcp.f32 %v1725_v9  ;;  %v1737_v21 = vand.u32 2147483648, %v1725_v9  ;;  %vm1731_vm11 = vweird.f32 %v1725_v9  ;;  %v1735_v22 = vand.u32 2147483647, %v1725_v9 }
0x17ae   :  { %v1738_v3 = vor.u32 1.1754944e-38, %v1737_v21  ;;  %vm1736_vm13 = vcmp.eq.f32.partialorder %v1735_v22, 8.507059e+37 }
0x17b2   :  { %v2889_v10 = vpop.eup %2888 }
0x17b3   :  { %v1727_v11 = vmul.f32 %v2889_v10, %v1725_v9  ;;  %vm1732_vm10 = vweird.f32 %v2889_v10 }
0x17b4   :  { %vm1733_vm12 = vmor %vm1731_vm11, %vm1732_vm10 }
0x17b5   :  { %v1728_v12 = vsub.f32 1.0, %v1727_v11 }
0x17b7   :  { %v1729_v14 = vmul.f32 %v2889_v10, %v1728_v12 }
0x17b9   :  { %v1730_v13 = vadd.f32 %v2889_v10, %v1729_v14 }
0x17bb   :  { %v1734_v24 = vsel %vm1733_vm12, %v2889_v10, %v1730_v13  ;;  %v2689_v10 = vmul.f32 -1.442695, %v1522_v44 }
0x17bc   :  { %v1739_v15 = vsel %vm1736_vm13, %v1738_v3, %v1734_v24 }
0x17bd   :  { %v1742_v28 = vmul.f32 %v1739_v15, %v1618_v47 }
0x1802   :  { %v1745_v7 = vpop.permute.xlu2 %1744 }
0x1803   :  { %v1747_v27 = vmul.f32 %v1745_v7, %v1739_v15 }
0x1805   :  { %1749 = vrot.lane.b32.xlu0 %v1747_v27, %s3071_s7 }
0x1877   :  { %v1750_v29 = vpop.permute.xlu0 %1749 }
0x1878   :  { %v1752_v20 = vadd.f32 %v1750_v29, %v1742_v28 }
0x187a   :  { %2890 = vtanh.f32 %v1752_v20 }
0x1880   :  { %v2891_v30 = vpop.eup %2890 }
0x1881   :  { %1755 = vrot.lane.b32.xlu1 %v2891_v30, %s3070_s0 }
0x18f3   :  { %v1756_v32 = vpop.permute.xlu1 %1755 }
0x18f4   :  { %v1758_v33 = vmul.f32 %v1756_v32, %v1739_v15 }
0x18f6   :  { %1766 = vrot.lane.b32.xlu2 %v1758_v33, %s3071_s7 }
0x1950   :  { %v1767_v35 = vpop.permute.xlu2 %1766 }
0x1951   :  { %2698 = vmatmul.msk.f32.vlgmr.msra.gmra.mxu3 %vm189_vm9, %v1767_v35  ;;  %2701 = vmatmul.msk.f32.vlgmr.msrb.gmra.mxu2 %vm189_vm9, %v1767_v35  ;;  %v1341_v35 = vpop.f32.mrf.mxu0 }
0x1952   :  { %2050 = vmatpush.msra.mxu3 %v3469_v4  ;;  %2115 = vmatpush.msrb.mxu2 %v3425_v37  ;;  %v1407_v16 = vadd.f32 %v1406_v36, %v1341_v35 }
0x1954   :  { %2051 = vmatpush.msra.mxu3 %v3471_v25  ;;  %2116 = vmatpush.msrb.mxu2 %v3429_v38  ;;  %v1423_v18 = vadd.f32 %v3463_v56, %v1407_v16 }
0x1956   :  { %2052 = vmatpush.msra.mxu3 %v3474_v5  ;;  %2117 = vmatpush.msrb.mxu2 %v3431_v31 }
0x1958   :  { %2053 = vmatpush.msra.mxu3 %v3477_v26  ;;  %2118 = vmatpush.msrb.mxu2 %v3434_v34 }
0x19d4   :  { %v1852_v23 = vpop.f32.mrf.mxu2 }
0x19d5   :  { %v1855_v17 = vadd.f32 %v1852_v23, %v1422_v19 }
0x19d7   :  { %2892 = vtanh.f32 %v1855_v17  ;;  %v2702_v8 = vmul.f32 -1.442695, %v1855_v17 }
0x19d9   :  { %2894 = vpow2.f32 %v2702_v8 }
0x19dd   :  { %v2893_v39 = vpop.eup %2892 }
0x19de   :  { %1878 = vrot.lane.b32.xlu0 %v2893_v39, %s3070_s0 }
0x19df   :  { %v2895_v42 = vpop.eup %2894 }
0x19e0   :  { %v1859_v45 = vadd.f32 1.0, %v2895_v42 }
0x19e2   :  { %2896 = vrcp.f32 %v1859_v45  ;;  %v1871_v57 = vand.u32 2147483648, %v1859_v45  ;;  %vm1865_vm15 = vweird.f32 %v1859_v45  ;;  %v1869_v59 = vand.u32 2147483647, %v1859_v45 }
0x19e3   :  { %2898 = vtanh.f32 %v1522_v44 }
0x19e4   :  { %v1872_v60 = vor.u32 1.1754944e-38, %v1871_v57  ;;  %vm1870_vm1 = vcmp.eq.f32.partialorder %v1869_v59, 8.507059e+37 }
0x19e8   :  { %v2897_v46 = vpop.eup %2896 }
0x19e9   :  { %v1861_v48 = vmul.f32 %v2897_v46, %v1859_v45  ;;  %vm1866_vm14 = vweird.f32 %v2897_v46  ;;  %v2899_v0 = vpop.eup %2898 }
0x19ea   :  { %vm1867_vm0 = vmor %vm1865_vm15, %vm1866_vm14 }
0x19eb   :  { %v1862_v49 = vsub.f32 1.0, %v1861_v48 }
0x19ed   :  { %v1863_v51 = vmul.f32 %v2897_v46, %v1862_v49 }
0x19ef   :  { %v1864_v47 = vadd.f32 %v2897_v46, %v1863_v51 }
0x19f1   :  { %v1868_v43 = vsel %vm1867_vm0, %v2897_v46, %v1864_v47 }
0x19f2   :  { %v1873_v62 = vsel %vm1870_vm1, %v1872_v60, %v1868_v43 }
0x19f3   :  { %v1876_v1 = vmul.f32 %v1873_v62, %v1752_v20 }
0x1a50   :  { %v1879_v61 = vpop.permute.xlu0 %1878 }
0x1a51   :  { %v1881_v63 = vmul.f32 %v1879_v61, %v1873_v62 }
0x1a53   :  { %1883 = vrot.lane.b32.xlu1 %v1881_v63, %s3071_s7 }
0x1a5b   :  { %1545 = vrot.lane.b32.xlu1 %v2899_v0, %s3072_s8 }
0x1ac5   :  { %v1884_v2 = vpop.permute.xlu1 %1883 }
0x1ac6   :  { %v3538_v55 = vadd.f32 %v1884_v2, %v1876_v1 }
0x1ac8   :  { %2900 = vtanh.f32 %v3538_v55 }
0x1ac9   :  { %2902 = vpow2.f32 %v2689_v10 }
0x1acd   :  { %v1546_v20 = vpop.permute.xlu1 %1545 }
0x1ace   :  { %v2901_v9 = vpop.eup %2900 }
0x1acf   :  { %1889 = vrot.lane.b32.xlu2 %v2901_v9, %s3070_s0  ;;  %v2903_v11 = vpop.eup %2902 }
0x1ad0   :  { %v1526_v12 = vadd.f32 1.0, %v2903_v11 }
0x1ad2   :  { %2904 = vrcp.f32 %v1526_v12  ;;  %v1538_v15 = vand.u32 2147483648, %v1526_v12  ;;  %vm1532_vm3 = vweird.f32 %v1526_v12  ;;  %v1536_v27 = vand.u32 2147483647, %v1526_v12 }
0x1ad4   :  { %v1539_v29 = vor.u32 1.1754944e-38, %v1538_v15  ;;  %vm1537_vm5 = vcmp.eq.f32.partialorder %v1536_v27, 8.507059e+37 }
0x1ad8   :  { %v2905_v14 = vpop.eup %2904 }
0x1ad9   :  { %v1528_v13 = vmul.f32 %v2905_v14, %v1526_v12  ;;  %vm1533_vm2 = vweird.f32 %v2905_v14 }
0x1ada   :  { %vm1534_vm4 = vmor %vm1532_vm3, %vm1533_vm2 }
0x1adb   :  { %v1529_v21 = vsub.f32 1.0, %v1528_v13  ;;  %v1653_v13 = vpop.f32.mrf.mxu3 }
0x1add   :  { %v1530_v22 = vmul.f32 %v2905_v14, %v1529_v21 }
0x1adf   :  { %v1531_v3 = vadd.f32 %v2905_v14, %v1530_v22 }
0x1ae1   :  { %v1535_v28 = vsel %vm1534_vm4, %v2905_v14, %v1531_v3 }
0x1ae2   :  { %v1540_v30 = vsel %vm1537_vm5, %v1539_v29, %v1535_v28 }
0x1ae3   :  { %v1548_v32 = vmul.f32 %v1546_v20, %v1540_v30  ;;  %v1543_v39 = vmul.f32 0.0, %v1540_v30 }
0x1b29   :  { %v1890_v24 = vpop.permute.xlu2 %1889 }
0x1b2a   :  { %v1892_v7 = vmul.f32 %v1890_v24, %v1873_v62 }
0x1b2c   :  { %1900 = vrot.lane.b32.xlu0 %v1892_v7, %s3071_s7 }
0x1b34   :  { %1550 = vrot.lane.b32.xlu0 %v1548_v32, %s3073_s9 }
0x1b9e   :  { %v1901_v33 = vpop.permute.xlu0 %1900 }
0x1b9f   :  { %2703 = vmatmul.msk.f32.vlgmr.msrb.gmra.mxu3 %vm189_vm9, %v1901_v33  ;;  %2706 = vmatmul.msk.f32.vlgmr.msra.gmra.mxu2 %vm189_vm9, %v1901_v33 }
0x1ba0   :  { %2184 = vmatpush.msrb.mxu3 %v3469_v4  ;;  %2249 = vmatpush.msra.mxu2 %v3425_v37 }
0x1ba2   :  { %2185 = vmatpush.msrb.mxu3 %v3471_v25  ;;  %2250 = vmatpush.msra.mxu2 %v3429_v38 }
0x1ba4   :  { %2186 = vmatpush.msrb.mxu3 %v3474_v5  ;;  %2251 = vmatpush.msra.mxu2 %v3431_v31 }
0x1ba6   :  { %2187 = vmatpush.msrb.mxu3 %v3477_v26  ;;  %2252 = vmatpush.msra.mxu2 %v3434_v34  ;;  %v1551_v17 = vpop.permute.xlu0 %1550 }
0x1ba7   :  { %v3555_v8 = vadd.f32 %v1551_v17, %v1543_v39 }
0x1c22   :  { %v1986_v19 = vpop.f32.mrf.mxu2 }
0x1c23   :  { %v1989_v23 = vadd.f32 %v1986_v19, %v1423_v18 }
0x1c25   :  { %2906 = vtanh.f32 %v1989_v23  ;;  %v2707_v46 = vmul.f32 -1.442695, %v1989_v23 }
0x1c26   :  { %2908 = vtanh.f32 %v3555_v8 }
0x1c27   :  { %2910 = vpow2.f32 %v2707_v46  ;;  %v1344_v46 = vpop.f32.mrf.mxu0 }
0x1c2b   :  { %v2907_v42 = vpop.eup %2906 }
0x1c2c   :  { %2012 = vrot.lane.b32.xlu2 %v2907_v42, %s3070_s0  ;;  %v2909_v45 = vpop.eup %2908 }
0x1c2d   :  { %v2911_v48 = vpop.eup %2910 }
0x1c2e   :  { %v1993_v49 = vadd.f32 1.0, %v2911_v48 }
0x1c30   :  { %2912 = vrcp.f32 %v1993_v49  ;;  %v2005_v40 = vand.u32 2147483648, %v1993_v49  ;;  %vm1999_vm7 = vweird.f32 %v1993_v49  ;;  %v2003_v43 = vand.u32 2147483647, %v1993_v49 }
0x1c32   :  { %v2006_v44 = vor.u32 1.1754944e-38, %v2005_v40  ;;  %vm2004_vm10 = vcmp.eq.f32.partialorder %v2003_v43, 8.507059e+37 }
0x1c34   :  { %1556 = vrot.lane.b32.xlu2 %v2909_v45, %s3074_s10 }
0x1c36   :  { %v2913_v51 = vpop.eup %2912 }
0x1c37   :  { %v1995_v58 = vmul.f32 %v2913_v51, %v1993_v49  ;;  %vm2000_vm6 = vweird.f32 %v2913_v51 }
0x1c38   :  { %vm2001_vm8 = vmor %vm1999_vm7, %vm2000_vm6 }
0x1c39   :  { %v1996_v47 = vsub.f32 1.0, %v1995_v58 }
0x1c3b   :  { %v1997_v57 = vmul.f32 %v2913_v51, %v1996_v47 }
0x1c3d   :  { %v1998_v59 = vadd.f32 %v2913_v51, %v1997_v57 }
0x1c3f   :  { %v2002_v60 = vsel %vm2001_vm8, %v2913_v51, %v1998_v59 }
0x1c40   :  { %v2007_v62 = vsel %vm2004_vm10, %v2006_v44, %v2002_v60 }
0x1c41   :  { %v2010_v2 = vmul.f32 %v2007_v62, %v3538_v55 }
0x1c86   :  { %v2013_v61 = vpop.permute.xlu2 %2012 }
0x1c87   :  { %v2015_v63 = vmul.f32 %v2013_v61, %v2007_v62 }
0x1c89   :  { %2017 = vrot.lane.b32.xlu1 %v2015_v63, %s3071_s7 }
0x1c8e   :  { %v1557_v0 = vpop.permute.xlu2 %1556 }
0x1c8f   :  { %v1559_v1 = vmul.f32 %v1557_v0, %v1540_v30 }
0x1c91   :  { %1627 = vperm.xlu1 %2746, %v1559_v1   ;;  %v1560_v51 = vmul.f32 4.6151204, %v1559_v1 }
0x1c93   :  { %v1561_v58 = vmul.f32 1.442695, %v1560_v51 }
0x1cfb   :  { %v2018_v9 = vpop.permute.xlu1 %2017 }
0x1cfc   :  { %v3562_v10 = vadd.f32 %v2018_v9, %v2010_v2 }
0x1cfe   :  { %2914 = vtanh.f32 %v3562_v10 }
0x1d03   :  { %v1628_v11 = vpop.permute.xlu1 %1627 }
0x1d04   :  { %v2915_v12 = vpop.eup %2914  ;;  %v1630_v14 = vmul.f32 %v1628_v11, %v3529_v50 }
0x1d05   :  { %2023 = vrot.lane.b32.xlu0 %v2915_v12, %s3070_s0 }
0x1d06   :  { %v1654_v21 = vadd.f32 %v1653_v13, %v1630_v14 }
0x1d08   :  { %v1656_v22 = vadd.f32 %v1654_v21, %v3533_v41 }
0x1d0a   :  { %2916 = vtanh.f32 %v1656_v22  ;;  %v2694_v55 = vmul.f32 -1.442695, %v1656_v22 }
0x1d0c   :  { %2918 = vpow2.f32 %v2694_v55 }
0x1d10   :  { %v2917_v24 = vpop.eup %2916 }
0x1d11   :  { %1679 = vrot.lane.b32.xlu0 %v2917_v24, %s3072_s8 }
0x1d12   :  { %v2919_v3 = vpop.eup %2918 }
0x1d13   :  { %v1660_v7 = vadd.f32 1.0, %v2919_v3  ;;  %v1787_v3 = vpop.f32.mrf.mxu3 }
0x1d15   :  { %2920 = vrcp.f32 %v1660_v7  ;;  %v1672_v33 = vand.u32 2147483648, %v1660_v7  ;;  %vm1666_vm12 = vweird.f32 %v1660_v7  ;;  %v1670_v35 = vand.u32 2147483647, %v1660_v7 }
0x1d17   :  { %v1673_v16 = vor.u32 1.1754944e-38, %v1672_v33  ;;  %vm1671_vm14 = vcmp.eq.f32.partialorder %v1670_v35, 8.507059e+37 }
0x1d1b   :  { %v2921_v15 = vpop.eup %2920 }
0x1d1c   :  { %v1662_v27 = vmul.f32 %v2921_v15, %v1660_v7  ;;  %vm1667_vm11 = vweird.f32 %v2921_v15 }
0x1d1d   :  { %vm1668_vm13 = vmor %vm1666_vm12, %vm1667_vm11 }
0x1d1e   :  { %v1663_v28 = vsub.f32 1.0, %v1662_v27 }
0x1d20   :  { %v1664_v30 = vmul.f32 %v2921_v15, %v1663_v28 }
0x1d22   :  { %v1665_v32 = vadd.f32 %v2921_v15, %v1664_v30 }
0x1d24   :  { %v1669_v36 = vsel %vm1668_vm13, %v2921_v15, %v1665_v32 }
0x1d25   :  { %v1674_v18 = vsel %vm1671_vm14, %v1673_v16, %v1669_v36 }
0x1d26   :  { %v1677_v39 = vmul.f32 %v1674_v18, %v3555_v8 }
0x1d77   :  { %v2024_v29 = vpop.permute.xlu0 %2023 }
0x1d78   :  { %v2026_v20 = vmul.f32 %v2024_v29, %v2007_v62 }
0x1d7a   :  { %2034 = vrot.lane.b32.xlu2 %v2026_v20, %s3071_s7 }
0x1d83   :  { %v1680_v19 = vpop.permute.xlu0 %1679 }
0x1d84   :  { %v1682_v23 = vmul.f32 %v1680_v19, %v1674_v18 }
0x1d86   :  { %1684 = vrot.lane.b32.xlu1 %v1682_v23, %s3073_s9 }
0x1dd4   :  { %v2035_v17 = vpop.permute.xlu2 %2034 }
0x1dd5   :  { %2708 = vmatmul.msk.f32.vlgmr.msra.gmra.mxu3 %vm189_vm9, %v2035_v17  ;;  %2711 = vmatmul.msk.f32.vlgmr.msrb.gmra.mxu2 %vm189_vm9, %v2035_v17 }
0x1dd6   :  { %2318 = vmatpush.msra.mxu3 %v3469_v4  ;;  %2383 = vmatpush.msrb.mxu2 %v3425_v37 }
0x1dd8   :  { %2319 = vmatpush.msra.mxu3 %v3471_v25  ;;  %2384 = vmatpush.msrb.mxu2 %v3429_v38  ;;  %v1409_v38 = vpop.f32.mrf.mxu1 }
0x1dd9   :  { %v1410_v48 = vadd.f32 %v1409_v38, %v1344_v46 }
0x1dda   :  { %2320 = vmatpush.msra.mxu3 %v3474_v5  ;;  %2385 = vmatpush.msrb.mxu2 %v3431_v31 }
0x1ddb   :  { %v1424_v49 = vadd.f32 %v3463_v56, %v1410_v48 }
0x1ddc   :  { %2321 = vmatpush.msra.mxu3 %v3477_v26  ;;  %2386 = vmatpush.msrb.mxu2 %v3434_v34 }
0x1df8   :  { %v1685_v42 = vpop.permute.xlu1 %1684 }
0x1df9   :  { %v3582_v45 = vadd.f32 %v1685_v42, %v1677_v39 }
0x1dfb   :  { %2922 = vtanh.f32 %v3582_v45 }
0x1e01   :  { %v2923_v37 = vpop.eup %2922 }
0x1e02   :  { %1690 = vrot.lane.b32.xlu2 %v2923_v37, %s3074_s10 }
0x1e58   :  { %v2120_v31 = vpop.f32.mrf.mxu2 }
0x1e59   :  { %v2123_v53 = vadd.f32 %v2120_v31, %v1424_v49 }
0x1e5b   :  { %2924 = vtanh.f32 %v2123_v53  ;;  %v2712_v62 = vmul.f32 -1.442695, %v2123_v53 }
0x1e5c   :  { %v1691_v34 = vpop.permute.xlu2 %1690  ;;  %2926 = vpow2.f32 %v1561_v58 }
0x1e5d   :  { %v1693_v8 = vmul.f32 %v1691_v34, %v1674_v18 }
0x1e5f   :  { %v1694_v47 = vmul.f32 4.6151204, %v1693_v8  ;;  %1761 = vperm.xlu0 %2747, %v1693_v8  }
0x1e61   :  { %v2925_v57 = vpop.eup %2924  ;;  %v1695_v59 = vmul.f32 1.442695, %v1694_v47 }
0x1e62   :  { %2146 = vrot.lane.b32.xlu1 %v2925_v57, %s3070_s0  ;;  %v2927_v40 = vpop.eup %2926 }
0x1e63   :  { %2928 = vpow2.f32 %v1695_v59  ;;  %v2690_v60 = vadd.f32 -1.0, %v2927_v40 }
0x1e64   :  { %2930 = vpow2.f32 %v2712_v62 }
0x1e69   :  { %v2929_v43 = vpop.eup %2928 }
0x1e6a   :  { %v2695_v44 = vadd.f32 -1.0, %v2929_v43  ;;  %v2931_v63 = vpop.eup %2930 }
0x1e6b   :  { %v2127_v0 = vadd.f32 1.0, %v2931_v63 }
0x1e6c   :  { %v3588_v61 = vadd.f32 %v2695_v44, %v2690_v60 }
0x1e6d   :  { %2932 = vrcp.f32 %v2127_v0  ;;  %v2139_v14 = vand.u32 2147483648, %v2127_v0  ;;  %vm2133_vm0 = vweird.f32 %v2127_v0  ;;  %v2137_v13 = vand.u32 2147483647, %v2127_v0 }
0x1e6f   :  { %v2140_v55 = vor.u32 1.1754944e-38, %v2139_v14  ;;  %vm2138_vm2 = vcmp.eq.f32.partialorder %v2137_v13, 8.507059e+37 }
0x1e73   :  { %v2933_v1 = vpop.eup %2932 }
0x1e74   :  { %v2129_v2 = vmul.f32 %v2933_v1, %v2127_v0  ;;  %vm2134_vm15 = vweird.f32 %v2933_v1 }
0x1e75   :  { %vm2135_vm1 = vmor %vm2133_vm0, %vm2134_vm15 }
0x1e76   :  { %v2130_v9 = vsub.f32 1.0, %v2129_v2 }
0x1e78   :  { %v2131_v11 = vmul.f32 %v2933_v1, %v2130_v9  ;;  %v1162_v9 = vadd.f32 %v3458_v54, %v3456_v52 }
0x1e7a   :  { %v2132_v12 = vadd.f32 %v2933_v1, %v2131_v11 }
0x1e7c   :  { %v2136_v22 = vsel %vm2135_vm1, %v2933_v1, %v2132_v12  ;;  %v1921_v1 = vpop.f32.mrf.mxu3 }
0x1e7d   :  { %v2141_v27 = vsel %vm2138_vm2, %v2140_v55, %v2136_v22 }
0x1e7e   :  { %v2144_v48 = vmul.f32 %v2141_v27, %v3562_v10 }
0x1ed1   :  { %v1762_v21 = vpop.permute.xlu0 %1761 }
0x1ed2   :  { %v1764_v24 = vmul.f32 %v1762_v21, %v3529_v50 }
0x1ed4   :  { %v1788_v7 = vadd.f32 %v1787_v3, %v1764_v24  ;;  %v2147_v15 = vpop.permute.xlu1 %2146  ;;  %v1347_v3 = vpop.f32.mrf.mxu0 }
0x1ed5   :  { %v2149_v28 = vmul.f32 %v2147_v15, %v2141_v27 }
0x1ed6   :  { %v1790_v29 = vadd.f32 %v1788_v7, %v3533_v41  ;;  %v1412_v7 = vpop.f32.mrf.mxu1 }
0x1ed7   :  { %2151 = vrot.lane.b32.xlu1 %v2149_v28, %s3071_s7  ;;  %v1413_v28 = vadd.f32 %v1412_v7, %v1347_v3 }
0x1ed8   :  { %2934 = vtanh.f32 %v1790_v29  ;;  %v2699_v30 = vmul.f32 -1.442695, %v1790_v29 }
0x1eda   :  { %2936 = vpow2.f32 %v2699_v30 }
0x1ede   :  { %v2935_v20 = vpop.eup %2934 }
0x1edf   :  { %1813 = vrot.lane.b32.xlu2 %v2935_v20, %s3072_s8 }
0x1ee0   :  { %v2937_v32 = vpop.eup %2936 }
0x1ee1   :  { %v1794_v33 = vadd.f32 1.0, %v2937_v32 }
0x1ee3   :  { %2938 = vrcp.f32 %v1794_v33  ;;  %v1806_v23 = vand.u32 2147483648, %v1794_v33  ;;  %vm1800_vm4 = vweird.f32 %v1794_v33  ;;  %v1804_v17 = vand.u32 2147483647, %v1794_v33 }
0x1ee5   :  { %v1807_v42 = vor.u32 1.1754944e-38, %v1806_v23  ;;  %vm1805_vm6 = vcmp.eq.f32.partialorder %v1804_v17, 8.507059e+37 }
0x1ee9   :  { %v2939_v35 = vpop.eup %2938 }
0x1eea   :  { %v1796_v36 = vmul.f32 %v2939_v35, %v1794_v33  ;;  %vm1801_vm3 = vweird.f32 %v2939_v35 }
0x1eeb   :  { %vm1802_vm5 = vmor %vm1800_vm4, %vm1801_vm3 }
0x1eec   :  { %v1797_v16 = vsub.f32 1.0, %v1796_v36 }
0x1eee   :  { %v1798_v18 = vmul.f32 %v2939_v35, %v1797_v16 }
0x1ef0   :  { %v1799_v19 = vadd.f32 %v2939_v35, %v1798_v18 }
0x1ef2   :  { %v1803_v39 = vsel %vm1802_vm5, %v2939_v35, %v1799_v19  ;;  %v1425_v35 = vadd.f32 %v3463_v56, %v1413_v28 }
0x1ef3   :  { %v1808_v46 = vsel %vm1805_vm6, %v1807_v42, %v1803_v39 }
0x1ef4   :  { %v1811_v53 = vmul.f32 %v1808_v46, %v3582_v45 }
0x1f39   :  { %v1814_v37 = vpop.permute.xlu2 %1813 }
0x1f3a   :  { %v1816_v38 = vmul.f32 %v1814_v37, %v1808_v46 }
0x1f3c   :  { %1818 = vrot.lane.b32.xlu2 %v1816_v38, %s3073_s9 }
0x1f49   :  { %v2152_v49 = vpop.permute.xlu1 %2151 }
0x1f4a   :  { %v3596_v31 = vadd.f32 %v2152_v49, %v2144_v48 }
0x1f4c   :  { %2940 = vtanh.f32 %v3596_v31 }
0x1f52   :  { %v2941_v51 = vpop.eup %2940 }
0x1f53   :  { %2157 = vrot.lane.b32.xlu0 %v2941_v51, %s3070_s0 }
0x1f96   :  { %v1819_v34 = vpop.permute.xlu2 %1818 }
0x1f97   :  { %v3601_v58 = vadd.f32 %v1819_v34, %v1811_v53 }
0x1f99   :  { %2942 = vtanh.f32 %v3601_v58 }
0x1f9f   :  { %v2943_v8 = vpop.eup %2942 }
0x1fa0   :  { %1824 = vrot.lane.b32.xlu1 %v2943_v8, %s3074_s10 }
0x1fc5   :  { %v2158_v47 = vpop.permute.xlu0 %2157 }
0x1fc6   :  { %v2160_v10 = vmul.f32 %v2158_v47, %v2141_v27 }
0x1fc8   :  { %2168 = vrot.lane.b32.xlu2 %v2160_v10, %s3071_s7 }
0x2012   :  { %v1825_v57 = vpop.permute.xlu1 %1824 }
0x2013   :  { %v1827_v59 = vmul.f32 %v1825_v57, %v1808_v46 }
0x2015   :  { %v1828_v40 = vmul.f32 4.6151204, %v1827_v59  ;;  %1895 = vperm.xlu0 %2747, %v1827_v59  }
0x2017   :  { %v1829_v43 = vmul.f32 1.442695, %v1828_v40 }
0x2019   :  { %2944 = vpow2.f32 %v1829_v43 }
0x201f   :  { %v2945_v60 = vpop.eup %2944 }
0x2020   :  { %v2700_v45 = vadd.f32 -1.0, %v2945_v60 }
0x2022   :  { %v3607_v44 = vadd.f32 %v2700_v45, %v3588_v61  ;;  %v2169_v62 = vpop.permute.xlu2 %2168 }
0x2023   :  { %2713 = vmatmul.msk.f32.vlgmr.msrb.gmra.mxu3 %vm189_vm9, %v2169_v62  ;;  %2716 = vmatmul.msk.f32.vlgmr.msra.gmra.mxu2 %vm189_vm9, %v2169_v62 }
0x2024   :  { %2452 = vmatpush.msrb.mxu3 %v3469_v4 }
0x2026   :  { %2453 = vmatpush.msrb.mxu3 %v3471_v25 }
0x2028   :  { %2454 = vmatpush.msrb.mxu3 %v3474_v5  ;;  %v2668_v5 = vmul.f32 -1.442695, %v1162_v9 }
0x202a   :  { %2455 = vmatpush.msrb.mxu3 %v3477_v26 }
0x2087   :  { %v1896_v63 = vpop.permute.xlu0 %1895 }
0x2088   :  { %v1898_v0 = vmul.f32 %v1896_v63, %v3529_v50 }
0x208a   :  { %v1922_v2 = vadd.f32 %v1921_v1, %v1898_v0 }
0x208c   :  { %v1924_v61 = vadd.f32 %v1922_v2, %v3533_v41 }
0x208e   :  { %2946 = vtanh.f32 %v1924_v61  ;;  %v2704_v25 = vmul.f32 -1.442695, %v1924_v61 }
0x208f   :  { %2948 = vtanh.f32 %v1162_v9 }
0x2090   :  { %2950 = vpow2.f32 %v2704_v25 }
0x2091   :  { %2952 = vpow2.f32 %v2668_v5 }
0x2094   :  { %v2947_v11 = vpop.eup %2946 }
0x2095   :  { %1947 = vrot.lane.b32.xlu1 %v2947_v11, %s3072_s8  ;;  %v2949_v4 = vpop.eup %2948 }
0x2096   :  { %v2951_v26 = vpop.eup %2950 }
0x2097   :  { %v1928_v12 = vadd.f32 1.0, %v2951_v26  ;;  %v2953_v14 = vpop.eup %2952 }
0x2098   :  { %v1166_v13 = vadd.f32 1.0, %v2953_v14 }
0x2099   :  { %2954 = vrcp.f32 %v1928_v12  ;;  %v1940_v29 = vand.u32 2147483648, %v1928_v12  ;;  %vm1934_vm8 = vweird.f32 %v1928_v12  ;;  %v1938_v20 = vand.u32 2147483647, %v1928_v12 }
0x209a   :  { %2956 = vrcp.f32 %v1166_v13  ;;  %v1178_v39 = vand.u32 2147483648, %v1166_v13  ;;  %vm1172_vm13 = vweird.f32 %v1166_v13  ;;  %v1176_v42 = vand.u32 2147483647, %v1166_v13 }
0x209b   :  { %v1941_v36 = vor.u32 1.1754944e-38, %v1940_v29  ;;  %vm1939_vm11 = vcmp.eq.f32.partialorder %v1938_v20, 8.507059e+37  ;;  %v2055_v29 = vpop.f32.mrf.mxu3 }
0x209c   :  { %v1179_v46 = vor.u32 1.1754944e-38, %v1178_v39  ;;  %vm1177_vm15 = vcmp.eq.f32.partialorder %v1176_v42, 8.507059e+37 }
0x209d   :  { %1185 = vrot.lane.b32.xlu1 %v2949_v4, %s3070_s0 }
0x209f   :  { %v2955_v21 = vpop.eup %2954 }
0x20a0   :  { %v1930_v22 = vmul.f32 %v2955_v21, %v1928_v12  ;;  %v2957_v54 = vpop.eup %2956  ;;  %vm1935_vm7 = vweird.f32 %v2955_v21 }
0x20a1   :  { %v1168_v55 = vmul.f32 %v2957_v54, %v1166_v13  ;;  %vm1936_vm10 = vmor %vm1934_vm8, %vm1935_vm7  ;;  %vm1173_vm12 = vweird.f32 %v2957_v54 }
0x20a2   :  { %v1931_v52 = vsub.f32 1.0, %v1930_v22  ;;  %vm1174_vm14 = vmor %vm1172_vm13, %vm1173_vm12 }
0x20a3   :  { %v1169_v27 = vsub.f32 1.0, %v1168_v55 }
0x20a4   :  { %v1932_v24 = vmul.f32 %v2955_v21, %v1931_v52 }
0x20a5   :  { %v1170_v33 = vmul.f32 %v2957_v54, %v1169_v27 }
0x20a6   :  { %v1933_v15 = vadd.f32 %v2955_v21, %v1932_v24  ;;  %v2254_v30 = vpop.f32.mrf.mxu2 }
0x20a7   :  { %v2257_v16 = vadd.f32 %v2254_v30, %v1425_v35  ;;  %v1171_v17 = vadd.f32 %v2957_v54, %v1170_v33 }
0x20a8   :  { %v1937_v32 = vsel %vm1936_vm10, %v2955_v21, %v1933_v15 }
0x20a9   :  { %v1942_v19 = vsel %vm1939_vm11, %v1941_v36, %v1937_v32  ;;  %2958 = vtanh.f32 %v2257_v16  ;;  %v1175_v37 = vsel %vm1174_vm14, %v2957_v54, %v1171_v17  ;;  %v2717_v53 = vmul.f32 -1.442695, %v2257_v16 }
0x20aa   :  { %v1180_v48 = vsel %vm1177_vm15, %v1179_v46, %v1175_v37  ;;  %v1945_v40 = vmul.f32 %v1942_v19, %v3601_v58 }
0x20ab   :  { %2960 = vpow2.f32 %v2717_v53  ;;  %v1183_v58 = vmul.f32 %v1180_v48, %v3413_v6 }
0x20af   :  { %v2959_v51 = vpop.eup %2958 }
0x20b1   :  { %v2961_v34 = vpop.eup %2960 }
0x20b2   :  { %v2261_v8 = vadd.f32 1.0, %v2961_v34 }
0x20b4   :  { %2962 = vrcp.f32 %v2261_v8  ;;  %v2273_v62 = vand.u32 2147483648, %v2261_v8  ;;  %vm2267_vm1 = vweird.f32 %v2261_v8  ;;  %v2271_v63 = vand.u32 2147483647, %v2261_v8 }
0x20b6   :  { %v2274_v1 = vor.u32 1.1754944e-38, %v2273_v62  ;;  %vm2272_vm3 = vcmp.eq.f32.partialorder %v2271_v63, 8.507059e+37 }
0x20ba   :  { %v2963_v47 = vpop.eup %2962 }
0x20bb   :  { %v2263_v10 = vmul.f32 %v2963_v47, %v2261_v8  ;;  %vm2268_vm0 = vweird.f32 %v2963_v47 }
0x20bc   :  { %vm2269_vm2 = vmor %vm2267_vm1, %vm2268_vm0 }
0x20bd   :  { %v2264_v57 = vsub.f32 1.0, %v2263_v10 }
0x20bf   :  { %v2265_v59 = vmul.f32 %v2963_v47, %v2264_v57 }
0x20c1   :  { %v2266_v45 = vadd.f32 %v2963_v47, %v2265_v59  ;;  %v1350_v59 = vpop.f32.mrf.mxu0 }
0x20c3   :  { %v2270_v0 = vsel %vm2269_vm2, %v2963_v47, %v2266_v45 }
0x20c4   :  { %v2275_v61 = vsel %vm2272_vm3, %v2274_v1, %v2270_v0 }
0x20c5   :  { %v2278_v26 = vmul.f32 %v2275_v61, %v3596_v31 }
0x2107   :  { %v1948_v18 = vpop.permute.xlu1 %1947 }
0x2108   :  { %v1950_v23 = vmul.f32 %v1948_v18, %v1942_v19 }
0x210a   :  { %1952 = vrot.lane.b32.xlu2 %v1950_v23, %s3073_s9 }
0x210f   :  { %v1186_v38 = vpop.permute.xlu1 %1185 }
0x2110   :  { %v1188_v49 = vmul.f32 %v1186_v38, %v1180_v48 }
0x2112   :  { %2280 = vrot.lane.b32.xlu2 %v2959_v51, %s3070_s0  ;;  %1190 = vrot.lane.b32.xlu1 %v1188_v49, %s3071_s7 }
0x2164   :  { %v1953_v43 = vpop.permute.xlu2 %1952 }
0x2165   :  { %v3626_v60 = vadd.f32 %v1953_v43, %v1945_v40 }
0x2167   :  { %2964 = vtanh.f32 %v3626_v60 }
0x216c   :  { %v2281_v2 = vpop.permute.xlu2 %2280 }
0x216d   :  { %v2965_v9 = vpop.eup %2964  ;;  %v2283_v11 = vmul.f32 %v2281_v2, %v2275_v61 }
0x216e   :  { %1958 = vrot.lane.b32.xlu0 %v2965_v9, %s3074_s10 }
0x216f   :  { %2285 = vrot.lane.b32.xlu2 %v2283_v11, %s3071_s7 }
0x2184   :  { %v1191_v4 = vpop.permute.xlu1 %1190 }
0x2185   :  { %v1193_v25 = vadd.f32 %v1191_v4, %v1183_v58 }
0x2187   :  { %2966 = vtanh.f32 %v1193_v25 }
0x218d   :  { %v2967_v5 = vpop.eup %2966 }
0x218e   :  { %1196 = vrot.lane.b32.xlu1 %v2967_v5, %s3070_s0 }
0x21c9   :  { %v2286_v12 = vpop.permute.xlu2 %2285 }
0x21ca   :  { %v3634_v14 = vadd.f32 %v2286_v12, %v2278_v26 }
0x21cc   :  { %2968 = vtanh.f32 %v3634_v14 }
0x21d2   :  { %v2969_v13 = vpop.eup %2968 }
0x21d3   :  { %2291 = vrot.lane.b32.xlu2 %v2969_v13, %s3070_s0 }
0x21e0   :  { %v1959_v21 = vpop.permute.xlu0 %1958 }
0x21e1   :  { %v1961_v22 = vmul.f32 %v1959_v21, %v1942_v19 }
0x21e3   :  { %v1962_v52 = vmul.f32 4.6151204, %v1961_v22  ;;  %2029 = vperm.xlu0 %2747, %v1961_v22  }
0x21e5   :  { %v1963_v6 = vmul.f32 1.442695, %v1962_v52 }
0x21e7   :  { %2970 = vpow2.f32 %v1963_v6 }
0x21ed   :  { %v2971_v54 = vpop.eup %2970 }
0x21ee   :  { %v2705_v24 = vadd.f32 -1.0, %v2971_v54 }
0x21f0   :  { %v3639_v55 = vadd.f32 %v2705_v24, %v3607_v44 }
0x2200   :  { %v1197_v31 = vpop.permute.xlu1 %1196 }
0x2201   :  { %v1199_v3 = vmul.f32 %v1197_v31, %v1180_v48 }
0x2203   :  { %1201 = vrot.lane.b32.xlu1 %v1199_v3, %s3071_s7 }
0x222d   :  { %v2292_v7 = vpop.permute.xlu2 %2291 }
0x222e   :  { %v2294_v15 = vmul.f32 %v2292_v7, %v2275_v61 }
0x2230   :  { %2302 = vrot.lane.b32.xlu2 %v2294_v15, %s3071_s7 }
0x2255   :  { %v2030_v27 = vpop.permute.xlu0 %2029 }
0x2256   :  { %v2032_v28 = vmul.f32 %v2030_v27, %v3529_v50 }
0x2258   :  { %v2056_v20 = vadd.f32 %v2055_v29, %v2032_v28 }
0x225a   :  { %v2058_v30 = vadd.f32 %v2056_v20, %v3533_v41 }
0x225c   :  { %2972 = vtanh.f32 %v2058_v30  ;;  %v2709_v36 = vmul.f32 -1.442695, %v2058_v30 }
0x225e   :  { %2974 = vpow2.f32 %v2709_v36 }
0x2262   :  { %v2973_v32 = vpop.eup %2972 }
0x2263   :  { %2081 = vrot.lane.b32.xlu0 %v2973_v32, %s3072_s8 }
0x2264   :  { %v2975_v16 = vpop.eup %2974 }
0x2265   :  { %v2062_v18 = vadd.f32 1.0, %v2975_v16 }
0x2267   :  { %2976 = vrcp.f32 %v2062_v18  ;;  %v2074_v37 = vand.u32 2147483648, %v2062_v18  ;;  %vm2068_vm5 = vweird.f32 %v2062_v18  ;;  %v2072_v46 = vand.u32 2147483647, %v2062_v18 }
0x2269   :  { %v2075_v48 = vor.u32 1.1754944e-38, %v2074_v37  ;;  %vm2073_vm7 = vcmp.eq.f32.partialorder %v2072_v46, 8.507059e+37 }
0x226d   :  { %v2977_v19 = vpop.eup %2976 }
0x226e   :  { %v2064_v23 = vmul.f32 %v2977_v19, %v2062_v18  ;;  %vm2069_vm4 = vweird.f32 %v2977_v19 }
0x226f   :  { %vm2070_vm6 = vmor %vm2068_vm5, %vm2069_vm4  ;;  %vm2543_vm4 = vcmask 17408  }
0x2270   :  { %v2065_v17 = vsub.f32 1.0, %v2064_v23 }
0x2272   :  { %v2066_v39 = vmul.f32 %v2977_v19, %v2065_v17 }
0x2274   :  { %v2067_v42 = vadd.f32 %v2977_v19, %v2066_v39 }
0x2275   :  { %v1202_v44 = vpop.permute.xlu1 %1201 }
0x2276   :  { %1205 = vst.msk [vmem:[#allocation4 + $0x38] sm:$0xff] %vm189_vm9, %v1202_v44  ;;  %v2071_v38 = vsel %vm2070_vm6, %v2977_v19, %v2067_v42 }
0x2277   :  { %v2076_v51 = vsel %vm2073_vm7, %v2075_v48, %v2071_v38 }
0x2278   :  { %v2079_v34 = vmul.f32 %v2076_v51, %v3626_v60 }
0x227d   :  { %v1279_v33 = vld [vmem:[#allocation4 + $0x38] sm:$0xff] }
0x227e   :  { %2686 = vmatmul.msk.f32.gmra.mxu1 %vm189_vm9, %v1279_v33 }
0x228a   :  { %v2303_v35 = vpop.permute.xlu2 %2302 }
0x228b   :  { %2718 = vmatmul.msk.f32.vlgmr.msra.gmra.mxu3 %vm189_vm9, %v2303_v35  ;;  %2721 = vmatmul.msk.f32.vlgmr.msrb.gmra.mxu2 %vm189_vm9, %v2303_v35 }
0x22d5   :  { %v2082_v49 = vpop.permute.xlu0 %2081 }
0x22d6   :  { %v2084_v53 = vmul.f32 %v2082_v49, %v2076_v51 }
0x22d8   :  { %2086 = vrot.lane.b32.xlu0 %v2084_v53, %s3073_s9 }
0x22fb   :  { %v1415_v57 = vpop.f32.mrf.mxu1 }
0x22fc   :  { %v1416_v40 = vadd.f32 %v1415_v57, %v1350_v59 }
0x22fe   :  { %v1426_v45 = vadd.f32 %v3463_v56, %v1416_v40  ;;  %v2189_v56 = vpop.f32.mrf.mxu3 }
0x230e   :  { %v2388_v43 = vpop.f32.mrf.mxu2 }
0x230f   :  { %v2391_v62 = vadd.f32 %v2388_v43, %v1426_v45 }
0x2311   :  { %v2722_v13 = vmul.f32 -1.442695, %v2391_v62 }
0x234a   :  { %v2087_v8 = vpop.permute.xlu0 %2086 }
0x234b   :  { %v3652_v47 = vadd.f32 %v2087_v8, %v2079_v34 }
0x234d   :  { %2978 = vtanh.f32 %v3652_v47 }
0x234e   :  { %2980 = vtanh.f32 %v2391_v62 }
0x2353   :  { %v2979_v10 = vpop.eup %2978 }
0x2354   :  { %2092 = vrot.lane.b32.xlu0 %v2979_v10, %s3074_s10  ;;  %v2981_v2 = vpop.eup %2980 }
0x23c6   :  { %v2093_v63 = vpop.permute.xlu0 %2092 }
0x23c7   :  { %v2095_v0 = vmul.f32 %v2093_v63, %v2076_v51 }
0x23c9   :  { %v2096_v1 = vmul.f32 4.6151204, %v2095_v0  ;;  %2163 = vperm.xlu1 %2746, %v2095_v0   ;;  %v2323_v0 = vpop.f32.mrf.mxu3 }
0x23cb   :  { %v2097_v60 = vmul.f32 1.442695, %v2096_v1 }
0x23cd   :  { %2982 = vpow2.f32 %v2097_v60 }
0x23d1   :  { %2414 = vrot.lane.b32.xlu1 %v2981_v2, %s3070_s0 }
0x23d3   :  { %v2983_v61 = vpop.eup %2982 }
0x23d4   :  { %v2710_v9 = vadd.f32 -1.0, %v2983_v61 }
0x23d6   :  { %v3659_v11 = vadd.f32 %v2710_v9, %v3639_v55 }
0x243b   :  { %v2164_v58 = vpop.permute.xlu1 %2163 }
0x243c   :  { %v2166_v4 = vmul.f32 %v2164_v58, %v3529_v50 }
0x243e   :  { %v2190_v25 = vadd.f32 %v2189_v56, %v2166_v4 }
0x2440   :  { %v2192_v5 = vadd.f32 %v2190_v25, %v3533_v41 }
0x2442   :  { %2984 = vtanh.f32 %v2192_v5  ;;  %v2714_v12 = vmul.f32 -1.442695, %v2192_v5 }
0x2443   :  { %v2415_v17 = vpop.permute.xlu1 %2414 }
0x2444   :  { %2986 = vpow2.f32 %v2714_v12 }
0x2445   :  { %2988 = vpow2.f32 %v2722_v13 }
0x2448   :  { %v2985_v26 = vpop.eup %2984 }
0x2449   :  { %2215 = vrot.lane.b32.xlu2 %v2985_v26, %s3072_s8 }
0x244a   :  { %v2987_v21 = vpop.eup %2986 }
0x244b   :  { %v2196_v22 = vadd.f32 1.0, %v2987_v21  ;;  %v2989_v52 = vpop.eup %2988 }
0x244c   :  { %v2395_v6 = vadd.f32 1.0, %v2989_v52 }
0x244d   :  { %2990 = vrcp.f32 %v2196_v22  ;;  %v2208_v28 = vand.u32 2147483648, %v2196_v22  ;;  %vm2202_vm10 = vweird.f32 %v2196_v22  ;;  %v2206_v29 = vand.u32 2147483647, %v2196_v22 }
0x244e   :  { %2992 = vrcp.f32 %v2395_v6  ;;  %v2407_v16 = vand.u32 2147483648, %v2395_v6  ;;  %vm2401_vm14 = vweird.f32 %v2395_v6  ;;  %v2405_v18 = vand.u32 2147483647, %v2395_v6 }
0x244f   :  { %v2209_v32 = vor.u32 1.1754944e-38, %v2208_v28  ;;  %vm2207_vm12 = vcmp.eq.f32.partialorder %v2206_v29, 8.507059e+37 }
0x2450   :  { %v2408_v23 = vor.u32 1.1754944e-38, %v2407_v16  ;;  %vm2406_vm0 = vcmp.eq.f32.partialorder %v2405_v18, 8.507059e+37 }
0x2453   :  { %v2991_v54 = vpop.eup %2990 }
0x2454   :  { %v2198_v24 = vmul.f32 %v2991_v54, %v2196_v22  ;;  %v2993_v31 = vpop.eup %2992  ;;  %vm2203_vm8 = vweird.f32 %v2991_v54 }
0x2455   :  { %v2397_v3 = vmul.f32 %v2993_v31, %v2395_v6  ;;  %vm2204_vm11 = vmor %vm2202_vm10, %vm2203_vm8  ;;  %vm2402_vm13 = vweird.f32 %v2993_v31 }
0x2456   :  { %v2199_v55 = vsub.f32 1.0, %v2198_v24  ;;  %vm2403_vm15 = vmor %vm2401_vm14, %vm2402_vm13 }
0x2457   :  { %v2398_v15 = vsub.f32 1.0, %v2397_v3 }
0x2458   :  { %v2200_v7 = vmul.f32 %v2991_v54, %v2199_v55 }
0x2459   :  { %v2399_v20 = vmul.f32 %v2993_v31, %v2398_v15 }
0x245a   :  { %v2201_v27 = vadd.f32 %v2991_v54, %v2200_v7 }
0x245b   :  { %v2400_v35 = vadd.f32 %v2993_v31, %v2399_v20 }
0x245c   :  { %v2205_v30 = vsel %vm2204_vm11, %v2991_v54, %v2201_v27  ;;  %vm2583_vm11 = vcmask 1041408  }
0x245d   :  { %v2210_v33 = vsel %vm2207_vm12, %v2209_v32, %v2205_v30  ;;  %v2404_v19 = vsel %vm2403_vm15, %v2993_v31, %v2400_v35 }
0x245e   :  { %v2409_v39 = vsel %vm2406_vm0, %v2408_v23, %v2404_v19  ;;  %v2213_v37 = vmul.f32 %v2210_v33, %v3652_v47  ;;  %vm2618_vm0 = vcmask 1024  }
0x245f   :  { %v2417_v42 = vmul.f32 %v2415_v17, %v2409_v39  ;;  %v2412_v48 = vmul.f32 %v2409_v39, %v3634_v14  ;;  %v2504_v17 = vld [vmem:[%s3739_s1 + $0x2] sm:$0x3] }
0x24a3   :  { %v2216_v44 = vpop.permute.xlu2 %2215 }
0x24a4   :  { %v2218_v36 = vmul.f32 %v2216_v44, %v2210_v33 }
0x24a6   :  { %2220 = vrot.lane.b32.xlu0 %v2218_v36, %s3073_s9 }
0x24ae   :  { %2419 = vrot.lane.b32.xlu0 %v2417_v42, %s3071_s7 }
0x2518   :  { %v2221_v46 = vpop.permute.xlu0 %2220 }
0x2519   :  { %v2223_v38 = vadd.f32 %v2221_v46, %v2213_v37 }
0x251b   :  { %2994 = vtanh.f32 %v2223_v38 }
0x2520   :  { %v2420_v49 = vpop.permute.xlu0 %2419 }
0x2521   :  { %v2995_v51 = vpop.eup %2994  ;;  %v2422_v53 = vadd.f32 %v2420_v49, %v2412_v48 }
0x2522   :  { %2226 = vrot.lane.b32.xlu2 %v2995_v51, %s3074_s10 }
0x2523   :  { %2996 = vtanh.f32 %v2422_v53 }
0x2529   :  { %v2997_v34 = vpop.eup %2996 }
0x252a   :  { %2425 = vrot.lane.b32.xlu2 %v2997_v34, %s3070_s0 }
0x257c   :  { %v2227_v8 = vpop.permute.xlu2 %2226 }
0x257d   :  { %v2229_v10 = vmul.f32 %v2227_v8, %v2210_v33 }
0x257f   :  { %v2230_v57 = vmul.f32 4.6151204, %v2229_v10  ;;  %2297 = vperm.xlu1 %2746, %v2229_v10  }
0x2581   :  { %v2231_v59 = vmul.f32 1.442695, %v2230_v57 }
0x2583   :  { %2998 = vpow2.f32 %v2231_v59 }
0x2584   :  { %v2426_v47 = vpop.permute.xlu2 %2425 }
0x2585   :  { %v2428_v40 = vmul.f32 %v2426_v47, %v2409_v39  ;;  %v2512_v39 = vmul.f32 4.6151204, %v2504_v17 }
0x2587   :  { %2436 = vrot.lane.b32.xlu1 %v2428_v40, %s3071_s7  ;;  %v2521_v46 = vmul.f32 1.442695, %v2512_v39  ;;  %v3076_v39 = vmov 3.0  }
0x2589   :  { %v2999_v14 = vpop.eup %2998 }
0x258a   :  { %v2715_v43 = vadd.f32 -1.0, %v2999_v14 }
0x258c   :  { %v2234_v45 = vadd.f32 %v2715_v43, %v3659_v11 }
0x25f1   :  { %v2298_v62 = vpop.permute.xlu1 %2297 }
0x25f2   :  { %v2300_v63 = vmul.f32 %v2298_v62, %v3529_v50 }
0x25f4   :  { %v2324_v1 = vadd.f32 %v2323_v0, %v2300_v63 }
0x25f6   :  { %v2326_v60 = vadd.f32 %v2324_v1, %v3533_v41 }
0x25f8   :  { %3000 = vtanh.f32 %v2326_v60  ;;  %v2719_v9 = vmul.f32 -1.442695, %v2326_v60 }
0x25f9   :  { %v2437_v2 = vpop.permute.xlu1 %2436 }
0x25fa   :  { %2723 = vmatmul.msk.f32.vlgmr.msrb.gmra.mxu3 %vm189_vm9, %v2437_v2  ;;  %3002 = vpow2.f32 %v2719_v9 }
0x25fe   :  { %v3001_v61 = vpop.eup %3000 }
0x25ff   :  { %2349 = vrot.lane.b32.xlu0 %v3001_v61, %s3072_s8 }
0x2600   :  { %v3003_v58 = vpop.eup %3002 }
0x2601   :  { %v2330_v4 = vadd.f32 1.0, %v3003_v58  ;;  %v2507_v58 = vld [vmem:[%s3739_s1 + $0x8] sm:$0x3] }
0x2603   :  { %3004 = vrcp.f32 %v2330_v4  ;;  %v2342_v12 = vand.u32 2147483648, %v2330_v4  ;;  %vm2336_vm2 = vweird.f32 %v2330_v4  ;;  %v2340_v13 = vand.u32 2147483647, %v2330_v4 }
0x2605   :  { %v2343_v22 = vor.u32 1.1754944e-38, %v2342_v12  ;;  %vm2341_vm9 = vcmp.eq.f32.partialorder %v2340_v13, 8.507059e+37  ;;  %v2510_v13 = vld [vmem:[%s3739_s1 + $0xe] sm:$0x3] }
0x2609   :  { %v3005_v11 = vpop.eup %3004 }
0x260a   :  { %v2332_v56 = vmul.f32 %v3005_v11, %v2330_v4  ;;  %vm2337_vm1 = vweird.f32 %v3005_v11  ;;  %v2508_v4 = vld [vmem:[%s3739_s1 + $0xa] sm:$0x3] }
0x260b   :  { %vm2338_vm3 = vmor %vm2336_vm2, %vm2337_vm1 }
0x260c   :  { %v2333_v25 = vsub.f32 1.0, %v2332_v56  ;;  %v2516_v56 = vmul.f32 4.6151204, %v2508_v4 }
0x260e   :  { %v2334_v5 = vmul.f32 %v3005_v11, %v2333_v25 }
0x2610   :  { %v2335_v26 = vadd.f32 %v3005_v11, %v2334_v5  ;;  %v2529_v5 = vmul.f32 1.442695, %v2516_v56 }
0x2612   :  { %v2339_v21 = vsel %vm2338_vm3, %v3005_v11, %v2335_v26  ;;  %v2515_v11 = vmul.f32 4.6151204, %v2507_v58  ;;  %v2505_v26 = vld [vmem:[%s3739_s1 + $0x4] sm:$0x3] }
0x2613   :  { %v2344_v6 = vsel %vm2341_vm9, %v2343_v22, %v2339_v21  ;;  %v2513_v12 = vmul.f32 4.6151204, %v2505_v26  ;;  %v2518_v21 = vmul.f32 4.6151204, %v2510_v13 }
0x2614   :  { %v2347_v24 = vmul.f32 %v2344_v6, %v2223_v38  ;;  %v2527_v25 = vmul.f32 1.442695, %v2515_v11 }
0x2671   :  { %v2350_v52 = vpop.permute.xlu0 %2349 }
0x2672   :  { %v2352_v54 = vmul.f32 %v2350_v52, %v2344_v6  ;;  %v2533_v52 = vmul.f32 1.442695, %v2518_v21 }
0x2674   :  { %2354 = vrot.lane.b32.xlu2 %v2352_v54, %s3073_s9  ;;  %v2523_v54 = vmul.f32 1.442695, %v2513_v12 }
0x267d   :  { %v2457_v33 = vpop.f32.mrf.mxu3 }
0x26ce   :  { %v2355_v55 = vpop.permute.xlu2 %2354 }
0x26cf   :  { %v3677_v31 = vadd.f32 %v2355_v55, %v2347_v24 }
0x26d1   :  { %3006 = vtanh.f32 %v3677_v31 }
0x26d7   :  { %v3007_v3 = vpop.eup %3006 }
0x26d8   :  { %2360 = vrot.lane.b32.xlu0 %v3007_v3, %s3074_s10  ;;  %v2509_v3 = vld [vmem:[%s3739_s1 + $0xc] sm:$0x3] }
0x274a   :  { %v2361_v7 = vpop.permute.xlu0 %2360 }
0x274b   :  { %v2363_v15 = vmul.f32 %v2361_v7, %v2344_v6 }
0x274d   :  { %v2364_v27 = vmul.f32 4.6151204, %v2363_v15  ;;  %2431 = vperm.xlu1 %2746, %v2363_v15  }
0x274f   :  { %v2365_v28 = vmul.f32 1.442695, %v2364_v27  ;;  %v2517_v27 = vmul.f32 4.6151204, %v2509_v3 }
0x2751   :  { %3008 = vpow2.f32 %v2365_v28 }
0x2757   :  { %v3009_v29 = vpop.eup %3008 }
0x2758   :  { %v2720_v20 = vadd.f32 -1.0, %v3009_v29  ;;  %v2531_v29 = vmul.f32 1.442695, %v2517_v27 }
0x275a   :  { %v3681_v30 = vadd.f32 %v2720_v20, %v2234_v45 }
0x27bf   :  { %v2432_v32 = vpop.permute.xlu1 %2431 }
0x27c0   :  { %v2434_v44 = vmul.f32 %v2432_v32, %v3529_v50  ;;  %v2503_v50 = vld [vmem:[%s3739_s1] sm:$0x3] }
0x27c1   :  { %v2511_v42 = vmul.f32 4.6151204, %v2503_v50 }
0x27c2   :  { %v2458_v35 = vadd.f32 %v2457_v33, %v2434_v44 }
0x27c3   :  { %v2519_v38 = vmul.f32 1.442695, %v2511_v42 }
0x27c4   :  { %v2460_v36 = vadd.f32 %v2458_v35, %v3533_v41  ;;  %v2506_v41 = vld [vmem:[%s3739_s1 + $0x6] sm:$0x3]  ;;  %s3077_s1 = smov 125  }
0x27c5   :  { %v2514_v37 = vmul.f32 4.6151204, %v2506_v41 }
0x27c6   :  { %3010 = vtanh.f32 %v2460_v36  ;;  %v2724_v18 = vmul.f32 -1.442695, %v2460_v36 }
0x27c7   :  { %v2525_v48 = vmul.f32 1.442695, %v2514_v37 }
0x27c8   :  { %3012 = vpow2.f32 %v2724_v18 }
0x27cc   :  { %v3011_v16 = vpop.eup %3010 }
0x27cd   :  { %2483 = vrot.lane.b32.xlu2 %v3011_v16, %s3072_s8 }
0x27ce   :  { %v3013_v19 = vpop.eup %3012 }
0x27cf   :  { %v2464_v23 = vadd.f32 1.0, %v3013_v19 }
0x27d1   :  { %3014 = vrcp.f32 %v2464_v23  ;;  %v2476_v63 = vand.u32 2147483648, %v2464_v23  ;;  %vm2470_vm6 = vweird.f32 %v2464_v23  ;;  %v2474_v0 = vand.u32 2147483647, %v2464_v23 }
0x27d2   :  { %3016 = vpow2.f32 %v2521_v46 }
0x27d3   :  { %3018 = vpow2.f32 %v2519_v38  ;;  %v2477_v60 = vor.u32 1.1754944e-38, %v2476_v63  ;;  %vm2475_vm8 = vcmp.eq.f32.partialorder %v2474_v0, 8.507059e+37 }
0x27d4   :  { %3020 = vpow2.f32 %v2525_v48 }
0x27d5   :  { %3022 = vpow2.f32 %v2527_v25 }
0x27d6   :  { %3024 = vpow2.f32 %v2529_v5 }
0x27d7   :  { %v3015_v49 = vpop.eup %3014  ;;  %3026 = vpow2.f32 %v2533_v52 }
0x27d8   :  { %v2466_v51 = vmul.f32 %v3015_v49, %v2464_v23  ;;  %v3017_v53 = vpop.eup %3016  ;;  %vm2471_vm5 = vweird.f32 %v3015_v49  ;;  %3028 = vpow2.f32 %v2523_v54 }
0x27d9   :  { %v3019_v34 = vpop.eup %3018  ;;  %v2727_v8 = vadd.f32 -1.0, %v3017_v53  ;;  %vm2472_vm7 = vmor %vm2470_vm6, %vm2471_vm5  ;;  %3030 = vpow2.f32 %v2531_v29 }
0x27da   :  { %v3021_v10 = vpop.eup %3020  ;;  %v2726_v57 = vadd.f32 -1.0, %v3019_v34  ;;  %v2467_v59 = vsub.f32 1.0, %v2466_v51 }
0x27db   :  { %v2547_v47 = vsel %vm2543_vm4, %v2727_v8, 0.0  ;;  %v2729_v14 = vadd.f32 -1.0, %v3021_v10  ;;  %v3023_v22 = vpop.eup %3022 }
0x27dc   :  { %v2544_v40 = vsel %vm2543_vm4, %v2726_v57, 0.0  ;;  %v2468_v43 = vmul.f32 %v3015_v49, %v2467_v59  ;;  %v3025_v6 = vpop.eup %3024  ;;  %v2730_v24 = vadd.f32 -1.0, %v3023_v22 }
0x27dd   :  { %2545 = vadd.xlane.f32.xlu1 %v2544_v40  ;;  %v2553_v45 = vsel %vm2543_vm4, %v2729_v14, 0.0  ;;  %v2731_v55 = vadd.f32 -1.0, %v3025_v6  ;;  %v3027_v28 = vpop.eup %3026 }
0x27de   :  { %v2469_v62 = vadd.f32 %v3015_v49, %v2468_v43  ;;  %v2556_v7 = vsel %vm2543_vm4, %v2730_v24, 0.0  ;;  %v2733_v20 = vadd.f32 -1.0, %v3027_v28  ;;  %v3029_v32 = vpop.eup %3028 }
0x27df   :  { %v2559_v15 = vsel %vm2543_vm4, %v2731_v55, 0.0  ;;  %v2728_v33 = vadd.f32 -1.0, %v3029_v32  ;;  %v3031_v36 = vpop.eup %3030 }
0x27e0   :  { %v2473_v1 = vsel %vm2472_vm7, %v3015_v49, %v2469_v62  ;;  %v2565_v44 = vsel %vm2543_vm4, %v2733_v20, 0.0  ;;  %v2732_v16 = vadd.f32 -1.0, %v3031_v36 }
0x27e1   :  { %v3698_v61 = vsel %vm2475_vm8, %v2477_v60, %v2473_v1  ;;  %v2550_v35 = vsel %vm2543_vm4, %v2728_v33, 0.0 }
0x27e2   :  { %v2562_v18 = vsel %vm2543_vm4, %v2732_v16, 0.0  ;;  %v2481_v19 = vmul.f32 %v3698_v61, %v3677_v31 }
0x27e5   :  { %2557 = vadd.xlane.f32.xlu1 %v2556_v7 }
0x27ed   :  { %2566 = vadd.xlane.f32.xlu1 %v2565_v44 }
0x27f6   :  { %2548 = vadd.xlane.f32.xlu2 %v2547_v47 }
0x27fe   :  { %2554 = vadd.xlane.f32.xlu2 %v2553_v45 }
0x2806   :  { %2560 = vadd.xlane.f32.xlu2 %v2559_v15 }
0x2827   :  { %v2484_v2 = vpop.permute.xlu2 %2483 }
0x2828   :  { %v2486_v9 = vmul.f32 %v2484_v2, %v3698_v61 }
0x282a   :  { %2488 = vrot.lane.b32.xlu0 %v2486_v9, %s3073_s9 }
0x2850   :  { %v2546_v51 = vpop.xlane.xlu1 %2545 }
0x2854   :  { %2551 = vadd.xlane.f32.xlu0 %v2550_v35 }
0x2858   :  { %v2558_v45 = vpop.xlane.xlu1 %2557 }
0x285c   :  { %2563 = vadd.xlane.f32.xlu0 %v2562_v18 }
0x2860   :  { %v2567_v56 = vpop.xlane.xlu1 %2566 }
0x2869   :  { %v2549_v48 = vpop.xlane.xlu2 %2548 }
0x2871   :  { %v2555_v8 = vpop.xlane.xlu2 %2554 }
0x2879   :  { %v2561_v0 = vpop.xlane.xlu2 %2560 }
0x289c   :  { %v2489_v23 = vpop.permute.xlu0 %2488 }
0x289d   :  { %v2491_v17 = vadd.f32 %v2489_v23, %v2481_v19 }
0x289f   :  { %3032 = vtanh.f32 %v2491_v17 }
0x28a0   :  { %3034 = vrcp.f32 %v3076_v39 }
0x28a5   :  { %v3033_v50 = vpop.eup %3032 }
0x28a6   :  { %2494 = vrot.lane.b32.xlu2 %v3033_v50, %s3074_s10  ;;  %v3035_v42 = vpop.eup %3034 }
0x28a7   :  { %v2569_v41 = vmul.f32 3.0, %v3035_v42  ;;  %vm2573_vm10 = vweird.f32 %v3035_v42 }
0x28a9   :  { %v2570_v37 = vsub.f32 1.0, %v2569_v41 }
0x28ab   :  { %v2571_v46 = vmul.f32 %v3035_v42, %v2570_v37 }
0x28ad   :  { %v2572_v38 = vadd.f32 %v3035_v42, %v2571_v46 }
0x28af   :  { %v2574_v49 = vsel %vm2573_vm10, %v3035_v42, %v2572_v38 }
0x28b0   :  { %v2576_v53 = vmul.f32 %v2574_v49, %v2549_v48  ;;  %v2575_v34 = vmul.f32 %v2574_v49, %v2546_v51  ;;  %v2578_v40 = vmul.f32 %v2574_v49, %v2555_v8  ;;  %v2579_v63 = vmul.f32 %v2574_v49, %v2558_v45 }
0x28b1   :  { %v2580_v2 = vmul.f32 %v2574_v49, %v2561_v0  ;;  %v2582_v26 = vmul.f32 %v2574_v49, %v2567_v56 }
0x28b2   :  { %v2585_v10 = vsel %vm2583_vm11, %v2576_v53, 0.0  ;;  %v2584_v57 = vsel %vm2583_vm11, %v2575_v34, 0.0  ;;  %v2589_v62 = vsel %vm2583_vm11, %v2578_v40, 0.0  ;;  %v2591_v60 = vsel %vm2583_vm11, %v2579_v63, 0.0 }
0x28b3   :  { %v2586_v47 = vadd.f32 %v2585_v10, %v2584_v57  ;;  %v2593_v4 = vsel %vm2583_vm11, %v2580_v2, 0.0  ;;  %v2597_v13 = vsel %vm2583_vm11, %v2582_v26, 0.0 }
0x28c7   :  { %v2552_v31 = vpop.xlane.xlu0 %2551 }
0x28c8   :  { %v2577_v59 = vmul.f32 %v2574_v49, %v2552_v31 }
0x28ca   :  { %v2587_v14 = vsel %vm2583_vm11, %v2577_v59, 0.0 }
0x28cb   :  { %v2588_v43 = vadd.f32 %v2587_v14, %v2586_v47 }
0x28cd   :  { %v2590_v1 = vadd.f32 %v2589_v62, %v2588_v43 }
0x28cf   :  { %v2564_v9 = vpop.xlane.xlu0 %2563  ;;  %v2592_v58 = vadd.f32 %v2591_v60, %v2590_v1 }
0x28d0   :  { %v2581_v11 = vmul.f32 %v2574_v49, %v2564_v9 }
0x28d1   :  { %v2594_v25 = vadd.f32 %v2593_v4, %v2592_v58 }
0x28d2   :  { %v2595_v5 = vsel %vm2583_vm11, %v2581_v11, 0.0 }
0x28d3   :  { %v2596_v12 = vadd.f32 %v2595_v5, %v2594_v25 }
0x28d5   :  { %v2598_v21 = vadd.f32 %v2597_v13, %v2596_v12 }
0x28d7   :  { %3036 = vrcp.f32 %v2598_v21  ;;  %vm2604_vm12 = vweird.f32 %v2598_v21  ;;  %v2610_v15 = vand.u32 2147483648, %v2598_v21  ;;  %v2608_v28 = vand.u32 2147483647, %v2598_v21 }
0x28d9   :  { %v2611_v20 = vor.u32 1.1754944e-38, %v2610_v15  ;;  %vm2609_vm15 = vcmp.eq.f32.partialorder %v2608_v28, 8.507059e+37 }
0x28dd   :  { %v3037_v22 = vpop.eup %3036 }
0x28de   :  { %v2600_v52 = vmul.f32 %v3037_v22, %v2598_v21  ;;  %vm2605_vm13 = vweird.f32 %v3037_v22 }
0x28df   :  { %vm2606_vm14 = vmor %vm2604_vm12, %vm2605_vm13 }
0x28e0   :  { %v2601_v24 = vsub.f32 1.0, %v2600_v52 }
0x28e2   :  { %v2602_v7 = vmul.f32 %v3037_v22, %v2601_v24 }
0x28e4   :  { %v2603_v27 = vadd.f32 %v3037_v22, %v2602_v7 }
0x28e6   :  { %v2607_v44 = vsel %vm2606_vm14, %v3037_v22, %v2603_v27 }
0x28e7   :  { %v2612_v35 = vsel %vm2609_vm15, %v2611_v20, %v2607_v44 }
0x2900   :  { %v2495_v6 = vpop.permute.xlu2 %2494 }
0x2901   :  { %v2497_v54 = vmul.f32 %v2495_v6, %v3698_v61 }
0x2903   :  { %v2498_v55 = vmul.f32 4.6151204, %v2497_v54 }
0x2905   :  { %v2499_v3 = vmul.f32 1.442695, %v2498_v55 }
0x2907   :  { %3038 = vpow2.f32 %v2499_v3 }
0x290d   :  { %v3039_v29 = vpop.eup %3038 }
0x290e   :  { %v2725_v32 = vadd.f32 -1.0, %v3039_v29 }
0x2910   :  { %v2502_v33 = vadd.f32 %v2725_v32, %v3681_v30 }
0x2912   :  { %v2613_v61 = vmul.f32 %v2612_v35, %v2502_v33 }
0x2914   :  { %2615 = vrot.lane.b32.xlu0 %v2613_v61, %s3077_s1 }
0x2986   :  { %v2616_v36 = vpop.permute.xlu0 %2615 }
0x2987   :  { %2619 = vst.msk [vmem:[%s3741_s3] sm:$0x3] %vm2618_vm0, %v2616_v36 }
0x2988   :  { %2624 = vsyncpa [#allocation8], 1 }

</bundles_post_ra>
